<compile_context>
chip_gen: v5e
topology: v5e:2x2
jax: 0.10.0
libtpu: 0.0.40
codegen_flags: <defaults>
</compile_context>

<pallas_src>
import functools

import jax
import jax.numpy as jnp
from jax.experimental import pallas as pl
from jax.experimental.pallas import tpu as pltpu


# ----------------------------- in-kernel helpers -----------------------------

def _gelu(x):
    # TODO(synk): PyTorch nn.GELU defaults to the exact erf form; the tanh
    # approximation is used because erf lowering support in Mosaic varies.
    return jax.nn.gelu(x, approximate=True)


def _layer_norm(x, gamma, beta, eps=1e-5):
    mu = jnp.mean(x, axis=-1, keepdims=True)
    var = jnp.mean(jnp.square(x - mu), axis=-1, keepdims=True)
    return (x - mu) * jax.lax.rsqrt(var + eps) * gamma + beta


def _mm_nt(a, b):
    # a: [m, k] @ b[n, k].T -> [m, n]  (PyTorch nn.Linear convention).
    # bf16 MXU operands, f32 accumulation; elementwise math stays f32.
    return jax.lax.dot_general(
        a.astype(jnp.bfloat16), b.astype(jnp.bfloat16),
        (((1,), (1,)), ((), ())), preferred_element_type=jnp.float32)


def _mm_tn(a, b):
    # a: [k, m], b: [k, n] -> [m, n]  (contraction over the leading axis).
    return jax.lax.dot_general(
        a.astype(jnp.bfloat16), b.astype(jnp.bfloat16),
        (((0,), (0,)), ((), ())), preferred_element_type=jnp.float32)


# ----------------------------- fused Pallas kernel ----------------------------

def mixer_kernel(tok_ref, valid_ref, embed_ref, pe_ref, bmask_ref,
                 ln1_g, ln1_b,
                 h1w1, h1b1, h1w2, h1b2,
                 h2w1, h2b1, h2w2, h2b2,
                 hln_g, hln_b,
                 ln2_g, ln2_b,
                 cm_w1, cm_b1, cm_w2, cm_b2,
                 lnf_g, lnf_b,
                 o_ref, *, num_layers, vocab_size):
    """Full Mixer_each_chr stack for one (chromosome, batch-row) pair."""
    tok = tok_ref[...]                                        # [S, 1] int32
    S = tok.shape[0]
    # padding mask generated in-kernel: 1.0 = valid token, 0.0 = padding (id 0)
    maskf = (tok != 0).astype(jnp.float32)                    # [S, 1]

    # Embedding lookup as an exact one-hot matmul (kept in f32).
    onehot = (tok == jax.lax.broadcasted_iota(jnp.int32, (S, vocab_size), 1)
              ).astype(jnp.float32)                           # [S, V]
    x = jnp.dot(onehot, embed_ref[...],
                preferred_element_type=jnp.float32)           # [S, D]

    pe = pe_ref[...]                                          # [S, D]
    bmask = bmask_ref[...]                                    # [D, K] block-diag head mask

    for l in range(num_layers):                               # unrolled (small, static)
        # ---------------- HyperMixing (token mixing along the sequence) ------
        xn = _layer_norm(x, ln1_g[l], ln1_b[l])
        out_m = xn * maskf
        # TODO(synk): PE added after masking (hyp_in = out_m + pe) matches the
        # previous implementation / speechbrain HyperMixing ordering.
        hyp_in = out_m + pe
        # packed per-head hypernets: block-diagonal weights -> one matmul/stage
        a1 = _gelu(_mm_nt(hyp_in, h1w1[l]) + h1b1[l])         # [S, D]
        W1 = (_mm_nt(a1, h1w2[l]) + h1b2[l]) * maskf          # [S, K]
        a2 = _gelu(_mm_nt(hyp_in, h2w1[l]) + h2b1[l])         # [S, D]
        W2 = (_mm_nt(a2, h2w2[l]) + h2b2[l]) * maskf          # [S, K]
        # token-mixing MLP along the sequence; bmask keeps heads independent
        # (cross-head blocks are zeroed before GELU, gelu(0) == 0).
        tmp = _gelu(_mm_tn(out_m, W1) * bmask)                # [D, K]
        mixed = _mm_nt(W2, tmp)                               # [S, D]
        x = x + _layer_norm(mixed, hln_g[l], hln_b[l])
        # ---------------- Channel mixing (feature MLP) -----------------------
        xn2 = _layer_norm(x, ln2_g[l], ln2_b[l])
        hcm = _gelu(_mm_nt(xn2, cm_w1[l]) + cm_b1[l])
        x = x + _mm_nt(hcm, cm_w2[l]) + cm_b2[l]

    x = _layer_norm(x, lnf_g[...], lnf_b[...])
    # epilogue: masked sum over the sequence dim (artificial pad positions are
    # excluded); the global mean pooling over the concatenated sequence is
    # finished in plain JAX.
    o_ref[...] = jnp.sum(x * valid_ref[...], axis=0, keepdims=True)   # [1, D]


# ----------------------------- Pallas wrapper ---------------------------------

_WEIGHT_KEYS = ('ln1_g', 'ln1_b', 'h1w1', 'h1b1', 'h1w2', 'h1b2',
                'h2w1', 'h2b1', 'h2w2', 'h2b2', 'hln_g', 'hln_b',
                'ln2_g', 'ln2_b', 'cm_w1', 'cm_b1', 'cm_w2', 'cm_b2')


def _chr_imap(ndim):
    # leading axis follows the chromosome grid index; everything else block 0.
    def imap(c, b):
        return (c,) + (0,) * (ndim - 1)
    return imap


def _bcast_imap(ndim):
    def imap(c, b):
        return (0,) * ndim
    return imap


def run_mixer_stack(toks, valid, packed, pe, bmask, vocab_size):
    """Single fused pallas_call over (chromosome, batch) for the whole model body."""
    C, B, Smax, _ = toks.shape
    D = pe.shape[1]
    num_layers = packed['ln1_g'].shape[1]

    embed = packed['embed']
    weight_arrays = ([packed[k] for k in _WEIGHT_KEYS]
                     + [packed['lnf_g'], packed['lnf_b']])

    in_specs = [
        # tokens: one (seq, 1) row per (chromosome, batch) grid point
        pl.BlockSpec((None, None, Smax, 1), lambda c, b: (c, b, 0, 0)),
        # valid-length mask: per chromosome
        pl.BlockSpec((None, Smax, 1), _chr_imap(3)),
        # embedding table: per chromosome
        pl.BlockSpec((None,) + embed.shape[1:], _chr_imap(embed.ndim)),
        # positional encoding + head block mask: shared
        pl.BlockSpec(pe.shape, _bcast_imap(pe.ndim)),
        pl.BlockSpec(bmask.shape, _bcast_imap(bmask.ndim)),
    ] + [pl.BlockSpec((None,) + a.shape[1:], _chr_imap(a.ndim))
         for a in weight_arrays]

    kernel = functools.partial(mixer_kernel,
                               num_layers=num_layers, vocab_size=vocab_size)
    out = pl.pallas_call(
        kernel,
        out_shape=jax.ShapeDtypeStruct((C, B, 1, D), jnp.float32),
        grid=(C, B),
        in_specs=in_specs,
        out_specs=pl.BlockSpec((None, None, 1, D), lambda c, b: (c, b, 0, 0)),
        compiler_params=pltpu.CompilerParams(
            dimension_semantics=("parallel", "parallel")),
        # TODO(synk): if S/D are scaled up for real configs, add a seq-tiling
        # path and set vmem_limit_bytes explicitly (v7x has half the VMEM of
        # v5e/v6e); at these sizes the whole stack is a few hundred KB.
    )(toks, valid, embed, pe, bmask, *weight_arrays)
    return out[:, :, 0, :]                                    # [C, B, D]


# ----------------------------- weight packing (plain JAX) ---------------------

def _block_diag(blocks):
    # blocks: [H, r, c] -> [H*r, H*c] block-diagonal (single vectorized op).
    H, r, c = blocks.shape
    eye = jnp.eye(H, dtype=blocks.dtype)                      # [H, H]
    out = blocks[:, :, None, :] * eye[:, None, :, None]       # [H, r, H, c]
    return out.reshape(H * r, H * c)


def pack_chromosome_params(cp):
    """Pack per-head hypernet weights block-diagonally and stack the layers."""
    acc = {k: [] for k in _WEIGHT_KEYS}
    for lp in cp['layers']:
        acc['ln1_g'].append(lp['ln1_g']);  acc['ln1_b'].append(lp['ln1_b'])
        acc['h1w1'].append(_block_diag(lp['w1_fc1w']))
        acc['h1b1'].append(lp['w1_fc1b'][:, 0, :].reshape(1, -1))
        acc['h1w2'].append(_block_diag(lp['w1_fc2w']))
        acc['h1b2'].append(lp['w1_fc2b'][:, 0, :].reshape(1, -1))
        acc['h2w1'].append(_block_diag(lp['w2_fc1w']))
        acc['h2b1'].append(lp['w2_fc1b'][:, 0, :].reshape(1, -1))
        acc['h2w2'].append(_block_diag(lp['w2_fc2w']))
        acc['h2b2'].append(lp['w2_fc2b'][:, 0, :].reshape(1, -1))
        acc['hln_g'].append(lp['hln_g']);  acc['hln_b'].append(lp['hln_b'])
        acc['ln2_g'].append(lp['ln2_g']);  acc['ln2_b'].append(lp['ln2_b'])
        acc['cm_w1'].append(lp['cm_fc1w']); acc['cm_b1'].append(lp['cm_fc1b'])
        acc['cm_w2'].append(lp['cm_fc2w']); acc['cm_b2'].append(lp['cm_fc2b'])
    packed = {k: jnp.stack(v) for k, v in acc.items()}        # each [L, ...]
    packed['embed'] = cp['embed']
    packed['lnf_g'] = cp['ln_g']
    packed['lnf_b'] = cp['ln_b']
    return packed


def pack_all_params(params):
    """Stack the per-chromosome packed weights on a leading chromosome axis."""
    per_chr = [pack_chromosome_params(cp) for cp in params['chrs']]
    return {k: jnp.stack([p[k] for p in per_chr]) for k in per_chr[0]}


def make_head_blockmask(num_heads, dh, hyp_h):
    D, K = num_heads * dh, num_heads * hyp_h
    row_head = jnp.arange(D) // dh
    col_head = jnp.arange(K) // hyp_h
    return (row_head[:, None] == col_head[None, :]).astype(jnp.float32)


def sinusoidal_pe(seq_len, dim):
    positions = jnp.arange(seq_len, dtype=jnp.float32)[:, None]
    denom = jnp.exp(jnp.arange(0, dim, 2, dtype=jnp.float32) *
                    -(jnp.log(10000.0) / dim))
    pe = jnp.zeros((seq_len, dim), jnp.float32)
    pe = pe.at[:, 0::2].set(jnp.sin(positions * denom))
    pe = pe.at[:, 1::2].set(jnp.cos(positions * denom))
    return pe


# ----------------------------- params & model glue ----------------------------

def init_params(key, vocab_size, maxlens, tp):
    D = int(tp['d_k'] * tp['num_heads'])
    H = int(tp['num_heads'])
    dh = D // H
    hypernet = int(tp['hidden_dim_hyper_mixing'] * tp['num_heads'])
    hyp_h = hypernet // H
    hid_cm = int(D * tp['feature_mixing_mlp_factor'])
    nlayers = int(tp['num_mixer_layers'])

    keys = iter(jax.random.split(key, 512))

    def nrm(shape, scale=0.05):
        return jax.random.normal(next(keys), shape, jnp.float32) * scale

    chrs = []
    for _ in maxlens:
        layers = []
        for _ in range(nlayers):
            layers.append(dict(
                ln1_g=jnp.ones((1, D), jnp.float32), ln1_b=jnp.zeros((1, D), jnp.float32),
                # hypernet "W1 generator": per-head Linear(dh->dh)+GELU+Linear(dh->hyp_h)
                w1_fc1w=nrm((H, dh, dh)), w1_fc1b=nrm((H, 1, dh)),
                w1_fc2w=nrm((H, hyp_h, dh)), w1_fc2b=nrm((H, 1, hyp_h)),
                # hypernet "W2 generator"
                w2_fc1w=nrm((H, dh, dh)), w2_fc1b=nrm((H, 1, dh)),
                w2_fc2w=nrm((H, hyp_h, dh)), w2_fc2b=nrm((H, 1, hyp_h)),
                hln_g=jnp.ones((1, D), jnp.float32), hln_b=jnp.zeros((1, D), jnp.float32),
                ln2_g=jnp.ones((1, D), jnp.float32), ln2_b=jnp.zeros((1, D), jnp.float32),
                cm_fc1w=nrm((hid_cm, D)), cm_fc1b=nrm((1, hid_cm)),
                cm_fc2w=nrm((D, hid_cm)), cm_fc2b=nrm((1, D)),
            ))
        chrs.append(dict(
            embed=nrm((vocab_size, D), 0.1),
            layers=layers,
            ln_g=jnp.ones((1, D), jnp.float32), ln_b=jnp.zeros((1, D), jnp.float32),
        ))
    return dict(chrs=chrs,
                fc_w=nrm((1, D)), fc_b=nrm((1, 1)),
                D=D, H=H, hyp_h=hyp_h)


def mixer_model_forward(list_X, params, tp):
    H, hyp_h, D = params['H'], params['hyp_h'], params['D']
    dh = D // H
    bmask = make_head_blockmask(H, dh, hyp_h)
    vocab_size = params['chrs'][0]['embed'].shape[0]

    lens = [int(x.shape[1]) for x in list_X]
    Smax = max(lens)
    C = len(list_X)
    B = int(list_X[0].shape[0])

    # Pad every chromosome's tokens with id 0 up to Smax so all chromosomes
    # share one kernel; artificial pad positions are masked out of the
    # sequence-sum epilogue (and, being token 0, are inert inside HyperMixing).
    toks = jnp.stack([jnp.pad(x.astype(jnp.int32),
                              ((0, 0), (0, Smax - x.shape[1]))) for x in list_X])
    toks = toks.reshape(C, B, Smax, 1)
    valid = jnp.stack([(jnp.arange(Smax) < L).astype(jnp.float32) for L in lens])
    valid = valid.reshape(C, Smax, 1)
    pe = sinusoidal_pe(Smax, D)
    packed = pack_all_params(params)

    seq_sums = run_mixer_stack(toks, valid, packed, pe, bmask, vocab_size)  # [C,B,D]

    # mean over the concatenated seq dim == (sum of per-chromosome seq sums)
    # / total length (padding-token positions included, as torch.mean(concat, dim=1)).
    # The .permute(0,2,1) in the PyTorch forward is dead code; dropout = identity.
    pooled = jnp.sum(seq_sums, axis=0) / float(sum(lens))      # [B, D]
    y = jnp.dot(pooled, params['fc_w'].T) + params['fc_b']     # [B, 1]
    act = tp['activation']
    if act == 'ReLU':
        y = jnp.maximum(y, 0.0)
    elif act == 'LeakyReLU':
        y = jnp.where(y >= 0, y, 0.01 * y)
    elif act == 'GELU':
        y = _gelu(y)
    else:
        y = jnp.tanh(y)
    return y


# ----------------------------------- main -------------------------------------

if __name__ == "__main__":
    tuning_params = dict(
        d_k=8, num_heads=4,                 # embed_dim = 32
        hidden_dim_hyper_mixing=16,         # hypernet_size = 64
        feature_mixing_mlp_factor=2.0,      # channel-mixing hidden = 64
        num_mixer_layers=2,
        dropout_mixer=0.1, dropout_linear=0.1,
        activation='ReLU',
    )
    vocab_size = 8
    maxlen = [16, 8, 12, 16, 8]
    batch = 2

    key = jax.random.PRNGKey(0)
    pkey, *xkeys = jax.random.split(key, 1 + len(maxlen))
    params = init_params(pkey, vocab_size, maxlen, tuning_params)
    # token id 0 acts as padding (exercises the padding-mask path)
    list_X = [jax.random.randint(k, (batch, L), 0, vocab_size, dtype=jnp.int32)
              for k, L in zip(xkeys, maxlen)]

    out = mixer_model_forward(list_X, params, tuning_params)
    out = jax.block_until_ready(out)
    assert out.shape == (batch, 1) and out.dtype == jnp.float32
    print("KERNEL_OK")
</pallas_src>

<mosaic_0001>
module attributes {stable_mosaic.version = 11 : i64} {
  func.func @mixer_kernel(%arg0: i32, %arg1: i32, %arg2: memref<1x1x16x1xi32, #tpu.memory_space<vmem>>, %arg3: memref<1x16x1xf32, #tpu.memory_space<vmem>>, %arg4: memref<1x8x32xf32, #tpu.memory_space<vmem>>, %arg5: memref<16x32xf32, #tpu.memory_space<vmem>>, %arg6: memref<32x64xf32, #tpu.memory_space<vmem>>, %arg7: memref<1x2x1x32xf32, #tpu.memory_space<vmem>>, %arg8: memref<1x2x1x32xf32, #tpu.memory_space<vmem>>, %arg9: memref<1x2x32x32xf32, #tpu.memory_space<vmem>>, %arg10: memref<1x2x1x32xf32, #tpu.memory_space<vmem>>, %arg11: memref<1x2x64x32xf32, #tpu.memory_space<vmem>>, %arg12: memref<1x2x1x64xf32, #tpu.memory_space<vmem>>, %arg13: memref<1x2x32x32xf32, #tpu.memory_space<vmem>>, %arg14: memref<1x2x1x32xf32, #tpu.memory_space<vmem>>, %arg15: memref<1x2x64x32xf32, #tpu.memory_space<vmem>>, %arg16: memref<1x2x1x64xf32, #tpu.memory_space<vmem>>, %arg17: memref<1x2x1x32xf32, #tpu.memory_space<vmem>>, %arg18: memref<1x2x1x32xf32, #tpu.memory_space<vmem>>, %arg19: memref<1x2x1x32xf32, #tpu.memory_space<vmem>>, %arg20: memref<1x2x1x32xf32, #tpu.memory_space<vmem>>, %arg21: memref<1x2x64x32xf32, #tpu.memory_space<vmem>>, %arg22: memref<1x2x1x64xf32, #tpu.memory_space<vmem>>, %arg23: memref<1x2x32x64xf32, #tpu.memory_space<vmem>>, %arg24: memref<1x2x1x32xf32, #tpu.memory_space<vmem>>, %arg25: memref<1x1x32xf32, #tpu.memory_space<vmem>>, %arg26: memref<1x1x32xf32, #tpu.memory_space<vmem>>, %arg27: memref<1x1x1x32xf32, #tpu.memory_space<vmem>>) attributes {dimension_semantics = [#tpu.dimension_semantics<parallel>, #tpu.dimension_semantics<parallel>], iteration_bounds = array<i64: 5, 2>, scalar_prefetch = 0 : i64, scratch_operands = 0 : i64, tpu.core_type = #tpu.core_type<tc>, window_params = [{transform_indices = @transform_0, window_bounds = array<i64: 1, 1, 16, 1>}, {transform_indices = @transform_1, window_bounds = array<i64: 1, 16, 1>}, {transform_indices = @transform_2, window_bounds = array<i64: 1, 8, 32>}, {pipeline_mode = #tpu.pipeline_mode<synchronous>, transform_indices = @transform_3, window_bounds = array<i64: 16, 32>}, {pipeline_mode = #tpu.pipeline_mode<synchronous>, transform_indices = @transform_4, window_bounds = array<i64: 32, 64>}, {transform_indices = @transform_5, window_bounds = array<i64: 1, 2, 1, 32>}, {transform_indices = @transform_6, window_bounds = array<i64: 1, 2, 1, 32>}, {transform_indices = @transform_7, window_bounds = array<i64: 1, 2, 32, 32>}, {transform_indices = @transform_8, window_bounds = array<i64: 1, 2, 1, 32>}, {transform_indices = @transform_9, window_bounds = array<i64: 1, 2, 64, 32>}, {transform_indices = @transform_10, window_bounds = array<i64: 1, 2, 1, 64>}, {transform_indices = @transform_11, window_bounds = array<i64: 1, 2, 32, 32>}, {transform_indices = @transform_12, window_bounds = array<i64: 1, 2, 1, 32>}, {transform_indices = @transform_13, window_bounds = array<i64: 1, 2, 64, 32>}, {transform_indices = @transform_14, window_bounds = array<i64: 1, 2, 1, 64>}, {transform_indices = @transform_15, window_bounds = array<i64: 1, 2, 1, 32>}, {transform_indices = @transform_16, window_bounds = array<i64: 1, 2, 1, 32>}, {transform_indices = @transform_17, window_bounds = array<i64: 1, 2, 1, 32>}, {transform_indices = @transform_18, window_bounds = array<i64: 1, 2, 1, 32>}, {transform_indices = @transform_19, window_bounds = array<i64: 1, 2, 64, 32>}, {transform_indices = @transform_20, window_bounds = array<i64: 1, 2, 1, 64>}, {transform_indices = @transform_21, window_bounds = array<i64: 1, 2, 32, 64>}, {transform_indices = @transform_22, window_bounds = array<i64: 1, 2, 1, 32>}, {transform_indices = @transform_23, window_bounds = array<i64: 1, 1, 32>}, {transform_indices = @transform_24, window_bounds = array<i64: 1, 1, 32>}, {transform_indices = @transform_25, window_bounds = array<i64: 1, 1, 1, 32>}]} {
    %c0 = arith.constant 0 : index
    %c0_0 = arith.constant 0 : index
    %c0_1 = arith.constant 0 : index
    %c0_2 = arith.constant 0 : index
    %0 = vector.load %arg2[%c0, %c0_0, %c0_1, %c0_2] : memref<1x1x16x1xi32, #tpu.memory_space<vmem>>, vector<1x1x16x1xi32>
    %1 = vector.shape_cast %0 : vector<1x1x16x1xi32> to vector<16x1xi32>
    %c0_i32 = arith.constant 0 : i32
    %2 = vector.broadcast %c0_i32 : i32 to vector<16x1xi32>
    %3 = arith.cmpi ne, %1, %2 : vector<16x1xi32>
    %4 = arith.extui %3 : vector<16x1xi1> to vector<16x1xi32>
    %5 = arith.sitofp %4 : vector<16x1xi32> to vector<16x1xf32>
    %6 = tpu.iota {dimensions = array<i32: 1>} : vector<16x8xi32>
    %7 = vector.broadcast %1 : vector<16x1xi32> to vector<16x8xi32>
    %8 = arith.cmpi eq, %7, %6 : vector<16x8xi32>
    %9 = arith.extui %8 : vector<16x8xi1> to vector<16x8xi32>
    %10 = arith.sitofp %9 : vector<16x8xi32> to vector<16x8xf32>
    %c0_3 = arith.constant 0 : index
    %c0_4 = arith.constant 0 : index
    %c0_5 = arith.constant 0 : index
    %11 = vector.load %arg4[%c0_3, %c0_4, %c0_5] : memref<1x8x32xf32, #tpu.memory_space<vmem>>, vector<1x8x32xf32>
    %12 = vector.shape_cast %11 : vector<1x8x32xf32> to vector<8x32xf32>
    %cst = arith.constant dense<0.000000e+00> : vector<16x32xf32>
    %13 = tpu.matmul %10, %12, %cst {dimension_numbers = #tpu.dot_dimension_numbers<[1], [0], [0], [1], [0, 0, 1, 1], [], []>} : vector<16x8xf32>, vector<8x32xf32>, vector<16x32xf32> -> vector<16x32xf32>
    %c0_6 = arith.constant 0 : index
    %c0_7 = arith.constant 0 : index
    %14 = vector.load %arg5[%c0_6, %c0_7] : memref<16x32xf32, #tpu.memory_space<vmem>>, vector<16x32xf32>
    %c0_8 = arith.constant 0 : index
    %c0_9 = arith.constant 0 : index
    %15 = vector.load %arg6[%c0_8, %c0_9] : memref<32x64xf32, #tpu.memory_space<vmem>>, vector<32x64xf32>
    %c0_10 = arith.constant 0 : index
    %c0_11 = arith.constant 0 : index
    %c0_12 = arith.constant 0 : index
    %c0_13 = arith.constant 0 : index
    %16 = vector.load %arg7[%c0_10, %c0_11, %c0_12, %c0_13] : memref<1x2x1x32xf32, #tpu.memory_space<vmem>>, vector<1x1x1x32xf32>
    %17 = vector.shape_cast %16 : vector<1x1x1x32xf32> to vector<1x32xf32>
    %c0_14 = arith.constant 0 : index
    %c0_15 = arith.constant 0 : index
    %c0_16 = arith.constant 0 : index
    %c0_17 = arith.constant 0 : index
    %18 = vector.load %arg8[%c0_14, %c0_15, %c0_16, %c0_17] : memref<1x2x1x32xf32, #tpu.memory_space<vmem>>, vector<1x1x1x32xf32>
    %19 = vector.shape_cast %18 : vector<1x1x1x32xf32> to vector<1x32xf32>
    %cst_18 = arith.constant dense<0.000000e+00> : vector<16xf32>
    %20 = vector.multi_reduction <add>, %13, %cst_18 [1] : vector<16x32xf32> to vector<16xf32>
    %21 = vector.shape_cast %20 : vector<16xf32> to vector<16x1xf32>
    %cst_19 = arith.constant 3.200000e+01 : f32
    %22 = vector.broadcast %cst_19 : f32 to vector<16x1xf32>
    %23 = arith.divf %21, %22 : vector<16x1xf32>
    %24 = vector.broadcast %23 : vector<16x1xf32> to vector<16x32xf32>
    %25 = arith.subf %13, %24 : vector<16x32xf32>
    %26 = arith.mulf %25, %25 : vector<16x32xf32>
    %cst_20 = arith.constant dense<0.000000e+00> : vector<16xf32>
    %27 = vector.multi_reduction <add>, %26, %cst_20 [1] : vector<16x32xf32> to vector<16xf32>
    %28 = vector.shape_cast %27 : vector<16xf32> to vector<16x1xf32>
    %cst_21 = arith.constant 3.200000e+01 : f32
    %29 = vector.broadcast %cst_21 : f32 to vector<16x1xf32>
    %30 = arith.divf %28, %29 : vector<16x1xf32>
    %31 = vector.broadcast %23 : vector<16x1xf32> to vector<16x32xf32>
    %32 = arith.subf %13, %31 : vector<16x32xf32>
    %cst_22 = arith.constant 9.99999974E-6 : f32
    %33 = vector.broadcast %cst_22 : f32 to vector<16x1xf32>
    %34 = arith.addf %30, %33 : vector<16x1xf32>
    %35 = math.rsqrt %34 : vector<16x1xf32>
    %36 = vector.broadcast %35 : vector<16x1xf32> to vector<16x32xf32>
    %37 = arith.mulf %32, %36 : vector<16x32xf32>
    %38 = vector.broadcast %17 : vector<1x32xf32> to vector<16x32xf32>
    %39 = arith.mulf %37, %38 : vector<16x32xf32>
    %40 = vector.broadcast %19 : vector<1x32xf32> to vector<16x32xf32>
    %41 = arith.addf %39, %40 : vector<16x32xf32>
    %42 = vector.broadcast %5 : vector<16x1xf32> to vector<16x32xf32>
    %43 = arith.mulf %41, %42 : vector<16x32xf32>
    %44 = arith.addf %43, %14 : vector<16x32xf32>
    %c0_23 = arith.constant 0 : index
    %c0_24 = arith.constant 0 : index
    %c0_25 = arith.constant 0 : index
    %c0_26 = arith.constant 0 : index
    %45 = vector.load %arg9[%c0_23, %c0_24, %c0_25, %c0_26] : memref<1x2x32x32xf32, #tpu.memory_space<vmem>>, vector<1x1x32x32xf32>
    %46 = vector.shape_cast %45 : vector<1x1x32x32xf32> to vector<32x32xf32>
    %47 = arith.truncf %44 : vector<16x32xf32> to vector<16x32xbf16>
    %48 = arith.truncf %46 : vector<32x32xf32> to vector<32x32xbf16>
    %cst_27 = arith.constant dense<0.000000e+00> : vector<16x32xf32>
    %49 = tpu.matmul %47, %48, %cst_27 {dimension_numbers = #tpu.dot_dimension_numbers<[1], [1], [0], [0], [0, 0, 1, 0], [], []>} : vector<16x32xbf16>, vector<32x32xbf16>, vector<16x32xf32> -> vector<16x32xf32>
    %c0_28 = arith.constant 0 : index
    %c0_29 = arith.constant 0 : index
    %c0_30 = arith.constant 0 : index
    %c0_31 = arith.constant 0 : index
    %50 = vector.load %arg10[%c0_28, %c0_29, %c0_30, %c0_31] : memref<1x2x1x32xf32, #tpu.memory_space<vmem>>, vector<1x1x1x32xf32>
    %51 = vector.shape_cast %50 : vector<1x1x1x32xf32> to vector<1x32xf32>
    %52 = vector.broadcast %51 : vector<1x32xf32> to vector<16x32xf32>
    %53 = arith.addf %49, %52 : vector<16x32xf32>
    %54 = arith.mulf %53, %53 : vector<16x32xf32>
    %55 = arith.mulf %53, %54 : vector<16x32xf32>
    %cst_32 = arith.constant 4.471500e-02 : f32
    %56 = vector.broadcast %cst_32 : f32 to vector<16x32xf32>
    %57 = arith.mulf %56, %55 : vector<16x32xf32>
    %58 = arith.addf %53, %57 : vector<16x32xf32>
    %cst_33 = arith.constant 0.797884583 : f32
    %59 = vector.broadcast %cst_33 : f32 to vector<16x32xf32>
    %60 = arith.mulf %59, %58 : vector<16x32xf32>
    %61 = math.tanh %60 : vector<16x32xf32>
    %cst_34 = arith.constant 1.000000e+00 : f32
    %62 = vector.broadcast %cst_34 : f32 to vector<16x32xf32>
    %63 = arith.addf %62, %61 : vector<16x32xf32>
    %cst_35 = arith.constant 5.000000e-01 : f32
    %64 = vector.broadcast %cst_35 : f32 to vector<16x32xf32>
    %65 = arith.mulf %64, %63 : vector<16x32xf32>
    %66 = arith.mulf %53, %65 : vector<16x32xf32>
    %c0_36 = arith.constant 0 : index
    %c0_37 = arith.constant 0 : index
    %c0_38 = arith.constant 0 : index
    %c0_39 = arith.constant 0 : index
    %67 = vector.load %arg11[%c0_36, %c0_37, %c0_38, %c0_39] : memref<1x2x64x32xf32, #tpu.memory_space<vmem>>, vector<1x1x64x32xf32>
    %68 = vector.shape_cast %67 : vector<1x1x64x32xf32> to vector<64x32xf32>
    %69 = arith.truncf %66 : vector<16x32xf32> to vector<16x32xbf16>
    %70 = arith.truncf %68 : vector<64x32xf32> to vector<64x32xbf16>
    %cst_40 = arith.constant dense<0.000000e+00> : vector<16x64xf32>
    %71 = tpu.matmul %69, %70, %cst_40 {dimension_numbers = #tpu.dot_dimension_numbers<[1], [1], [0], [0], [0, 0, 1, 0], [], []>} : vector<16x32xbf16>, vector<64x32xbf16>, vector<16x64xf32> -> vector<16x64xf32>
    %c0_41 = arith.constant 0 : index
    %c0_42 = arith.constant 0 : index
    %c0_43 = arith.constant 0 : index
    %c0_44 = arith.constant 0 : index
    %72 = vector.load %arg12[%c0_41, %c0_42, %c0_43, %c0_44] : memref<1x2x1x64xf32, #tpu.memory_space<vmem>>, vector<1x1x1x64xf32>
    %73 = vector.shape_cast %72 : vector<1x1x1x64xf32> to vector<1x64xf32>
    %74 = vector.broadcast %73 : vector<1x64xf32> to vector<16x64xf32>
    %75 = arith.addf %71, %74 : vector<16x64xf32>
    %76 = vector.broadcast %5 : vector<16x1xf32> to vector<16x64xf32>
    %77 = arith.mulf %75, %76 : vector<16x64xf32>
    %c0_45 = arith.constant 0 : index
    %c0_46 = arith.constant 0 : index
    %c0_47 = arith.constant 0 : index
    %c0_48 = arith.constant 0 : index
    %78 = vector.load %arg13[%c0_45, %c0_46, %c0_47, %c0_48] : memref<1x2x32x32xf32, #tpu.memory_space<vmem>>, vector<1x1x32x32xf32>
    %79 = vector.shape_cast %78 : vector<1x1x32x32xf32> to vector<32x32xf32>
    %80 = arith.truncf %44 : vector<16x32xf32> to vector<16x32xbf16>
    %81 = arith.truncf %79 : vector<32x32xf32> to vector<32x32xbf16>
    %cst_49 = arith.constant dense<0.000000e+00> : vector<16x32xf32>
    %82 = tpu.matmul %80, %81, %cst_49 {dimension_numbers = #tpu.dot_dimension_numbers<[1], [1], [0], [0], [0, 0, 1, 0], [], []>} : vector<16x32xbf16>, vector<32x32xbf16>, vector<16x32xf32> -> vector<16x32xf32>
    %c0_50 = arith.constant 0 : index
    %c0_51 = arith.constant 0 : index
    %c0_52 = arith.constant 0 : index
    %c0_53 = arith.constant 0 : index
    %83 = vector.load %arg14[%c0_50, %c0_51, %c0_52, %c0_53] : memref<1x2x1x32xf32, #tpu.memory_space<vmem>>, vector<1x1x1x32xf32>
    %84 = vector.shape_cast %83 : vector<1x1x1x32xf32> to vector<1x32xf32>
    %85 = vector.broadcast %84 : vector<1x32xf32> to vector<16x32xf32>
    %86 = arith.addf %82, %85 : vector<16x32xf32>
    %87 = arith.mulf %86, %86 : vector<16x32xf32>
    %88 = arith.mulf %86, %87 : vector<16x32xf32>
    %cst_54 = arith.constant 4.471500e-02 : f32
    %89 = vector.broadcast %cst_54 : f32 to vector<16x32xf32>
    %90 = arith.mulf %89, %88 : vector<16x32xf32>
    %91 = arith.addf %86, %90 : vector<16x32xf32>
    %cst_55 = arith.constant 0.797884583 : f32
    %92 = vector.broadcast %cst_55 : f32 to vector<16x32xf32>
    %93 = arith.mulf %92, %91 : vector<16x32xf32>
    %94 = math.tanh %93 : vector<16x32xf32>
    %cst_56 = arith.constant 1.000000e+00 : f32
    %95 = vector.broadcast %cst_56 : f32 to vector<16x32xf32>
    %96 = arith.addf %95, %94 : vector<16x32xf32>
    %cst_57 = arith.constant 5.000000e-01 : f32
    %97 = vector.broadcast %cst_57 : f32 to vector<16x32xf32>
    %98 = arith.mulf %97, %96 : vector<16x32xf32>
    %99 = arith.mulf %86, %98 : vector<16x32xf32>
    %c0_58 = arith.constant 0 : index
    %c0_59 = arith.constant 0 : index
    %c0_60 = arith.constant 0 : index
    %c0_61 = arith.constant 0 : index
    %100 = vector.load %arg15[%c0_58, %c0_59, %c0_60, %c0_61] : memref<1x2x64x32xf32, #tpu.memory_space<vmem>>, vector<1x1x64x32xf32>
    %101 = vector.shape_cast %100 : vector<1x1x64x32xf32> to vector<64x32xf32>
    %102 = arith.truncf %99 : vector<16x32xf32> to vector<16x32xbf16>
    %103 = arith.truncf %101 : vector<64x32xf32> to vector<64x32xbf16>
    %cst_62 = arith.constant dense<0.000000e+00> : vector<16x64xf32>
    %104 = tpu.matmul %102, %103, %cst_62 {dimension_numbers = #tpu.dot_dimension_numbers<[1], [1], [0], [0], [0, 0, 1, 0], [], []>} : vector<16x32xbf16>, vector<64x32xbf16>, vector<16x64xf32> -> vector<16x64xf32>
    %c0_63 = arith.constant 0 : index
    %c0_64 = arith.constant 0 : index
    %c0_65 = arith.constant 0 : index
    %c0_66 = arith.constant 0 : index
    %105 = vector.load %arg16[%c0_63, %c0_64, %c0_65, %c0_66] : memref<1x2x1x64xf32, #tpu.memory_space<vmem>>, vector<1x1x1x64xf32>
    %106 = vector.shape_cast %105 : vector<1x1x1x64xf32> to vector<1x64xf32>
    %107 = vector.broadcast %106 : vector<1x64xf32> to vector<16x64xf32>
    %108 = arith.addf %104, %107 : vector<16x64xf32>
    %109 = vector.broadcast %5 : vector<16x1xf32> to vector<16x64xf32>
    %110 = arith.mulf %108, %109 : vector<16x64xf32>
    %111 = arith.truncf %43 : vector<16x32xf32> to vector<16x32xbf16>
    %112 = arith.truncf %77 : vector<16x64xf32> to vector<16x64xbf16>
    %cst_67 = arith.constant dense<0.000000e+00> : vector<32x64xf32>
    %113 = tpu.matmul %111, %112, %cst_67 {dimension_numbers = #tpu.dot_dimension_numbers<[0], [0], [1], [1], [0, 1, 1, 1], [], []>} : vector<16x32xbf16>, vector<16x64xbf16>, vector<32x64xf32> -> vector<32x64xf32>
    %114 = arith.mulf %113, %15 : vector<32x64xf32>
    %115 = arith.mulf %114, %114 : vector<32x64xf32>
    %116 = arith.mulf %114, %115 : vector<32x64xf32>
    %cst_68 = arith.constant 4.471500e-02 : f32
    %117 = vector.broadcast %cst_68 : f32 to vector<32x64xf32>
    %118 = arith.mulf %117, %116 : vector<32x64xf32>
    %119 = arith.addf %114, %118 : vector<32x64xf32>
    %cst_69 = arith.constant 0.797884583 : f32
    %120 = vector.broadcast %cst_69 : f32 to vector<32x64xf32>
    %121 = arith.mulf %120, %119 : vector<32x64xf32>
    %122 = math.tanh %121 : vector<32x64xf32>
    %cst_70 = arith.constant 1.000000e+00 : f32
    %123 = vector.broadcast %cst_70 : f32 to vector<32x64xf32>
    %124 = arith.addf %123, %122 : vector<32x64xf32>
    %cst_71 = arith.constant 5.000000e-01 : f32
    %125 = vector.broadcast %cst_71 : f32 to vector<32x64xf32>
    %126 = arith.mulf %125, %124 : vector<32x64xf32>
    %127 = arith.mulf %114, %126 : vector<32x64xf32>
    %128 = arith.truncf %110 : vector<16x64xf32> to vector<16x64xbf16>
    %129 = arith.truncf %127 : vector<32x64xf32> to vector<32x64xbf16>
    %cst_72 = arith.constant dense<0.000000e+00> : vector<16x32xf32>
    %130 = tpu.matmul %128, %129, %cst_72 {dimension_numbers = #tpu.dot_dimension_numbers<[1], [1], [0], [0], [0, 0, 1, 0], [], []>} : vector<16x64xbf16>, vector<32x64xbf16>, vector<16x32xf32> -> vector<16x32xf32>
    %c0_73 = arith.constant 0 : index
    %c0_74 = arith.constant 0 : index
    %c0_75 = arith.constant 0 : index
    %c0_76 = arith.constant 0 : index
    %131 = vector.load %arg17[%c0_73, %c0_74, %c0_75, %c0_76] : memref<1x2x1x32xf32, #tpu.memory_space<vmem>>, vector<1x1x1x32xf32>
    %132 = vector.shape_cast %131 : vector<1x1x1x32xf32> to vector<1x32xf32>
    %c0_77 = arith.constant 0 : index
    %c0_78 = arith.constant 0 : index
    %c0_79 = arith.constant 0 : index
    %c0_80 = arith.constant 0 : index
    %133 = vector.load %arg18[%c0_77, %c0_78, %c0_79, %c0_80] : memref<1x2x1x32xf32, #tpu.memory_space<vmem>>, vector<1x1x1x32xf32>
    %134 = vector.shape_cast %133 : vector<1x1x1x32xf32> to vector<1x32xf32>
    %cst_81 = arith.constant dense<0.000000e+00> : vector<16xf32>
    %135 = vector.multi_reduction <add>, %130, %cst_81 [1] : vector<16x32xf32> to vector<16xf32>
    %136 = vector.shape_cast %135 : vector<16xf32> to vector<16x1xf32>
    %cst_82 = arith.constant 3.200000e+01 : f32
    %137 = vector.broadcast %cst_82 : f32 to vector<16x1xf32>
    %138 = arith.divf %136, %137 : vector<16x1xf32>
    %139 = vector.broadcast %138 : vector<16x1xf32> to vector<16x32xf32>
    %140 = arith.subf %130, %139 : vector<16x32xf32>
    %141 = arith.mulf %140, %140 : vector<16x32xf32>
    %cst_83 = arith.constant dense<0.000000e+00> : vector<16xf32>
    %142 = vector.multi_reduction <add>, %141, %cst_83 [1] : vector<16x32xf32> to vector<16xf32>
    %143 = vector.shape_cast %142 : vector<16xf32> to vector<16x1xf32>
    %cst_84 = arith.constant 3.200000e+01 : f32
    %144 = vector.broadcast %cst_84 : f32 to vector<16x1xf32>
    %145 = arith.divf %143, %144 : vector<16x1xf32>
    %146 = vector.broadcast %138 : vector<16x1xf32> to vector<16x32xf32>
    %147 = arith.subf %130, %146 : vector<16x32xf32>
    %cst_85 = arith.constant 9.99999974E-6 : f32
    %148 = vector.broadcast %cst_85 : f32 to vector<16x1xf32>
    %149 = arith.addf %145, %148 : vector<16x1xf32>
    %150 = math.rsqrt %149 : vector<16x1xf32>
    %151 = vector.broadcast %150 : vector<16x1xf32> to vector<16x32xf32>
    %152 = arith.mulf %147, %151 : vector<16x32xf32>
    %153 = vector.broadcast %132 : vector<1x32xf32> to vector<16x32xf32>
    %154 = arith.mulf %152, %153 : vector<16x32xf32>
    %155 = vector.broadcast %134 : vector<1x32xf32> to vector<16x32xf32>
    %156 = arith.addf %154, %155 : vector<16x32xf32>
    %157 = arith.addf %13, %156 : vector<16x32xf32>
    %c0_86 = arith.constant 0 : index
    %c0_87 = arith.constant 0 : index
    %c0_88 = arith.constant 0 : index
    %c0_89 = arith.constant 0 : index
    %158 = vector.load %arg19[%c0_86, %c0_87, %c0_88, %c0_89] : memref<1x2x1x32xf32, #tpu.memory_space<vmem>>, vector<1x1x1x32xf32>
    %159 = vector.shape_cast %158 : vector<1x1x1x32xf32> to vector<1x32xf32>
    %c0_90 = arith.constant 0 : index
    %c0_91 = arith.constant 0 : index
    %c0_92 = arith.constant 0 : index
    %c0_93 = arith.constant 0 : index
    %160 = vector.load %arg20[%c0_90, %c0_91, %c0_92, %c0_93] : memref<1x2x1x32xf32, #tpu.memory_space<vmem>>, vector<1x1x1x32xf32>
    %161 = vector.shape_cast %160 : vector<1x1x1x32xf32> to vector<1x32xf32>
    %cst_94 = arith.constant dense<0.000000e+00> : vector<16xf32>
    %162 = vector.multi_reduction <add>, %157, %cst_94 [1] : vector<16x32xf32> to vector<16xf32>
    %163 = vector.shape_cast %162 : vector<16xf32> to vector<16x1xf32>
    %cst_95 = arith.constant 3.200000e+01 : f32
    %164 = vector.broadcast %cst_95 : f32 to vector<16x1xf32>
    %165 = arith.divf %163, %164 : vector<16x1xf32>
    %166 = vector.broadcast %165 : vector<16x1xf32> to vector<16x32xf32>
    %167 = arith.subf %157, %166 : vector<16x32xf32>
    %168 = arith.mulf %167, %167 : vector<16x32xf32>
    %cst_96 = arith.constant dense<0.000000e+00> : vector<16xf32>
    %169 = vector.multi_reduction <add>, %168, %cst_96 [1] : vector<16x32xf32> to vector<16xf32>
    %170 = vector.shape_cast %169 : vector<16xf32> to vector<16x1xf32>
    %cst_97 = arith.constant 3.200000e+01 : f32
    %171 = vector.broadcast %cst_97 : f32 to vector<16x1xf32>
    %172 = arith.divf %170, %171 : vector<16x1xf32>
    %173 = vector.broadcast %165 : vector<16x1xf32> to vector<16x32xf32>
    %174 = arith.subf %157, %173 : vector<16x32xf32>
    %cst_98 = arith.constant 9.99999974E-6 : f32
    %175 = vector.broadcast %cst_98 : f32 to vector<16x1xf32>
    %176 = arith.addf %172, %175 : vector<16x1xf32>
    %177 = math.rsqrt %176 : vector<16x1xf32>
    %178 = vector.broadcast %177 : vector<16x1xf32> to vector<16x32xf32>
    %179 = arith.mulf %174, %178 : vector<16x32xf32>
    %180 = vector.broadcast %159 : vector<1x32xf32> to vector<16x32xf32>
    %181 = arith.mulf %179, %180 : vector<16x32xf32>
    %182 = vector.broadcast %161 : vector<1x32xf32> to vector<16x32xf32>
    %183 = arith.addf %181, %182 : vector<16x32xf32>
    %c0_99 = arith.constant 0 : index
    %c0_100 = arith.constant 0 : index
    %c0_101 = arith.constant 0 : index
    %c0_102 = arith.constant 0 : index
    %184 = vector.load %arg21[%c0_99, %c0_100, %c0_101, %c0_102] : memref<1x2x64x32xf32, #tpu.memory_space<vmem>>, vector<1x1x64x32xf32>
    %185 = vector.shape_cast %184 : vector<1x1x64x32xf32> to vector<64x32xf32>
    %186 = arith.truncf %183 : vector<16x32xf32> to vector<16x32xbf16>
    %187 = arith.truncf %185 : vector<64x32xf32> to vector<64x32xbf16>
    %cst_103 = arith.constant dense<0.000000e+00> : vector<16x64xf32>
    %188 = tpu.matmul %186, %187, %cst_103 {dimension_numbers = #tpu.dot_dimension_numbers<[1], [1], [0], [0], [0, 0, 1, 0], [], []>} : vector<16x32xbf16>, vector<64x32xbf16>, vector<16x64xf32> -> vector<16x64xf32>
    %c0_104 = arith.constant 0 : index
    %c0_105 = arith.constant 0 : index
    %c0_106 = arith.constant 0 : index
    %c0_107 = arith.constant 0 : index
    %189 = vector.load %arg22[%c0_104, %c0_105, %c0_106, %c0_107] : memref<1x2x1x64xf32, #tpu.memory_space<vmem>>, vector<1x1x1x64xf32>
    %190 = vector.shape_cast %189 : vector<1x1x1x64xf32> to vector<1x64xf32>
    %191 = vector.broadcast %190 : vector<1x64xf32> to vector<16x64xf32>
    %192 = arith.addf %188, %191 : vector<16x64xf32>
    %193 = arith.mulf %192, %192 : vector<16x64xf32>
    %194 = arith.mulf %192, %193 : vector<16x64xf32>
    %cst_108 = arith.constant 4.471500e-02 : f32
    %195 = vector.broadcast %cst_108 : f32 to vector<16x64xf32>
    %196 = arith.mulf %195, %194 : vector<16x64xf32>
    %197 = arith.addf %192, %196 : vector<16x64xf32>
    %cst_109 = arith.constant 0.797884583 : f32
    %198 = vector.broadcast %cst_109 : f32 to vector<16x64xf32>
    %199 = arith.mulf %198, %197 : vector<16x64xf32>
    %200 = math.tanh %199 : vector<16x64xf32>
    %cst_110 = arith.constant 1.000000e+00 : f32
    %201 = vector.broadcast %cst_110 : f32 to vector<16x64xf32>
    %202 = arith.addf %201, %200 : vector<16x64xf32>
    %cst_111 = arith.constant 5.000000e-01 : f32
    %203 = vector.broadcast %cst_111 : f32 to vector<16x64xf32>
    %204 = arith.mulf %203, %202 : vector<16x64xf32>
    %205 = arith.mulf %192, %204 : vector<16x64xf32>
    %c0_112 = arith.constant 0 : index
    %c0_113 = arith.constant 0 : index
    %c0_114 = arith.constant 0 : index
    %c0_115 = arith.constant 0 : index
    %206 = vector.load %arg23[%c0_112, %c0_113, %c0_114, %c0_115] : memref<1x2x32x64xf32, #tpu.memory_space<vmem>>, vector<1x1x32x64xf32>
    %207 = vector.shape_cast %206 : vector<1x1x32x64xf32> to vector<32x64xf32>
    %208 = arith.truncf %205 : vector<16x64xf32> to vector<16x64xbf16>
    %209 = arith.truncf %207 : vector<32x64xf32> to vector<32x64xbf16>
    %cst_116 = arith.constant dense<0.000000e+00> : vector<16x32xf32>
    %210 = tpu.matmul %208, %209, %cst_116 {dimension_numbers = #tpu.dot_dimension_numbers<[1], [1], [0], [0], [0, 0, 1, 0], [], []>} : vector<16x64xbf16>, vector<32x64xbf16>, vector<16x32xf32> -> vector<16x32xf32>
    %211 = arith.addf %157, %210 : vector<16x32xf32>
    %c0_117 = arith.constant 0 : index
    %c0_118 = arith.constant 0 : index
    %c0_119 = arith.constant 0 : index
    %c0_120 = arith.constant 0 : index
    %212 = vector.load %arg24[%c0_117, %c0_118, %c0_119, %c0_120] : memref<1x2x1x32xf32, #tpu.memory_space<vmem>>, vector<1x1x1x32xf32>
    %213 = vector.shape_cast %212 : vector<1x1x1x32xf32> to vector<1x32xf32>
    %214 = vector.broadcast %213 : vector<1x32xf32> to vector<16x32xf32>
    %215 = arith.addf %211, %214 : vector<16x32xf32>
    %c0_121 = arith.constant 0 : index
    %c1 = arith.constant 1 : index
    %c0_122 = arith.constant 0 : index
    %c0_123 = arith.constant 0 : index
    %216 = vector.load %arg7[%c0_121, %c1, %c0_122, %c0_123] : memref<1x2x1x32xf32, #tpu.memory_space<vmem>>, vector<1x1x1x32xf32>
    %217 = vector.shape_cast %216 : vector<1x1x1x32xf32> to vector<1x32xf32>
    %c0_124 = arith.constant 0 : index
    %c1_125 = arith.constant 1 : index
    %c0_126 = arith.constant 0 : index
    %c0_127 = arith.constant 0 : index
    %218 = vector.load %arg8[%c0_124, %c1_125, %c0_126, %c0_127] : memref<1x2x1x32xf32, #tpu.memory_space<vmem>>, vector<1x1x1x32xf32>
    %219 = vector.shape_cast %218 : vector<1x1x1x32xf32> to vector<1x32xf32>
    %cst_128 = arith.constant dense<0.000000e+00> : vector<16xf32>
    %220 = vector.multi_reduction <add>, %215, %cst_128 [1] : vector<16x32xf32> to vector<16xf32>
    %221 = vector.shape_cast %220 : vector<16xf32> to vector<16x1xf32>
    %cst_129 = arith.constant 3.200000e+01 : f32
    %222 = vector.broadcast %cst_129 : f32 to vector<16x1xf32>
    %223 = arith.divf %221, %222 : vector<16x1xf32>
    %224 = vector.broadcast %223 : vector<16x1xf32> to vector<16x32xf32>
    %225 = arith.subf %215, %224 : vector<16x32xf32>
    %226 = arith.mulf %225, %225 : vector<16x32xf32>
    %cst_130 = arith.constant dense<0.000000e+00> : vector<16xf32>
    %227 = vector.multi_reduction <add>, %226, %cst_130 [1] : vector<16x32xf32> to vector<16xf32>
    %228 = vector.shape_cast %227 : vector<16xf32> to vector<16x1xf32>
    %cst_131 = arith.constant 3.200000e+01 : f32
    %229 = vector.broadcast %cst_131 : f32 to vector<16x1xf32>
    %230 = arith.divf %228, %229 : vector<16x1xf32>
    %231 = vector.broadcast %223 : vector<16x1xf32> to vector<16x32xf32>
    %232 = arith.subf %215, %231 : vector<16x32xf32>
    %cst_132 = arith.constant 9.99999974E-6 : f32
    %233 = vector.broadcast %cst_132 : f32 to vector<16x1xf32>
    %234 = arith.addf %230, %233 : vector<16x1xf32>
    %235 = math.rsqrt %234 : vector<16x1xf32>
    %236 = vector.broadcast %235 : vector<16x1xf32> to vector<16x32xf32>
    %237 = arith.mulf %232, %236 : vector<16x32xf32>
    %238 = vector.broadcast %217 : vector<1x32xf32> to vector<16x32xf32>
    %239 = arith.mulf %237, %238 : vector<16x32xf32>
    %240 = vector.broadcast %219 : vector<1x32xf32> to vector<16x32xf32>
    %241 = arith.addf %239, %240 : vector<16x32xf32>
    %242 = vector.broadcast %5 : vector<16x1xf32> to vector<16x32xf32>
    %243 = arith.mulf %241, %242 : vector<16x32xf32>
    %244 = arith.addf %243, %14 : vector<16x32xf32>
    %c0_133 = arith.constant 0 : index
    %c1_134 = arith.constant 1 : index
    %c0_135 = arith.constant 0 : index
    %c0_136 = arith.constant 0 : index
    %245 = vector.load %arg9[%c0_133, %c1_134, %c0_135, %c0_136] : memref<1x2x32x32xf32, #tpu.memory_space<vmem>>, vector<1x1x32x32xf32>
    %246 = vector.shape_cast %245 : vector<1x1x32x32xf32> to vector<32x32xf32>
    %247 = arith.truncf %244 : vector<16x32xf32> to vector<16x32xbf16>
    %248 = arith.truncf %246 : vector<32x32xf32> to vector<32x32xbf16>
    %cst_137 = arith.constant dense<0.000000e+00> : vector<16x32xf32>
    %249 = tpu.matmul %247, %248, %cst_137 {dimension_numbers = #tpu.dot_dimension_numbers<[1], [1], [0], [0], [0, 0, 1, 0], [], []>} : vector<16x32xbf16>, vector<32x32xbf16>, vector<16x32xf32> -> vector<16x32xf32>
    %c0_138 = arith.constant 0 : index
    %c1_139 = arith.constant 1 : index
    %c0_140 = arith.constant 0 : index
    %c0_141 = arith.constant 0 : index
    %250 = vector.load %arg10[%c0_138, %c1_139, %c0_140, %c0_141] : memref<1x2x1x32xf32, #tpu.memory_space<vmem>>, vector<1x1x1x32xf32>
    %251 = vector.shape_cast %250 : vector<1x1x1x32xf32> to vector<1x32xf32>
    %252 = vector.broadcast %251 : vector<1x32xf32> to vector<16x32xf32>
    %253 = arith.addf %249, %252 : vector<16x32xf32>
    %254 = arith.mulf %253, %253 : vector<16x32xf32>
    %255 = arith.mulf %253, %254 : vector<16x32xf32>
    %cst_142 = arith.constant 4.471500e-02 : f32
    %256 = vector.broadcast %cst_142 : f32 to vector<16x32xf32>
    %257 = arith.mulf %256, %255 : vector<16x32xf32>
    %258 = arith.addf %253, %257 : vector<16x32xf32>
    %cst_143 = arith.constant 0.797884583 : f32
    %259 = vector.broadcast %cst_143 : f32 to vector<16x32xf32>
    %260 = arith.mulf %259, %258 : vector<16x32xf32>
    %261 = math.tanh %260 : vector<16x32xf32>
    %cst_144 = arith.constant 1.000000e+00 : f32
    %262 = vector.broadcast %cst_144 : f32 to vector<16x32xf32>
    %263 = arith.addf %262, %261 : vector<16x32xf32>
    %cst_145 = arith.constant 5.000000e-01 : f32
    %264 = vector.broadcast %cst_145 : f32 to vector<16x32xf32>
    %265 = arith.mulf %264, %263 : vector<16x32xf32>
    %266 = arith.mulf %253, %265 : vector<16x32xf32>
    %c0_146 = arith.constant 0 : index
    %c1_147 = arith.constant 1 : index
    %c0_148 = arith.constant 0 : index
    %c0_149 = arith.constant 0 : index
    %267 = vector.load %arg11[%c0_146, %c1_147, %c0_148, %c0_149] : memref<1x2x64x32xf32, #tpu.memory_space<vmem>>, vector<1x1x64x32xf32>
    %268 = vector.shape_cast %267 : vector<1x1x64x32xf32> to vector<64x32xf32>
    %269 = arith.truncf %266 : vector<16x32xf32> to vector<16x32xbf16>
    %270 = arith.truncf %268 : vector<64x32xf32> to vector<64x32xbf16>
    %cst_150 = arith.constant dense<0.000000e+00> : vector<16x64xf32>
    %271 = tpu.matmul %269, %270, %cst_150 {dimension_numbers = #tpu.dot_dimension_numbers<[1], [1], [0], [0], [0, 0, 1, 0], [], []>} : vector<16x32xbf16>, vector<64x32xbf16>, vector<16x64xf32> -> vector<16x64xf32>
    %c0_151 = arith.constant 0 : index
    %c1_152 = arith.constant 1 : index
    %c0_153 = arith.constant 0 : index
    %c0_154 = arith.constant 0 : index
    %272 = vector.load %arg12[%c0_151, %c1_152, %c0_153, %c0_154] : memref<1x2x1x64xf32, #tpu.memory_space<vmem>>, vector<1x1x1x64xf32>
    %273 = vector.shape_cast %272 : vector<1x1x1x64xf32> to vector<1x64xf32>
    %274 = vector.broadcast %273 : vector<1x64xf32> to vector<16x64xf32>
    %275 = arith.addf %271, %274 : vector<16x64xf32>
    %276 = vector.broadcast %5 : vector<16x1xf32> to vector<16x64xf32>
    %277 = arith.mulf %275, %276 : vector<16x64xf32>
    %c0_155 = arith.constant 0 : index
    %c1_156 = arith.constant 1 : index
    %c0_157 = arith.constant 0 : index
    %c0_158 = arith.constant 0 : index
    %278 = vector.load %arg13[%c0_155, %c1_156, %c0_157, %c0_158] : memref<1x2x32x32xf32, #tpu.memory_space<vmem>>, vector<1x1x32x32xf32>
    %279 = vector.shape_cast %278 : vector<1x1x32x32xf32> to vector<32x32xf32>
    %280 = arith.truncf %244 : vector<16x32xf32> to vector<16x32xbf16>
    %281 = arith.truncf %279 : vector<32x32xf32> to vector<32x32xbf16>
    %cst_159 = arith.constant dense<0.000000e+00> : vector<16x32xf32>
    %282 = tpu.matmul %280, %281, %cst_159 {dimension_numbers = #tpu.dot_dimension_numbers<[1], [1], [0], [0], [0, 0, 1, 0], [], []>} : vector<16x32xbf16>, vector<32x32xbf16>, vector<16x32xf32> -> vector<16x32xf32>
    %c0_160 = arith.constant 0 : index
    %c1_161 = arith.constant 1 : index
    %c0_162 = arith.constant 0 : index
    %c0_163 = arith.constant 0 : index
    %283 = vector.load %arg14[%c0_160, %c1_161, %c0_162, %c0_163] : memref<1x2x1x32xf32, #tpu.memory_space<vmem>>, vector<1x1x1x32xf32>
    %284 = vector.shape_cast %283 : vector<1x1x1x32xf32> to vector<1x32xf32>
    %285 = vector.broadcast %284 : vector<1x32xf32> to vector<16x32xf32>
    %286 = arith.addf %282, %285 : vector<16x32xf32>
    %287 = arith.mulf %286, %286 : vector<16x32xf32>
    %288 = arith.mulf %286, %287 : vector<16x32xf32>
    %cst_164 = arith.constant 4.471500e-02 : f32
    %289 = vector.broadcast %cst_164 : f32 to vector<16x32xf32>
    %290 = arith.mulf %289, %288 : vector<16x32xf32>
    %291 = arith.addf %286, %290 : vector<16x32xf32>
    %cst_165 = arith.constant 0.797884583 : f32
    %292 = vector.broadcast %cst_165 : f32 to vector<16x32xf32>
    %293 = arith.mulf %292, %291 : vector<16x32xf32>
    %294 = math.tanh %293 : vector<16x32xf32>
    %cst_166 = arith.constant 1.000000e+00 : f32
    %295 = vector.broadcast %cst_166 : f32 to vector<16x32xf32>
    %296 = arith.addf %295, %294 : vector<16x32xf32>
    %cst_167 = arith.constant 5.000000e-01 : f32
    %297 = vector.broadcast %cst_167 : f32 to vector<16x32xf32>
    %298 = arith.mulf %297, %296 : vector<16x32xf32>
    %299 = arith.mulf %286, %298 : vector<16x32xf32>
    %c0_168 = arith.constant 0 : index
    %c1_169 = arith.constant 1 : index
    %c0_170 = arith.constant 0 : index
    %c0_171 = arith.constant 0 : index
    %300 = vector.load %arg15[%c0_168, %c1_169, %c0_170, %c0_171] : memref<1x2x64x32xf32, #tpu.memory_space<vmem>>, vector<1x1x64x32xf32>
    %301 = vector.shape_cast %300 : vector<1x1x64x32xf32> to vector<64x32xf32>
    %302 = arith.truncf %299 : vector<16x32xf32> to vector<16x32xbf16>
    %303 = arith.truncf %301 : vector<64x32xf32> to vector<64x32xbf16>
    %cst_172 = arith.constant dense<0.000000e+00> : vector<16x64xf32>
    %304 = tpu.matmul %302, %303, %cst_172 {dimension_numbers = #tpu.dot_dimension_numbers<[1], [1], [0], [0], [0, 0, 1, 0], [], []>} : vector<16x32xbf16>, vector<64x32xbf16>, vector<16x64xf32> -> vector<16x64xf32>
    %c0_173 = arith.constant 0 : index
    %c1_174 = arith.constant 1 : index
    %c0_175 = arith.constant 0 : index
    %c0_176 = arith.constant 0 : index
    %305 = vector.load %arg16[%c0_173, %c1_174, %c0_175, %c0_176] : memref<1x2x1x64xf32, #tpu.memory_space<vmem>>, vector<1x1x1x64xf32>
    %306 = vector.shape_cast %305 : vector<1x1x1x64xf32> to vector<1x64xf32>
    %307 = vector.broadcast %306 : vector<1x64xf32> to vector<16x64xf32>
    %308 = arith.addf %304, %307 : vector<16x64xf32>
    %309 = vector.broadcast %5 : vector<16x1xf32> to vector<16x64xf32>
    %310 = arith.mulf %308, %309 : vector<16x64xf32>
    %311 = arith.truncf %243 : vector<16x32xf32> to vector<16x32xbf16>
    %312 = arith.truncf %277 : vector<16x64xf32> to vector<16x64xbf16>
    %cst_177 = arith.constant dense<0.000000e+00> : vector<32x64xf32>
    %313 = tpu.matmul %311, %312, %cst_177 {dimension_numbers = #tpu.dot_dimension_numbers<[0], [0], [1], [1], [0, 1, 1, 1], [], []>} : vector<16x32xbf16>, vector<16x64xbf16>, vector<32x64xf32> -> vector<32x64xf32>
    %314 = arith.mulf %313, %15 : vector<32x64xf32>
    %315 = arith.mulf %314, %314 : vector<32x64xf32>
    %316 = arith.mulf %314, %315 : vector<32x64xf32>
    %cst_178 = arith.constant 4.471500e-02 : f32
    %317 = vector.broadcast %cst_178 : f32 to vector<32x64xf32>
    %318 = arith.mulf %317, %316 : vector<32x64xf32>
    %319 = arith.addf %314, %318 : vector<32x64xf32>
    %cst_179 = arith.constant 0.797884583 : f32
    %320 = vector.broadcast %cst_179 : f32 to vector<32x64xf32>
    %321 = arith.mulf %320, %319 : vector<32x64xf32>
    %322 = math.tanh %321 : vector<32x64xf32>
    %cst_180 = arith.constant 1.000000e+00 : f32
    %323 = vector.broadcast %cst_180 : f32 to vector<32x64xf32>
    %324 = arith.addf %323, %322 : vector<32x64xf32>
    %cst_181 = arith.constant 5.000000e-01 : f32
    %325 = vector.broadcast %cst_181 : f32 to vector<32x64xf32>
    %326 = arith.mulf %325, %324 : vector<32x64xf32>
    %327 = arith.mulf %314, %326 : vector<32x64xf32>
    %328 = arith.truncf %310 : vector<16x64xf32> to vector<16x64xbf16>
    %329 = arith.truncf %327 : vector<32x64xf32> to vector<32x64xbf16>
    %cst_182 = arith.constant dense<0.000000e+00> : vector<16x32xf32>
    %330 = tpu.matmul %328, %329, %cst_182 {dimension_numbers = #tpu.dot_dimension_numbers<[1], [1], [0], [0], [0, 0, 1, 0], [], []>} : vector<16x64xbf16>, vector<32x64xbf16>, vector<16x32xf32> -> vector<16x32xf32>
    %c0_183 = arith.constant 0 : index
    %c1_184 = arith.constant 1 : index
    %c0_185 = arith.constant 0 : index
    %c0_186 = arith.constant 0 : index
    %331 = vector.load %arg17[%c0_183, %c1_184, %c0_185, %c0_186] : memref<1x2x1x32xf32, #tpu.memory_space<vmem>>, vector<1x1x1x32xf32>
    %332 = vector.shape_cast %331 : vector<1x1x1x32xf32> to vector<1x32xf32>
    %c0_187 = arith.constant 0 : index
    %c1_188 = arith.constant 1 : index
    %c0_189 = arith.constant 0 : index
    %c0_190 = arith.constant 0 : index
    %333 = vector.load %arg18[%c0_187, %c1_188, %c0_189, %c0_190] : memref<1x2x1x32xf32, #tpu.memory_space<vmem>>, vector<1x1x1x32xf32>
    %334 = vector.shape_cast %333 : vector<1x1x1x32xf32> to vector<1x32xf32>
    %cst_191 = arith.constant dense<0.000000e+00> : vector<16xf32>
    %335 = vector.multi_reduction <add>, %330, %cst_191 [1] : vector<16x32xf32> to vector<16xf32>
    %336 = vector.shape_cast %335 : vector<16xf32> to vector<16x1xf32>
    %cst_192 = arith.constant 3.200000e+01 : f32
    %337 = vector.broadcast %cst_192 : f32 to vector<16x1xf32>
    %338 = arith.divf %336, %337 : vector<16x1xf32>
    %339 = vector.broadcast %338 : vector<16x1xf32> to vector<16x32xf32>
    %340 = arith.subf %330, %339 : vector<16x32xf32>
    %341 = arith.mulf %340, %340 : vector<16x32xf32>
    %cst_193 = arith.constant dense<0.000000e+00> : vector<16xf32>
    %342 = vector.multi_reduction <add>, %341, %cst_193 [1] : vector<16x32xf32> to vector<16xf32>
    %343 = vector.shape_cast %342 : vector<16xf32> to vector<16x1xf32>
    %cst_194 = arith.constant 3.200000e+01 : f32
    %344 = vector.broadcast %cst_194 : f32 to vector<16x1xf32>
    %345 = arith.divf %343, %344 : vector<16x1xf32>
    %346 = vector.broadcast %338 : vector<16x1xf32> to vector<16x32xf32>
    %347 = arith.subf %330, %346 : vector<16x32xf32>
    %cst_195 = arith.constant 9.99999974E-6 : f32
    %348 = vector.broadcast %cst_195 : f32 to vector<16x1xf32>
    %349 = arith.addf %345, %348 : vector<16x1xf32>
    %350 = math.rsqrt %349 : vector<16x1xf32>
    %351 = vector.broadcast %350 : vector<16x1xf32> to vector<16x32xf32>
    %352 = arith.mulf %347, %351 : vector<16x32xf32>
    %353 = vector.broadcast %332 : vector<1x32xf32> to vector<16x32xf32>
    %354 = arith.mulf %352, %353 : vector<16x32xf32>
    %355 = vector.broadcast %334 : vector<1x32xf32> to vector<16x32xf32>
    %356 = arith.addf %354, %355 : vector<16x32xf32>
    %357 = arith.addf %215, %356 : vector<16x32xf32>
    %c0_196 = arith.constant 0 : index
    %c1_197 = arith.constant 1 : index
    %c0_198 = arith.constant 0 : index
    %c0_199 = arith.constant 0 : index
    %358 = vector.load %arg19[%c0_196, %c1_197, %c0_198, %c0_199] : memref<1x2x1x32xf32, #tpu.memory_space<vmem>>, vector<1x1x1x32xf32>
    %359 = vector.shape_cast %358 : vector<1x1x1x32xf32> to vector<1x32xf32>
    %c0_200 = arith.constant 0 : index
    %c1_201 = arith.constant 1 : index
    %c0_202 = arith.constant 0 : index
    %c0_203 = arith.constant 0 : index
    %360 = vector.load %arg20[%c0_200, %c1_201, %c0_202, %c0_203] : memref<1x2x1x32xf32, #tpu.memory_space<vmem>>, vector<1x1x1x32xf32>
    %361 = vector.shape_cast %360 : vector<1x1x1x32xf32> to vector<1x32xf32>
    %cst_204 = arith.constant dense<0.000000e+00> : vector<16xf32>
    %362 = vector.multi_reduction <add>, %357, %cst_204 [1] : vector<16x32xf32> to vector<16xf32>
    %363 = vector.shape_cast %362 : vector<16xf32> to vector<16x1xf32>
    %cst_205 = arith.constant 3.200000e+01 : f32
    %364 = vector.broadcast %cst_205 : f32 to vector<16x1xf32>
    %365 = arith.divf %363, %364 : vector<16x1xf32>
    %366 = vector.broadcast %365 : vector<16x1xf32> to vector<16x32xf32>
    %367 = arith.subf %357, %366 : vector<16x32xf32>
    %368 = arith.mulf %367, %367 : vector<16x32xf32>
    %cst_206 = arith.constant dense<0.000000e+00> : vector<16xf32>
    %369 = vector.multi_reduction <add>, %368, %cst_206 [1] : vector<16x32xf32> to vector<16xf32>
    %370 = vector.shape_cast %369 : vector<16xf32> to vector<16x1xf32>
    %cst_207 = arith.constant 3.200000e+01 : f32
    %371 = vector.broadcast %cst_207 : f32 to vector<16x1xf32>
    %372 = arith.divf %370, %371 : vector<16x1xf32>
    %373 = vector.broadcast %365 : vector<16x1xf32> to vector<16x32xf32>
    %374 = arith.subf %357, %373 : vector<16x32xf32>
    %cst_208 = arith.constant 9.99999974E-6 : f32
    %375 = vector.broadcast %cst_208 : f32 to vector<16x1xf32>
    %376 = arith.addf %372, %375 : vector<16x1xf32>
    %377 = math.rsqrt %376 : vector<16x1xf32>
    %378 = vector.broadcast %377 : vector<16x1xf32> to vector<16x32xf32>
    %379 = arith.mulf %374, %378 : vector<16x32xf32>
    %380 = vector.broadcast %359 : vector<1x32xf32> to vector<16x32xf32>
    %381 = arith.mulf %379, %380 : vector<16x32xf32>
    %382 = vector.broadcast %361 : vector<1x32xf32> to vector<16x32xf32>
    %383 = arith.addf %381, %382 : vector<16x32xf32>
    %c0_209 = arith.constant 0 : index
    %c1_210 = arith.constant 1 : index
    %c0_211 = arith.constant 0 : index
    %c0_212 = arith.constant 0 : index
    %384 = vector.load %arg21[%c0_209, %c1_210, %c0_211, %c0_212] : memref<1x2x64x32xf32, #tpu.memory_space<vmem>>, vector<1x1x64x32xf32>
    %385 = vector.shape_cast %384 : vector<1x1x64x32xf32> to vector<64x32xf32>
    %386 = arith.truncf %383 : vector<16x32xf32> to vector<16x32xbf16>
    %387 = arith.truncf %385 : vector<64x32xf32> to vector<64x32xbf16>
    %cst_213 = arith.constant dense<0.000000e+00> : vector<16x64xf32>
    %388 = tpu.matmul %386, %387, %cst_213 {dimension_numbers = #tpu.dot_dimension_numbers<[1], [1], [0], [0], [0, 0, 1, 0], [], []>} : vector<16x32xbf16>, vector<64x32xbf16>, vector<16x64xf32> -> vector<16x64xf32>
    %c0_214 = arith.constant 0 : index
    %c1_215 = arith.constant 1 : index
    %c0_216 = arith.constant 0 : index
    %c0_217 = arith.constant 0 : index
    %389 = vector.load %arg22[%c0_214, %c1_215, %c0_216, %c0_217] : memref<1x2x1x64xf32, #tpu.memory_space<vmem>>, vector<1x1x1x64xf32>
    %390 = vector.shape_cast %389 : vector<1x1x1x64xf32> to vector<1x64xf32>
    %391 = vector.broadcast %390 : vector<1x64xf32> to vector<16x64xf32>
    %392 = arith.addf %388, %391 : vector<16x64xf32>
    %393 = arith.mulf %392, %392 : vector<16x64xf32>
    %394 = arith.mulf %392, %393 : vector<16x64xf32>
    %cst_218 = arith.constant 4.471500e-02 : f32
    %395 = vector.broadcast %cst_218 : f32 to vector<16x64xf32>
    %396 = arith.mulf %395, %394 : vector<16x64xf32>
    %397 = arith.addf %392, %396 : vector<16x64xf32>
    %cst_219 = arith.constant 0.797884583 : f32
    %398 = vector.broadcast %cst_219 : f32 to vector<16x64xf32>
    %399 = arith.mulf %398, %397 : vector<16x64xf32>
    %400 = math.tanh %399 : vector<16x64xf32>
    %cst_220 = arith.constant 1.000000e+00 : f32
    %401 = vector.broadcast %cst_220 : f32 to vector<16x64xf32>
    %402 = arith.addf %401, %400 : vector<16x64xf32>
    %cst_221 = arith.constant 5.000000e-01 : f32
    %403 = vector.broadcast %cst_221 : f32 to vector<16x64xf32>
    %404 = arith.mulf %403, %402 : vector<16x64xf32>
    %405 = arith.mulf %392, %404 : vector<16x64xf32>
    %c0_222 = arith.constant 0 : index
    %c1_223 = arith.constant 1 : index
    %c0_224 = arith.constant 0 : index
    %c0_225 = arith.constant 0 : index
    %406 = vector.load %arg23[%c0_222, %c1_223, %c0_224, %c0_225] : memref<1x2x32x64xf32, #tpu.memory_space<vmem>>, vector<1x1x32x64xf32>
    %407 = vector.shape_cast %406 : vector<1x1x32x64xf32> to vector<32x64xf32>
    %408 = arith.truncf %405 : vector<16x64xf32> to vector<16x64xbf16>
    %409 = arith.truncf %407 : vector<32x64xf32> to vector<32x64xbf16>
    %cst_226 = arith.constant dense<0.000000e+00> : vector<16x32xf32>
    %410 = tpu.matmul %408, %409, %cst_226 {dimension_numbers = #tpu.dot_dimension_numbers<[1], [1], [0], [0], [0, 0, 1, 0], [], []>} : vector<16x64xbf16>, vector<32x64xbf16>, vector<16x32xf32> -> vector<16x32xf32>
    %411 = arith.addf %357, %410 : vector<16x32xf32>
    %c0_227 = arith.constant 0 : index
    %c1_228 = arith.constant 1 : index
    %c0_229 = arith.constant 0 : index
    %c0_230 = arith.constant 0 : index
    %412 = vector.load %arg24[%c0_227, %c1_228, %c0_229, %c0_230] : memref<1x2x1x32xf32, #tpu.memory_space<vmem>>, vector<1x1x1x32xf32>
    %413 = vector.shape_cast %412 : vector<1x1x1x32xf32> to vector<1x32xf32>
    %414 = vector.broadcast %413 : vector<1x32xf32> to vector<16x32xf32>
    %415 = arith.addf %411, %414 : vector<16x32xf32>
    %c0_231 = arith.constant 0 : index
    %c0_232 = arith.constant 0 : index
    %c0_233 = arith.constant 0 : index
    %416 = vector.load %arg25[%c0_231, %c0_232, %c0_233] : memref<1x1x32xf32, #tpu.memory_space<vmem>>, vector<1x1x32xf32>
    %417 = vector.shape_cast %416 : vector<1x1x32xf32> to vector<1x32xf32>
    %c0_234 = arith.constant 0 : index
    %c0_235 = arith.constant 0 : index
    %c0_236 = arith.constant 0 : index
    %418 = vector.load %arg26[%c0_234, %c0_235, %c0_236] : memref<1x1x32xf32, #tpu.memory_space<vmem>>, vector<1x1x32xf32>
    %419 = vector.shape_cast %418 : vector<1x1x32xf32> to vector<1x32xf32>
    %cst_237 = arith.constant dense<0.000000e+00> : vector<16xf32>
    %420 = vector.multi_reduction <add>, %415, %cst_237 [1] : vector<16x32xf32> to vector<16xf32>
    %421 = vector.shape_cast %420 : vector<16xf32> to vector<16x1xf32>
    %cst_238 = arith.constant 3.200000e+01 : f32
    %422 = vector.broadcast %cst_238 : f32 to vector<16x1xf32>
    %423 = arith.divf %421, %422 : vector<16x1xf32>
    %424 = vector.broadcast %423 : vector<16x1xf32> to vector<16x32xf32>
    %425 = arith.subf %415, %424 : vector<16x32xf32>
    %426 = arith.mulf %425, %425 : vector<16x32xf32>
    %cst_239 = arith.constant dense<0.000000e+00> : vector<16xf32>
    %427 = vector.multi_reduction <add>, %426, %cst_239 [1] : vector<16x32xf32> to vector<16xf32>
    %428 = vector.shape_cast %427 : vector<16xf32> to vector<16x1xf32>
    %cst_240 = arith.constant 3.200000e+01 : f32
    %429 = vector.broadcast %cst_240 : f32 to vector<16x1xf32>
    %430 = arith.divf %428, %429 : vector<16x1xf32>
    %431 = vector.broadcast %423 : vector<16x1xf32> to vector<16x32xf32>
    %432 = arith.subf %415, %431 : vector<16x32xf32>
    %cst_241 = arith.constant 9.99999974E-6 : f32
    %433 = vector.broadcast %cst_241 : f32 to vector<16x1xf32>
    %434 = arith.addf %430, %433 : vector<16x1xf32>
    %435 = math.rsqrt %434 : vector<16x1xf32>
    %436 = vector.broadcast %435 : vector<16x1xf32> to vector<16x32xf32>
    %437 = arith.mulf %432, %436 : vector<16x32xf32>
    %438 = vector.broadcast %417 : vector<1x32xf32> to vector<16x32xf32>
    %439 = arith.mulf %437, %438 : vector<16x32xf32>
    %440 = vector.broadcast %419 : vector<1x32xf32> to vector<16x32xf32>
    %441 = arith.addf %439, %440 : vector<16x32xf32>
    %c0_242 = arith.constant 0 : index
    %c0_243 = arith.constant 0 : index
    %c0_244 = arith.constant 0 : index
    %442 = vector.load %arg3[%c0_242, %c0_243, %c0_244] : memref<1x16x1xf32, #tpu.memory_space<vmem>>, vector<1x16x1xf32>
    %443 = vector.shape_cast %442 : vector<1x16x1xf32> to vector<16x1xf32>
    %444 = vector.broadcast %443 : vector<16x1xf32> to vector<16x32xf32>
    %445 = arith.mulf %441, %444 : vector<16x32xf32>
    %cst_245 = arith.constant dense<0.000000e+00> : vector<32xf32>
    %446 = vector.multi_reduction <add>, %445, %cst_245 [0] : vector<16x32xf32> to vector<32xf32>
    %447 = vector.shape_cast %446 : vector<32xf32> to vector<1x32xf32>
    %c0_246 = arith.constant 0 : index
    %c0_247 = arith.constant 0 : index
    %c0_248 = arith.constant 0 : index
    %c0_249 = arith.constant 0 : index
    %448 = vector.load %arg27[%c0_246, %c0_247, %c0_248, %c0_249] : memref<1x1x1x32xf32, #tpu.memory_space<vmem>>, vector<1x1x1x32xf32>
    %449 = vector.shape_cast %448 : vector<1x1x1x32xf32> to vector<1x32xf32>
    %450 = vector.shape_cast %447 : vector<1x32xf32> to vector<1x1x1x32xf32>
    tpu.vector_store %arg27[%c0_246, %c0_247, %c0_248, %c0_249], %450 {strides = array<i32>} : memref<1x1x1x32xf32, #tpu.memory_space<vmem>>, vector<1x1x1x32xf32>,
    return
  }
  func.func @transform_0(%arg0: i32, %arg1: i32) -> (i32, i32, i32, i32) {
    %c0_i32 = arith.constant 0 : i32
    %c0_i32_0 = arith.constant 0 : i32
    %c0_i32_1 = arith.constant 0 : i32
    return %arg0, %arg1, %c0_i32, %c0_i32_0 : i32, i32, i32, i32
  }
  func.func @transform_1(%arg0: i32, %arg1: i32) -> (i32, i32, i32) {
    %c0_i32 = arith.constant 0 : i32
    %c0_i32_0 = arith.constant 0 : i32
    %c0_i32_1 = arith.constant 0 : i32
    return %arg0, %c0_i32, %c0_i32_0 : i32, i32, i32
  }
  func.func @transform_2(%arg0: i32, %arg1: i32) -> (i32, i32, i32) {
    %c0_i32 = arith.constant 0 : i32
    %c0_i32_0 = arith.constant 0 : i32
    %c0_i32_1 = arith.constant 0 : i32
    return %arg0, %c0_i32, %c0_i32_0 : i32, i32, i32
  }
  func.func @transform_3(%arg0: i32, %arg1: i32) -> (i32, i32) {
    %c0_i32 = arith.constant 0 : i32
    %c0_i32_0 = arith.constant 0 : i32
    %c0_i32_1 = arith.constant 0 : i32
    return %c0_i32, %c0_i32_0 : i32, i32
  }
  func.func @transform_4(%arg0: i32, %arg1: i32) -> (i32, i32) {
    %c0_i32 = arith.constant 0 : i32
    %c0_i32_0 = arith.constant 0 : i32
    %c0_i32_1 = arith.constant 0 : i32
    return %c0_i32, %c0_i32_0 : i32, i32
  }
  func.func @transform_5(%arg0: i32, %arg1: i32) -> (i32, i32, i32, i32) {
    %c0_i32 = arith.constant 0 : i32
    %c0_i32_0 = arith.constant 0 : i32
    %c0_i32_1 = arith.constant 0 : i32
    %c0_i32_2 = arith.constant 0 : i32
    return %arg0, %c0_i32, %c0_i32_0, %c0_i32_1 : i32, i32, i32, i32
  }
  func.func @transform_6(%arg0: i32, %arg1: i32) -> (i32, i32, i32, i32) {
    %c0_i32 = arith.constant 0 : i32
    %c0_i32_0 = arith.constant 0 : i32
    %c0_i32_1 = arith.constant 0 : i32
    %c0_i32_2 = arith.constant 0 : i32
    return %arg0, %c0_i32, %c0_i32_0, %c0_i32_1 : i32, i32, i32, i32
  }
  func.func @transform_7(%arg0: i32, %arg1: i32) -> (i32, i32, i32, i32) {
    %c0_i32 = arith.constant 0 : i32
    %c0_i32_0 = arith.constant 0 : i32
    %c0_i32_1 = arith.constant 0 : i32
    %c0_i32_2 = arith.constant 0 : i32
    return %arg0, %c0_i32, %c0_i32_0, %c0_i32_1 : i32, i32, i32, i32
  }
  func.func @transform_8(%arg0: i32, %arg1: i32) -> (i32, i32, i32, i32) {
    %c0_i32 = arith.constant 0 : i32
    %c0_i32_0 = arith.constant 0 : i32
    %c0_i32_1 = arith.constant 0 : i32
    %c0_i32_2 = arith.constant 0 : i32
    return %arg0, %c0_i32, %c0_i32_0, %c0_i32_1 : i32, i32, i32, i32
  }
  func.func @transform_9(%arg0: i32, %arg1: i32) -> (i32, i32, i32, i32) {
    %c0_i32 = arith.constant 0 : i32
    %c0_i32_0 = arith.constant 0 : i32
    %c0_i32_1 = arith.constant 0 : i32
    %c0_i32_2 = arith.constant 0 : i32
    return %arg0, %c0_i32, %c0_i32_0, %c0_i32_1 : i32, i32, i32, i32
  }
  func.func @transform_10(%arg0: i32, %arg1: i32) -> (i32, i32, i32, i32) {
    %c0_i32 = arith.constant 0 : i32
    %c0_i32_0 = arith.constant 0 : i32
    %c0_i32_1 = arith.constant 0 : i32
    %c0_i32_2 = arith.constant 0 : i32
    return %arg0, %c0_i32, %c0_i32_0, %c0_i32_1 : i32, i32, i32, i32
  }
  func.func @transform_11(%arg0: i32, %arg1: i32) -> (i32, i32, i32, i32) {
    %c0_i32 = arith.constant 0 : i32
    %c0_i32_0 = arith.constant 0 : i32
    %c0_i32_1 = arith.constant 0 : i32
    %c0_i32_2 = arith.constant 0 : i32
    return %arg0, %c0_i32, %c0_i32_0, %c0_i32_1 : i32, i32, i32, i32
  }
  func.func @transform_12(%arg0: i32, %arg1: i32) -> (i32, i32, i32, i32) {
    %c0_i32 = arith.constant 0 : i32
    %c0_i32_0 = arith.constant 0 : i32
    %c0_i32_1 = arith.constant 0 : i32
    %c0_i32_2 = arith.constant 0 : i32
    return %arg0, %c0_i32, %c0_i32_0, %c0_i32_1 : i32, i32, i32, i32
  }
  func.func @transform_13(%arg0: i32, %arg1: i32) -> (i32, i32, i32, i32) {
    %c0_i32 = arith.constant 0 : i32
    %c0_i32_0 = arith.constant 0 : i32
    %c0_i32_1 = arith.constant 0 : i32
    %c0_i32_2 = arith.constant 0 : i32
    return %arg0, %c0_i32, %c0_i32_0, %c0_i32_1 : i32, i32, i32, i32
  }
  func.func @transform_14(%arg0: i32, %arg1: i32) -> (i32, i32, i32, i32) {
    %c0_i32 = arith.constant 0 : i32
    %c0_i32_0 = arith.constant 0 : i32
    %c0_i32_1 = arith.constant 0 : i32
    %c0_i32_2 = arith.constant 0 : i32
    return %arg0, %c0_i32, %c0_i32_0, %c0_i32_1 : i32, i32, i32, i32
  }
  func.func @transform_15(%arg0: i32, %arg1: i32) -> (i32, i32, i32, i32) {
    %c0_i32 = arith.constant 0 : i32
    %c0_i32_0 = arith.constant 0 : i32
    %c0_i32_1 = arith.constant 0 : i32
    %c0_i32_2 = arith.constant 0 : i32
    return %arg0, %c0_i32, %c0_i32_0, %c0_i32_1 : i32, i32, i32, i32
  }
  func.func @transform_16(%arg0: i32, %arg1: i32) -> (i32, i32, i32, i32) {
    %c0_i32 = arith.constant 0 : i32
    %c0_i32_0 = arith.constant 0 : i32
    %c0_i32_1 = arith.constant 0 : i32
    %c0_i32_2 = arith.constant 0 : i32
    return %arg0, %c0_i32, %c0_i32_0, %c0_i32_1 : i32, i32, i32, i32
  }
  func.func @transform_17(%arg0: i32, %arg1: i32) -> (i32, i32, i32, i32) {
    %c0_i32 = arith.constant 0 : i32
    %c0_i32_0 = arith.constant 0 : i32
    %c0_i32_1 = arith.constant 0 : i32
    %c0_i32_2 = arith.constant 0 : i32
    return %arg0, %c0_i32, %c0_i32_0, %c0_i32_1 : i32, i32, i32, i32
  }
  func.func @transform_18(%arg0: i32, %arg1: i32) -> (i32, i32, i32, i32) {
    %c0_i32 = arith.constant 0 : i32
    %c0_i32_0 = arith.constant 0 : i32
    %c0_i32_1 = arith.constant 0 : i32
    %c0_i32_2 = arith.constant 0 : i32
    return %arg0, %c0_i32, %c0_i32_0, %c0_i32_1 : i32, i32, i32, i32
  }
  func.func @transform_19(%arg0: i32, %arg1: i32) -> (i32, i32, i32, i32) {
    %c0_i32 = arith.constant 0 : i32
    %c0_i32_0 = arith.constant 0 : i32
    %c0_i32_1 = arith.constant 0 : i32
    %c0_i32_2 = arith.constant 0 : i32
    return %arg0, %c0_i32, %c0_i32_0, %c0_i32_1 : i32, i32, i32, i32
  }
  func.func @transform_20(%arg0: i32, %arg1: i32) -> (i32, i32, i32, i32) {
    %c0_i32 = arith.constant 0 : i32
    %c0_i32_0 = arith.constant 0 : i32
    %c0_i32_1 = arith.constant 0 : i32
    %c0_i32_2 = arith.constant 0 : i32
    return %arg0, %c0_i32, %c0_i32_0, %c0_i32_1 : i32, i32, i32, i32
  }
  func.func @transform_21(%arg0: i32, %arg1: i32) -> (i32, i32, i32, i32) {
    %c0_i32 = arith.constant 0 : i32
    %c0_i32_0 = arith.constant 0 : i32
    %c0_i32_1 = arith.constant 0 : i32
    %c0_i32_2 = arith.constant 0 : i32
    return %arg0, %c0_i32, %c0_i32_0, %c0_i32_1 : i32, i32, i32, i32
  }
  func.func @transform_22(%arg0: i32, %arg1: i32) -> (i32, i32, i32, i32) {
    %c0_i32 = arith.constant 0 : i32
    %c0_i32_0 = arith.constant 0 : i32
    %c0_i32_1 = arith.constant 0 : i32
    %c0_i32_2 = arith.constant 0 : i32
    return %arg0, %c0_i32, %c0_i32_0, %c0_i32_1 : i32, i32, i32, i32
  }
  func.func @transform_23(%arg0: i32, %arg1: i32) -> (i32, i32, i32) {
    %c0_i32 = arith.constant 0 : i32
    %c0_i32_0 = arith.constant 0 : i32
    %c0_i32_1 = arith.constant 0 : i32
    return %arg0, %c0_i32, %c0_i32_0 : i32, i32, i32
  }
  func.func @transform_24(%arg0: i32, %arg1: i32) -> (i32, i32, i32) {
    %c0_i32 = arith.constant 0 : i32
    %c0_i32_0 = arith.constant 0 : i32
    %c0_i32_1 = arith.constant 0 : i32
    return %arg0, %c0_i32, %c0_i32_0 : i32, i32, i32
  }
  func.func @transform_25(%arg0: i32, %arg1: i32) -> (i32, i32, i32, i32) {
    %c0_i32 = arith.constant 0 : i32
    %c0_i32_0 = arith.constant 0 : i32
    %c0_i32_1 = arith.constant 0 : i32
    return %arg0, %arg1, %c0_i32, %c0_i32_0 : i32, i32, i32, i32
  }
}

</mosaic_0001>

<bundles_post_ra>
// kernel: tpu_custom_call.1
= control target key start
LH: loop header
LB: loop body
LE: loop exit
PB: predicated region body
PF: predicated region fallthrough
CT: control target
= control target key end

     0   :  { %s3970_s0 = inlined_call_operand.vmem [shape: s32[5,2,16,1], index: 0, kind: input, shape index: {}]   ;;  %s3971_s1 = inlined_call_operand.vmem [shape: f32[5,16,1], index: 1, kind: input, shape index: {}]   ;;  %s3972_s2 = inlined_call_operand.vmem [shape: f32[5,8,32], index: 2, kind: input, shape index: {}]   ;;  %s3973_s3 = inlined_call_operand.vmem [shape: f32[16,32], index: 3, kind: input, shape index: {}]   ;;  %s3974_s4 = inlined_call_operand.vmem [shape: f32[32,64], index: 4, kind: input, shape index: {}]   ;;  %s3975_s5 = inlined_call_operand.vmem [shape: f32[5,2,1,32], index: 5, kind: input, shape index: {}]   ;;  %s3976_s6 = inlined_call_operand.vmem [shape: f32[5,2,1,32], index: 6, kind: input, shape index: {}]   ;;  %s3977_s7 = inlined_call_operand.vmem [shape: f32[5,2,32,32], index: 7, kind: input, shape index: {}]   ;;  %s3978_s8 = inlined_call_operand.vmem [shape: f32[5,2,1,32], index: 8, kind: input, shape index: {}]   ;;  %s3979_s9 = inlined_call_operand.vmem [shape: f32[5,2,64,32], index: 9, kind: input, shape index: {}]   ;;  %s3980_s10 = inlined_call_operand.vmem [shape: f32[5,2,1,64], index: 10, kind: input, shape index: {}]   ;;  %s3981_s11 = inlined_call_operand.vmem [shape: f32[5,2,32,32], index: 11, kind: input, shape index: {}]   ;;  %s3982_s12 = inlined_call_operand.vmem [shape: f32[5,2,1,32], index: 12, kind: input, shape index: {}]   ;;  %s3983_s13 = inlined_call_operand.vmem [shape: f32[5,2,64,32], index: 13, kind: input, shape index: {}]   ;;  %s3984_s14 = inlined_call_operand.vmem [shape: f32[5,2,1,64], index: 14, kind: input, shape index: {}]   ;;  %s3985_s15 = inlined_call_operand.vmem [shape: f32[5,2,1,32], index: 15, kind: input, shape index: {}]   ;;  %s3986_s16 = inlined_call_operand.vmem [shape: f32[5,2,1,32], index: 16, kind: input, shape index: {}]   ;;  %s3987_s17 = inlined_call_operand.vmem [shape: f32[5,2,1,32], index: 17, kind: input, shape index: {}]   ;;  %s3988_s18 = inlined_call_operand.vmem [shape: f32[5,2,1,32], index: 18, kind: input, shape index: {}]   ;;  %s3989_s19 = inlined_call_operand.vmem [shape: f32[5,2,64,32], index: 19, kind: input, shape index: {}]   ;;  %s3990_s20 = inlined_call_operand.vmem [shape: f32[5,2,1,64], index: 20, kind: input, shape index: {}]   ;;  %s3991_s21 = inlined_call_operand.vmem [shape: f32[5,2,32,64], index: 21, kind: input, shape index: {}]   ;;  %s3992_s22 = inlined_call_operand.vmem [shape: f32[5,2,1,32], index: 22, kind: input, shape index: {}]   ;;  %s3993_s23 = inlined_call_operand.vmem [shape: f32[5,1,32], index: 23, kind: input, shape index: {}]   ;;  %s3994_s24 = inlined_call_operand.vmem [shape: f32[5,1,32], index: 24, kind: input, shape index: {}]   ;;  %s3995_s25 = inlined_call_operand.hbm [shape: f32[5,2,1,32], index: 25, kind: output, shape index: {}]  }
   0x1   :  { %4015 = sst [smem:[#allocation18_spill]] %s3970_s0 }
   0x2   :  { %4016 = sst [smem:[#allocation19_spill]] %s3971_s1 }
   0x3   :  { %4017 = sst [smem:[#allocation20_spill]] %s3972_s2 }
   0x4   :  { %4018 = sst [smem:[#allocation21_spill]] %s3973_s3 }
   0x5   :  { %4019 = sst [smem:[#allocation22_spill]] %s3974_s4 }
   0x6   :  { %4020 = sst [smem:[#allocation23_spill]] %s3975_s5 }
   0x7   :  { %4021 = sst [smem:[#allocation24_spill]] %s3976_s6 }
   0x8   :  { %4022 = sst [smem:[#allocation25_spill]] %s3977_s7 }
   0x9   :  { %4023 = sst [smem:[#allocation26_spill]] %s3978_s8 }
   0xa   :  { %4024 = sst [smem:[#allocation27_spill]] %s3979_s9 }
   0xb   :  { %4025 = sst [smem:[#allocation28_spill]] %s3980_s10 }
   0xc   :  { %4026 = sst [smem:[#allocation29_spill]] %s3981_s11 }
   0xd   :  { %4027 = sst [smem:[#allocation30_spill]] %s3982_s12 }
   0xe   :  { %4028 = sst [smem:[#allocation31_spill]] %s3983_s13 }
   0xf   :  { %4029 = sst [smem:[#allocation32_spill]] %s3984_s14 }
  0x10   :  { %4030 = sst [smem:[#allocation33_spill]] %s3985_s15 }
  0x11   :  { %4031 = sst [smem:[#allocation34_spill]] %s3986_s16 }
  0x12   :  { %4032 = sst [smem:[#allocation35_spill]] %s3993_s23 }
  0x13   :  { %4033 = sst [smem:[#allocation36_spill]] %s3994_s24 }
  0x14   :  { %4034 = sst [smem:[#allocation37_spill]] %s3995_s25 }
  0x15   :  { %30 = vsyncpa [#allocation3], 0 }
  0x16   :  { %32 = vsyncpa [#allocation3 + $0x1], 0  ;;  %s3393_s29 = smov 0   ;;  %s3395_s2 = smov 0  }
  0x17   :  { %s3397_s6 = smov 0   ;;  %s3399_s30 = smov 0  }
  0x18   :  { %s3401_s7 = smov 0   ;;  %s3403_s3 = smov 0  }
  0x19   :  { %s3405_s26 = smov 0   ;;  %s3407_s1 = smov 0  }
  0x1a LB: > { %4035 = sst [smem:[#allocation5_spill]] %s3230_s29  ;;  %s2870_s8 = sadd.s32 4294967295, %s3258_s1   ;;  %s3258_s1 = sphi %s3407_s1, %s38_s1   ;;  %s3254_s26 = sphi %s3405_s26, %s4085_s26   ;;  %s3250_s3 = sphi %s3403_s3, %s4084_s3   ;;  %s3246_s7 = sphi %s3401_s7, %s4083_s7   ;;  %s3242_s30 = sphi %s3399_s30, %s4082_s30   ;;  %s3238_s6 = sphi %s3397_s6, %s4081_s6   ;;  %s3234_s2 = sphi %s3395_s2, %s4080_s2   ;;  %s3230_s29 = sphi %s3393_s29, %s4079_s29  }
  0x1b   : > { %4036 = sst [smem:[#allocation6_spill]] %s3234_s2  ;;  %s2871_s27 = sadd.s32 4294967294, %s3258_s1  }
  0x1c   : > { %4037 = sst [smem:[#allocation7_spill]] %s3238_s6  ;;  %s47_s4 = sadd.s32 1, %s3250_s3 }
  0x1d   : > { %4038 = sst [smem:[#allocation8_spill]] %s3242_s30  ;;  %p48_p0 = scmp.ge.s32.totalorder %s47_s4, 2 }
  0x1e   : > { %4039 = sst [smem:[#allocation9_spill]] %s3246_s7  ;;  %s50_s28 = sadd.s32 1, %s3254_s26 }
  0x1f   : > { %4040 = sst [smem:[#allocation10_spill]] %s3250_s3  ;;  %p711_p1 = scmp.ne.s32.totalorder %s3238_s6, %s3234_s2 }
  0x20   : > { %4041 = sst [smem:[#allocation11_spill]] %s3254_s26  ;;  %p712_p2 = scmp.eq.s32.totalorder %s2870_s8, 9 }
  0x21   : > { %4042 = sst [smem:[#allocation12_spill]] %s3258_s1  ;;  %s4087_s4 = smov (%p48_p0, %s47_s4), 0 }
  0x22   : > { %4043 = sst [smem:[#allocation13_spill]] %s4087_s4  ;;  %s4089_s28 = smov (!%p48_p0, %s50_s28), %s3254_s26 }
  0x23   : > { %s697_s9 = ssub.s32 %s3250_s3, %s4087_s4  ;;  %p3444_p3 = por %p712_p2, %p711_p1 }
  0x24   : > { %p52_p4 = scmp.ge.s32.totalorder %s4089_s28, 5  ;;  %p717_p5 = scmp.ne.s32.totalorder %s3234_s2, %s3230_s29 }
  0x25   : > { %s4044_s5 = scalar_select %p3444_p3, 1, 0 }
  0x26   : > { %p718_p6 = scmp.eq.s32.totalorder %s2871_s27, 9  ;;  %p2874_p7 = scmp.ge.s32.totalorder %s3258_s1, 1 }
  0x27   : > { %4045 = sst [smem:[#allocation14_spill]] %s4044_s5  ;;  %s4091_s28 = smov (%p52_p4, %s4089_s28), 0 }
  0x28   : > { %4046 = sst [smem:[#allocation15_spill]] %s4091_s28  ;;  %p3453_p8 = por %p718_p6, %p717_p5 }
  0x29   : > { %p913_p9 = scmp.lt.s32.totalorder %s3258_s1, 11  ;;  %s696_s8 = ssub.s32 %s3254_s26, %s4091_s28 }
  0x2a   : > { %s4047_s0 = scalar_select %p3453_p8, 1, 0 }
  0x2b   : > { %s701_s25 = sadd.s32 1, %s3238_s6  ;;  %s698_s24 = sor.u32 %s697_s9, %s696_s8 }
  0x2c   : > { %4048 = sst [smem:[#allocation16_spill]] %s4047_s0  ;;  %p914_p10 = pnand %p2874_p7, %p913_p9 }
  0x2d   : > { %p699_p11 = scmp.eq.s32.totalorder %s698_s24, 0  ;;  %p1077_p12 = scmp.lt.s32.totalorder (!%p914_p10), %s3246_s7, 4 }
  0x2e   : > { %917 = sbr.rel (%p914_p10) target bundleno = 4128 (0x1020), region = 120  ;;  %p1079_p13 = scmp.lt.s32.totalorder (!%p914_p10), %s3242_s30, 1 }
  0x2f   : > { %s3462_s4 = scalar_select %p699_p11, %s3238_s6, %s701_s25  }
  0x30   : > { %s4053_s8 = sld [smem:[#allocation24_spill]] (!%p914_p10) }
  0x31   : > { %4049 = sst [smem:[#allocation17_spill]] %s3462_s4 }
  0x32   : > { %s4050_s4 = sld [smem:[#allocation18_spill]] (!%p914_p10) }
  0x33   : > { %v3260_v0 = vmov 0   ;;  %s3468_s27 = scalar_select %p1077_p12, %s3246_s7, 4  ;;  %v3261_v3 = vmov 0.0   ;;  %v1188_v8 = vlaneseq  ;;  %vm1203_vm2 = vcmask 64512  }
  0x34   : > { %3061 = vset.pattern.permute.xlu0 %v3260_v0  ;;  %s1080_s28 = scalar_select %p1079_p13, %s3242_s30, 1  ;;  %vm1241_vm5 = vcmask 261120   ;;  %v3262_v18 = vmov 32.0   ;;  %vm1531_vm13 = vcmask 130048   ;;  %vm1600_vm14 = vcmask 523264  }
  0x35   : > { %s2876_s26 = sshll.u32 %s3468_s27, 2  ;;  %s2880_s0 = sshll.u32 %s3468_s27, 3  ;;  %v1189_v9 = vand.u32 127, %v1188_v8  ;;  %3094 = vrcp.f32 %v3262_v18 }
  0x36   : > { %s2875_s9 = sshll.u32 %s1080_s28, 1  ;;  %s3500_s29 = sshll.u32 %s3468_s27, 1 }
  0x37   : > { %s1083_s24 = sadd.s32 %s2876_s26, %s2875_s9  ;;  %s4051_s26 = sld [smem:[#allocation20_spill]] }
  0x38   : > { %s2877_s25 = sshll.u32 %s1083_s24, 3  ;;  %s3512_s28 = scalar_lea.vmem %s4053_s8, %s3500_s29 }
  0x39   : > { %s1085_s6 = scalar_lea.vmem %s4050_s4, %s2877_s25  ;;  %s4052_s4 = sld [smem:[#allocation23_spill]] }
  0x3a   : > { %v1180_v1 = vld [vmem:[%s1085_s6] sm:$0xff]  ;;  %v1181_v2 = vld [vmem:[%s1085_s6 + $0x8] sm:$0xff]  ;;  %s4054_s1 = sld [smem:[#allocation26_spill]]  ;;  %s3521_s30 = sshll.u32 %s3468_s27, 6 }
  0x3b   : > { %1191 = vperm.xlu0 %3061, %v1180_v1   ;;  %vm1182_vm0 = vcmp.ne.s32.totalorder %v1180_v1, 0  ;;  %vm1183_vm1 = vcmp.ne.s32.totalorder %v1181_v2, 0  ;;  %v3095_v19 = vpop.eup %3094  ;;  %s4055_s6 = sld [smem:[#allocation25_spill]]  ;;  %s3700_s23 = scalar_lea.vmem %s3987_s17, %s3500_s29 }
  0x3c   : > { %v2905_v4 = vsel %vm1182_vm0, 1.0, %v3261_v3  ;;  %v2906_v5 = vsel %vm1183_vm1, 1.0, %v3261_v3  ;;  %v1249_v20 = vmul.f32 32.0, %v3095_v19  ;;  %vm1253_vm6 = vweird.f32 %v3095_v19  ;;  %s4056_s11 = sld [smem:[#allocation29_spill]] }
  0x3d   : > { %v3062_v6 = vpack.i.bf16 %v2906_v5, %v2905_v4  ;;  %s1094_s9 = scalar_lea.vmem %s4051_s26, %s2880_s0  ;;  %s4057_s7 = sld [smem:[#allocation21_spill]] }
  0x3e   : > { %v1202_v7 = vld [vmem:[%s1094_s9] sm:$0xff]  ;;  %v1250_v21 = vsub.f32 1.0, %v1249_v20  ;;  %s4059_s12 = sld [smem:[#allocation30_spill]] }
  0x3f   : > { %1225 = vmatpush.msra.mxu3 %v1202_v7  ;;  %s3506_s0 = scalar_lea.vmem %s4052_s4, %s3500_s29  ;;  %s4060_s10 = sld [smem:[#allocation28_spill]] }
  0x40   : > { %v1251_v22 = vmul.f32 %v3095_v19, %v1250_v21  ;;  %s3518_s5 = scalar_lea.vmem %s4054_s1, %s3500_s29  ;;  %v3068_v5 = vld [vmem:[%s3506_s0] ss:$0 sm:$0xff]  ;;  %s4062_s13 = sld [smem:[#allocation31_spill]] }
  0x41   : > { %s3527_s3 = scalar_lea.vmem %s4055_s6, %s3521_s30  ;;  %s4063_s14 = sld [smem:[#allocation32_spill]] }
  0x42   : > { %v1252_v23 = vadd.f32 %v3095_v19, %v1251_v22  ;;  %s3533_s24 = scalar_lea.vmem %s4056_s11, %s3521_s30  ;;  %v1319_v35 = vld [vmem:[%s3527_s3 + $0x10] sm:$0xff]  ;;  %v1320_v36 = vld [vmem:[%s3527_s3 + $0x18] sm:$0xff]  ;;  %v1317_v43 = vld [vmem:[%s3527_s3] sm:$0xff]  ;;  %s4061_s11 = sld [smem:[#allocation27_spill]] }
  0x43   : > { %1194 = vperm.xlu0 %3061, %v1181_v2   ;;  %v1419_v37 = vld [vmem:[%s3533_s24 + $0x10] sm:$0xff]  ;;  %v1323_v38 = vpack.c.bf16 %v1320_v36, %v1319_v35  ;;  %v1420_v39 = vld [vmem:[%s3533_s24 + $0x18] sm:$0xff]  ;;  %v1318_v44 = vld [vmem:[%s3527_s3 + $0x8] sm:$0xff]  ;;  %s4058_s25 = smov %s4057_s7  ;;  %s4064_s9 = sld [smem:[#allocation22_spill]] }
  0x44   : > { %v3487_v24 = vsel %vm1253_vm6, %v3095_v19, %v1252_v23  ;;  %v1422_v40 = vpack.c.bf16 %v1420_v39, %v1419_v37  ;;  %v1417_v45 = vld [vmem:[%s3533_s24] sm:$0xff]  ;;  %v1322_v46 = vpack.c.bf16 %v1318_v44, %v1317_v43  ;;  %v1418_v47 = vld [vmem:[%s3533_s24 + $0x8] sm:$0xff]  ;;  %s3576_s6 = scalar_lea.vmem %s4059_s12, %s3500_s29  ;;  %s4065_s15 = sld [smem:[#allocation33_spill]] }
  0x45   : > { %v1335_v41 = vsel %vm1241_vm5, %v1323_v38, 0  ;;  %v1421_v49 = vpack.c.bf16 %v1418_v47, %v1417_v45  ;;  %v3560_v22 = vld [vmem:[%s4057_s7] sm:$0xff]  ;;  %v3565_v23 = vld [vmem:[%s4058_s25 + $0x8] sm:$0xff]  ;;  %s3582_s2 = scalar_lea.vmem %s4060_s10, %s3500_s29  ;;  %s3586_s7 = sshll.u32 %s3468_s27, 7 }
  0x46   : > { %1343 = vmatpush.bf16.xpose.msra.mxu1 %v1335_v41  ;;  %v1431_v42 = vsel %vm1241_vm5, %v1422_v40, 0  ;;  %v1332_v51 = vsel %vm1241_vm5, %v1322_v46, 0  ;;  %s3601_s4 = scalar_lea.vmem %s4062_s13, %s3586_s7  ;;  %s4066_s16 = sld [smem:[#allocation34_spill]] }
  0x47   : > { %1439 = vmatpush.bf16.xpose.msrb.mxu3 %v1431_v42  ;;  %v1428_v52 = vsel %vm1241_vm5, %v1421_v49, 0  ;;  %v1469_v41 = vld [vmem:[%s3601_s4 + $0x20] sm:$0xff]  ;;  %v1470_v42 = vld [vmem:[%s3601_s4 + $0x28] sm:$0xff]  ;;  %v1467_v49 = vld [vmem:[%s3601_s4 + $0x10] sm:$0xff]  ;;  %s3631_s1 = scalar_lea.vmem %s4063_s14, %s3500_s29  ;;  %s3706_s13 = scalar_lea.vmem %s3988_s18, %s3500_s29 }
  0x48   : > { %s3592_s25 = scalar_lea.vmem %s4061_s11, %s3586_s7  ;;  %v1476_v43 = vpack.c.bf16 %v1470_v42, %v1469_v41  ;;  %s3723_s12 = scalar_lea.vmem %s3990_s20, %s3500_s29 }
  0x49   : > { %v1373_v36 = vld [vmem:[%s3592_s25 + $0x20] sm:$0xff]  ;;  %v1374_v37 = vld [vmem:[%s3592_s25 + $0x28] sm:$0xff]  ;;  %v1371_v44 = vld [vmem:[%s3592_s25 + $0x10] sm:$0xff] }
  0x4a   : > { %v1380_v39 = vpack.c.bf16 %v1374_v37, %v1373_v36  ;;  %v1372_v45 = vld [vmem:[%s3592_s25 + $0x18] sm:$0xff]  ;;  %v1492_v46 = vsel %vm1241_vm5, %v1476_v43, 0  ;;  %s3679_s11 = scalar_lea.vmem %s4065_s15, %s3500_s29  ;;  %s3729_s15 = scalar_lea.vmem %s3989_s19, %s3586_s7 }
  0x4b   : > { %3063 = vperm.xlu0 %3061, %v3062_v6   ;;  %v1379_v47 = vpack.c.bf16 %v1372_v45, %v1371_v44  ;;  %s4073_s7 = sld [smem:[#allocation37_spill]] }
  0x4c   : > { %v1396_v40 = vsel %vm1241_vm5, %v1380_v39, 0  ;;  %s3685_s26 = scalar_lea.vmem %s4066_s16, %s3500_s29  ;;  %s3758_s16 = scalar_lea.vmem %s3991_s21, %s3521_s30 }
  0x4d   : > { %s4067_s30 = sld [smem:[#allocation19_spill]] }
  0x4e   : > { %1344 = vmatpush.bf16.xpose.msra.mxu1 %v1332_v51 }
  0x4f   : > { %1440 = vmatpush.bf16.xpose.msrb.mxu3 %v1428_v52  ;;  %v1369_v52 = vld [vmem:[%s3592_s25] sm:$0xff] }
  0xad   : > { %v1192_v10 = vpop.permute.xlu0 %1191 }
  0xae   : > { %vm1196_vm3 = vcmp.eq.s32.totalorder %v1192_v10, %v1189_v9 }
  0xaf   : > { %v2907_v11 = vsel %vm1196_vm3, 1.0, %v3261_v3 }
  0xb0   : > { %2909 = vmatmul.msk.f32.vlgmr.msra.gmra.mxu3 %vm1203_vm2, %v2907_v11 }
  0xb5   : > { %v1195_v12 = vpop.permute.xlu0 %1194 }
  0xb6   : > { %vm1197_vm4 = vcmp.eq.s32.totalorder %v1195_v12, %v1189_v9  ;;  %v3069_v9 = vld [vmem:[%s3512_s28] ss:$0 sm:$0xff] }
  0xb7   : > { %v2908_v13 = vsel %vm1197_vm4, 1.0, %v3261_v3 }
  0xb8   : > { %2910 = vmatmul.msk.f32.gmra.mxu3 %vm1203_vm2, %v2908_v13 }
  0xbd   : > { %v3064_v11 = vpop.permute.xlu0 %3063 }
  0xbe   : > { %v3554_v19 = vunpack.i.h.bf16 %v3064_v11 }
 0x133   : > { %v3479_v14 = vpop.f32.mrf.mxu3 }
 0x134   : > { %v1242_v15 = vsel %vm1241_vm5, %v3479_v14, 0.0 }
 0x135   : > { %1243 = vadd.xlane.f32.xlu1 %v1242_v15 }
 0x13b   : > { %v3483_v16 = vpop.f32.mrf.mxu3 }
 0x13c   : > { %v1245_v17 = vsel %vm1241_vm5, %v3483_v16, 0.0 }
 0x13d   : > { %1246 = vadd.xlane.f32.xlu1 %v1245_v17  ;;  %v3552_v17 = vunpack.i.l.bf16 %v3064_v11 }
 0x1a8   : > { %v1244_v25 = vpop.xlane.xlu1 %1243 }
 0x1a9   : > { %v1255_v26 = vmul.f32 %v3487_v24, %v1244_v25 }
 0x1ab   : > { %v1257_v27 = vsub.f32 %v3479_v14, %v1255_v26 }
 0x1ad   : > { %v1259_v28 = vmul.f32 %v1257_v27, %v1257_v27 }
 0x1af   : > { %v1261_v29 = vsel %vm1241_vm5, %v1259_v28, 0.0 }
 0x1b0   : > { %1262 = vadd.xlane.f32.xlu2 %v1261_v29  ;;  %v1247_v30 = vpop.xlane.xlu1 %1246 }
 0x1b1   : > { %v1256_v31 = vmul.f32 %v3487_v24, %v1247_v30  ;;  %v1375_v30 = vld [vmem:[%s3592_s25 + $0x30] sm:$0xff] }
 0x1b3   : > { %v3494_v32 = vsub.f32 %v3483_v16, %v1256_v31  ;;  %v1376_v31 = vld [vmem:[%s3592_s25 + $0x38] sm:$0xff] }
 0x1b5   : > { %v1260_v33 = vmul.f32 %v3494_v32, %v3494_v32 }
 0x1b7   : > { %v1264_v34 = vsel %vm1241_vm5, %v1260_v33, 0.0 }
 0x1b8   : > { %1265 = vadd.xlane.f32.xlu2 %v1264_v34  ;;  %v1472_v34 = vld [vmem:[%s3601_s4 + $0x38] sm:$0xff] }
 0x223   : > { %v1263_v48 = vpop.xlane.xlu2 %1262 }
 0x224   : > { %v1267_v50 = vmul.f32 %v1263_v48, %v3487_v24  ;;  %v1393_v48 = vsel %vm1241_vm5, %v1379_v47, 0 }
 0x226   : > { %v1269_v53 = vadd.f32 1e-05, %v1267_v50  ;;  %v1468_v50 = vld [vmem:[%s3601_s4 + $0x18] sm:$0xff] }
 0x227   : > { %v1475_v51 = vpack.c.bf16 %v1468_v50, %v1467_v49 }
 0x228   : > { %3096 = vrsqrt.f32 %v1269_v53  ;;  %vm1277_vm8 = vweird.f32 %v1269_v53 }
 0x22b   : > { %v1266_v54 = vpop.xlane.xlu2 %1265 }
 0x22c   : > { %v1268_v55 = vmul.f32 %v1266_v54, %v3487_v24  ;;  %v1489_v54 = vsel %vm1241_vm5, %v1475_v51, 0 }
 0x22e   : > { %v3097_v56 = vpop.eup %3096  ;;  %v1270_v57 = vadd.f32 1e-05, %v1268_v55 }
 0x22f   : > { %v1272_v58 = vmul.f32 %v3097_v56, %v1269_v53  ;;  %vm1278_vm7 = vweird.f32 %v3097_v56  ;;  %v1370_v53 = vld [vmem:[%s3592_s25 + $0x8] sm:$0xff] }
 0x230   : > { %3098 = vrsqrt.f32 %v1270_v57  ;;  %vm1279_vm9 = vmor %vm1277_vm8, %vm1278_vm7  ;;  %vm1287_vm11 = vweird.f32 %v1270_v57  ;;  %v1378_v55 = vpack.c.bf16 %v1370_v53, %v1369_v52  ;;  %v3072_v53 = vld [vmem:[%s3582_s2] ss:$0 sm:$0xff] }
 0x231   : > { %v1273_v59 = vmul.f32 %v3097_v56, %v1272_v58 }
 0x232   : > { %v1390_v58 = vsel %vm1241_vm5, %v1378_v55, 0 }
 0x233   : > { %v1274_v60 = vmul.f32 0.5, %v1273_v59 }
 0x235   : > { %v1275_v61 = vsub.f32 1.5, %v1274_v60  ;;  %v3070_v60 = vld [vmem:[%s3518_s5] ss:$0 sm:$0xff] }
 0x236   : > { %v3099_v62 = vpop.eup %3098 }
 0x237   : > { %v1276_v63 = vmul.f32 %v3097_v56, %v1275_v61  ;;  %v1282_v1 = vmul.f32 %v3099_v62, %v1270_v57  ;;  %vm1288_vm10 = vweird.f32 %v3099_v62  ;;  %v1466_v57 = vld [vmem:[%s3601_s4 + $0x8] sm:$0xff] }
 0x238   : > { %vm1289_vm12 = vmor %vm1287_vm11, %vm1288_vm10 }
 0x239   : > { %v1280_v2 = vsel %vm1279_vm9, %v3097_v56, %v1276_v63  ;;  %v1283_v3 = vmul.f32 %v3099_v62, %v1282_v1  ;;  %v1465_v56 = vld [vmem:[%s3601_s4] sm:$0xff] }
 0x23a   : > { %v1291_v4 = vmul.f32 %v1280_v2, %v1257_v27  ;;  %v1474_v59 = vpack.c.bf16 %v1466_v57, %v1465_v56  ;;  %v3071_v2 = vld [vmem:[%s3576_s6] ss:$0 sm:$0xff] }
 0x23b   : > { %v1284_v6 = vmul.f32 0.5, %v1283_v3 }
 0x23c   : > { %v1296_v8 = vmul.f32 %v3068_v5, %v1291_v4 }
 0x23d   : > { %v1285_v7 = vsub.f32 1.5, %v1284_v6 }
 0x23e   : > { %v1301_v15 = vadd.f32 %v3069_v9, %v1296_v8 }
 0x23f   : > { %v1286_v10 = vmul.f32 %v3099_v62, %v1285_v7 }
 0x240   : > { %v1313_v21 = vmul.f32 %v3552_v17, %v1301_v15 }
 0x241   : > { %v1290_v12 = vsel %vm1289_vm12, %v3099_v62, %v1286_v10  ;;  %v1486_v62 = vsel %vm1241_vm5, %v1474_v59, 0 }
 0x242   : > { %v1292_v13 = vmul.f32 %v1290_v12, %v3494_v32  ;;  %v1315_v28 = vadd.f32 %v1313_v21, %v3560_v22  ;;  %v1381_v32 = vpack.c.bf16 %v1376_v31, %v1375_v30 }
 0x244   : > { %v1297_v18 = vmul.f32 %v3068_v5, %v1292_v13  ;;  %v1399_v33 = vsel %vm1241_vm5, %v1381_v32, 0 }
 0x245   : > { %1405 = vmatpush.bf16.xpose.msra.mxu2 %v1399_v33 }
 0x246   : > { %v1302_v20 = vadd.f32 %v3069_v9, %v1297_v18 }
 0x248   : > { %v1314_v25 = vmul.f32 %v3554_v19, %v1302_v20 }
 0x24a   : > { %v1316_v26 = vadd.f32 %v1314_v25, %v3565_v23  ;;  %v1513_v27 = vpack.c.bf16 %v1314_v25, %v1313_v21 }
 0x24c   : > { %1515 = vxpose.xlu1.c.b16.start.end [1/1] (short) (narrow) %v1513_v27, 32  ;;  %v1321_v29 = vpack.c.bf16 %v1316_v26, %v1315_v28 }
 0x24d   : > { %1406 = vmatpush.bf16.xpose.msra.mxu2 %v1396_v40 }
 0x24e   : > { %2911 = vmatmul.msk.bf16.vlgmr.msra.gmra.mxu1 %vm1241_vm5, %v1321_v29  ;;  %2913 = vmatmul.msk.bf16.vlgmr.msrb.gmra.mxu3 %vm1241_vm5, %v1321_v29 }
 0x255   : > { %1407 = vmatpush.bf16.xpose.msra.mxu2 %v1393_v48 }
 0x25d   : > { %1408 = vmatpush.bf16.xpose.msra.mxu2 %v1390_v58 }
 0x29f   : > { %3067 = vset.pattern.permute.xlu1 %v3260_v0  ;;  %v1471_v0 = vld [vmem:[%s3601_s4 + $0x30] sm:$0xff] }
 0x2a0   : > { %v1477_v35 = vpack.c.bf16 %v1472_v34, %v1471_v0 }
 0x2a2   : > { %v1495_v38 = vsel %vm1241_vm5, %v1477_v35, 0 }
 0x2a3   : > { %1501 = vmatpush.bf16.xpose.msra.mxu0 %v1495_v38 }
 0x2ab   : > { %1502 = vmatpush.bf16.xpose.msra.mxu0 %v1492_v46 }
 0x2b3   : > { %1503 = vmatpush.bf16.xpose.msra.mxu0 %v1489_v54 }
 0x2bb   : > { %1504 = vmatpush.bf16.xpose.msra.mxu0 %v1486_v62 }
 0x2cb   : > { %v1346_v61 = vpop.f32.mrf.mxu1 }
 0x2cc   : > { %v1347_v63 = vadd.f32 %v3070_v60, %v1346_v61 }
 0x2ce   : > { %v1351_v1 = vmul.f32 %v1347_v63, %v1347_v63 }
 0x2d0   : > { %v1353_v3 = vmul.f32 %v1351_v1, %v1347_v63 }
 0x2d1   : > { %v1442_v4 = vpop.f32.mrf.mxu3 }
 0x2d2   : > { %v1355_v5 = vmul.f32 0.044715, %v1353_v3  ;;  %v1443_v6 = vadd.f32 %v3071_v2, %v1442_v4 }
 0x2d3   : > { %v1348_v7 = vpop.f32.mrf.mxu1 }
 0x2d4   : > { %v1357_v8 = vadd.f32 %v1355_v5, %v1347_v63  ;;  %v1447_v9 = vmul.f32 %v1443_v6, %v1443_v6  ;;  %v1349_v10 = vadd.f32 %v3070_v60, %v1348_v7  ;;  %v3654_v5 = vld [vmem:[%s4064_s9 + $0x10] sm:$0xff] }
 0x2d6   : > { %v1359_v11 = vmul.f32 0.7978846, %v1357_v8  ;;  %v1449_v12 = vmul.f32 %v1447_v9, %v1443_v6  ;;  %v1352_v13 = vmul.f32 %v1349_v10, %v1349_v10 }
 0x2d8   : > { %v1451_v15 = vmul.f32 0.044715, %v1449_v12  ;;  %v1354_v18 = vmul.f32 %v1352_v13, %v1349_v10  ;;  %3100 = vtanh.f32 %v1359_v11 }
 0x2d9   : > { %v1444_v20 = vpop.f32.mrf.mxu3 }
 0x2da   : > { %v1453_v21 = vadd.f32 %v1451_v15, %v1443_v6  ;;  %v1356_v25 = vmul.f32 0.044715, %v1354_v18  ;;  %v1445_v26 = vadd.f32 %v3071_v2, %v1444_v20  ;;  %v3647_v2 = vld [vmem:[%s4064_s9] sm:$0xff]  ;;  %v3660_v15 = vld [vmem:[%s4064_s9 + $0x18] sm:$0xff] }
 0x2dc   : > { %v1455_v27 = vmul.f32 0.7978846, %v1453_v21  ;;  %v1358_v28 = vadd.f32 %v1356_v25, %v1349_v10  ;;  %v1448_v29 = vmul.f32 %v1445_v26, %v1445_v26 }
 0x2de   : > { %v1360_v30 = vmul.f32 0.7978846, %v1358_v28  ;;  %v1450_v31 = vmul.f32 %v1448_v29, %v1445_v26  ;;  %3102 = vtanh.f32 %v1455_v27  ;;  %v3101_v32 = vpop.eup %3100 }
 0x2df   : > { %v1363_v34 = vadd.f32 1.0, %v3101_v32 }
 0x2e0   : > { %3104 = vtanh.f32 %v1360_v30  ;;  %v1452_v33 = vmul.f32 0.044715, %v1450_v31 }
 0x2e1   : > { %v1365_v39 = vmul.f32 0.5, %v1363_v34 }
 0x2e2   : > { %v1454_v0 = vadd.f32 %v1452_v33, %v1445_v26 }
 0x2e3   : > { %v1367_v42 = vmul.f32 %v1365_v39, %v1347_v63  ;;  %v3642_v63 = vld [vmem:[%s4064_s9 + $0x8] sm:$0xff]  ;;  %s3752_s9 = scalar_lea.vmem %s3992_s22, %s3500_s29 }
 0x2e4   : > { %v1456_v35 = vmul.f32 0.7978846, %v1454_v0  ;;  %v3103_v36 = vpop.eup %3102 }
 0x2e5   : > { %v1459_v41 = vadd.f32 1.0, %v3103_v36 }
 0x2e6   : > { %v3105_v37 = vpop.eup %3104  ;;  %3106 = vtanh.f32 %v1456_v35 }
 0x2e7   : > { %v1364_v38 = vadd.f32 1.0, %v3105_v37  ;;  %v1461_v47 = vmul.f32 0.5, %v1459_v41 }
 0x2e9   : > { %v1366_v40 = vmul.f32 0.5, %v1364_v38  ;;  %v1463_v49 = vmul.f32 %v1461_v47, %v1443_v6 }
 0x2eb   : > { %v1368_v43 = vmul.f32 %v1366_v40, %v1349_v10 }
 0x2ec   : > { %v3107_v44 = vpop.eup %3106 }
 0x2ed   : > { %v1377_v45 = vpack.c.bf16 %v1368_v43, %v1367_v42  ;;  %v1460_v46 = vadd.f32 1.0, %v3107_v44 }
 0x2ef   : > { %2912 = vmatmul.msk.bf16.vlgmr.msra.gmra.mxu2 %vm1241_vm5, %v1377_v45  ;;  %v1462_v48 = vmul.f32 0.5, %v1460_v46 }
 0x2f1   : > { %v1464_v50 = vmul.f32 %v1462_v48, %v1445_v26 }
 0x2f3   : > { %v1473_v51 = vpack.c.bf16 %v1464_v50, %v1463_v49 }
 0x2f5   : > { %2914 = vmatmul.msk.bf16.vlgmr.msra.gmra.mxu0 %vm1241_vm5, %v1473_v51 }
 0x2f8   : > { %v1523_v60 = vpop.trf.xlu1 }
 0x308   : > { %v1524_v61 = vpop.trf.xlu1 }
 0x372   : > { %v1410_v52 = vpop.f32.mrf.mxu2  ;;  %v1506_v45 = vpop.f32.mrf.mxu0 }
 0x373   : > { %v1411_v54 = vadd.f32 %v3072_v53, %v1410_v52 }
 0x375   : > { %v1415_v57 = vmul.f32 %v3552_v17, %v1411_v54 }
 0x37a   : > { %v1412_v55 = vpop.f32.mrf.mxu2 }
 0x37b   : > { %v1413_v56 = vadd.f32 %v3072_v53, %v1412_v55 }
 0x37d   : > { %v1416_v58 = vmul.f32 %v3554_v19, %v1413_v56  ;;  %v1508_v56 = vpop.f32.mrf.mxu0 }
 0x37f   : > { %v1514_v59 = vpack.c.bf16 %v1416_v58, %v1415_v57  ;;  %v3073_v57 = vld [vmem:[%s3631_s1] ss:$0 sm:$0xff] }
 0x381   : > { %1545 = vmatpush.bf16.msrb.mxu1 %v1514_v59  ;;  %v1509_v59 = vadd.f32 %v3073_v57, %v1508_v56 }
 0x384   : > { %2915 = vmatmul.msk.bf16.vlgmr.msrb.gmra.mxu1 %vm1531_vm13, %v1523_v60  ;;  %v1507_v60 = vadd.f32 %v3073_v57, %v1506_v45 }
 0x394   : > { %2916 = vmatmul.msk.bf16.gmra.mxu1 %vm1531_vm13, %v1524_v61 }
 0x401   : > { %v1547_v62 = vpop.f32.mrf.mxu1 }
 0x402   : > { %v1557_v4 = vmul.f32 %v1547_v62, %v3647_v2  ;;  %v1512_v62 = vmul.f32 %v3554_v19, %v1509_v59 }
 0x404   : > { %v1561_v7 = vmul.f32 %v1557_v4, %v1557_v4 }
 0x406   : > { %v1565_v12 = vmul.f32 %v1561_v7, %v1557_v4 }
 0x408   : > { %v1569_v21 = vmul.f32 0.044715, %v1565_v12 }
 0x409   : > { %v1549_v1 = vpop.f32.mrf.mxu1 }
 0x40a   : > { %v1558_v3 = vmul.f32 %v1549_v1, %v3642_v63  ;;  %v1573_v31 = vadd.f32 %v1569_v21, %v1557_v4  ;;  %v1511_v1 = vmul.f32 %v3552_v17, %v1507_v60 }
 0x40c   : > { %v1562_v6 = vmul.f32 %v1558_v3, %v1558_v3  ;;  %v1577_v34 = vmul.f32 0.7978846, %v1573_v31 }
 0x40e   : > { %v1566_v10 = vmul.f32 %v1562_v6, %v1558_v3  ;;  %v1597_v6 = vpack.c.bf16 %v1512_v62, %v1511_v1 }
 0x410   : > { %v1570_v18 = vmul.f32 0.044715, %v1566_v10 }
 0x411   : > { %v1552_v8 = vpop.f32.mrf.mxu1 }
 0x412   : > { %v1559_v9 = vmul.f32 %v1552_v8, %v3654_v5  ;;  %v1574_v28 = vadd.f32 %v1570_v18, %v1558_v3 }
 0x414   : > { %v1563_v11 = vmul.f32 %v1559_v9, %v1559_v9  ;;  %v1578_v33 = vmul.f32 0.7978846, %v1574_v28 }
 0x416   : > { %v1567_v13 = vmul.f32 %v1563_v11, %v1559_v9 }
 0x418   : > { %v1571_v20 = vmul.f32 0.044715, %v1567_v13 }
 0x419   : > { %v1554_v25 = vpop.f32.mrf.mxu1 }
 0x41a   : > { %v1575_v26 = vadd.f32 %v1571_v20, %v1559_v9  ;;  %v1560_v27 = vmul.f32 %v1554_v25, %v3660_v15 }
 0x41c   : > { %v1579_v29 = vmul.f32 0.7978846, %v1575_v26  ;;  %v1564_v30 = vmul.f32 %v1560_v27, %v1560_v27 }
 0x41e   : > { %v1568_v32 = vmul.f32 %v1564_v30, %v1560_v27  ;;  %3108 = vtanh.f32 %v1579_v29 }
 0x41f   : > { %3110 = vtanh.f32 %v1578_v33 }
 0x420   : > { %v1572_v0 = vmul.f32 0.044715, %v1568_v32  ;;  %3112 = vtanh.f32 %v1577_v34 }
 0x422   : > { %v1576_v35 = vadd.f32 %v1572_v0, %v1560_v27 }
 0x424   : > { %v1580_v36 = vmul.f32 0.7978846, %v1576_v35  ;;  %v3109_v37 = vpop.eup %3108 }
 0x425   : > { %v1587_v38 = vadd.f32 1.0, %v3109_v37  ;;  %v3111_v39 = vpop.eup %3110 }
 0x426   : > { %3114 = vtanh.f32 %v1580_v36  ;;  %v3113_v40 = vpop.eup %3112  ;;  %v1586_v44 = vadd.f32 1.0, %v3111_v39 }
 0x427   : > { %v1591_v43 = vmul.f32 0.5, %v1587_v38  ;;  %v1585_v47 = vadd.f32 1.0, %v3113_v40  ;;  %v3074_v40 = vld [vmem:[%s3679_s11] ss:$0 sm:$0xff] }
 0x428   : > { %v1590_v50 = vmul.f32 0.5, %v1586_v44  ;;  %v3075_v44 = vld [vmem:[%s3685_s26] ss:$0 sm:$0xff] }
 0x429   : > { %v1595_v48 = vmul.f32 %v1591_v43, %v1559_v9  ;;  %v1589_v52 = vmul.f32 0.5, %v1585_v47 }
 0x42a   : > { %v1594_v54 = vmul.f32 %v1590_v50, %v1558_v3 }
 0x42b   : > { %v1593_v55 = vmul.f32 %v1589_v52, %v1557_v4 }
 0x42c   : > { %v3115_v41 = vpop.eup %3114 }
 0x42d   : > { %v1588_v42 = vadd.f32 1.0, %v3115_v41  ;;  %v1598_v58 = vpack.c.bf16 %v1594_v54, %v1593_v55 }
 0x42f   : > { %v1592_v46 = vmul.f32 0.5, %v1588_v42  ;;  %v1605_v61 = vsel %vm1600_vm14, %v1598_v58, 0 }
 0x431   : > { %v1596_v49 = vmul.f32 %v1592_v46, %v1560_v27 }
 0x433   : > { %v1599_v51 = vpack.c.bf16 %v1596_v49, %v1595_v48 }
 0x435   : > { %v1608_v53 = vsel %vm1600_vm14, %v1599_v51, 0 }
 0x436   : > { %1616 = vmatpush.bf16.xpose.msra.mxu3 %v1608_v53 }
 0x43e   : > { %1617 = vmatpush.bf16.xpose.msra.mxu3 %v1605_v61 }
 0x445   : > { %2917 = vmatmul.msk.bf16.vlgmr.msra.gmra.mxu3 %vm1600_vm14, %v1597_v6 }
 0x4c8   : > { %v1619_v7 = vpop.f32.mrf.mxu3 }
 0x4c9   : > { %v1626_v3 = vsel %vm1241_vm5, %v1619_v7, 0.0 }
 0x4ca   : > { %1627 = vadd.xlane.f32.xlu2 %v1626_v3  ;;  %v1744_v3 = vld [vmem:[%s3729_s15 + $0x30] sm:$0xff] }
 0x4d0   : > { %v1621_v4 = vpop.f32.mrf.mxu3 }
 0x4d1   : > { %v1629_v8 = vsel %vm1241_vm5, %v1621_v4, 0.0 }
 0x4d2   : > { %1630 = vadd.xlane.f32.xlu0 %v1629_v8 }
 0x53d   : > { %v1628_v9 = vpop.xlane.xlu2 %1627 }
 0x53e   : > { %v1632_v10 = vmul.f32 %v1628_v9, %v3487_v24 }
 0x540   : > { %v1634_v11 = vsub.f32 %v1619_v7, %v1632_v10  ;;  %v1742_v10 = vld [vmem:[%s3729_s15 + $0x20] sm:$0xff] }
 0x542   : > { %v1636_v12 = vmul.f32 %v1634_v11, %v1634_v11 }
 0x544   : > { %v1638_v13 = vsel %vm1241_vm5, %v1636_v12, 0.0 }
 0x545   : > { %1639 = vadd.xlane.f32.xlu2 %v1638_v13  ;;  %v1631_v18 = vpop.xlane.xlu0 %1630 }
 0x546   : > { %v1633_v20 = vmul.f32 %v1631_v18, %v3487_v24  ;;  %v1740_v18 = vld [vmem:[%s3729_s15 + $0x10] sm:$0xff] }
 0x548   : > { %v1635_v21 = vsub.f32 %v1621_v4, %v1633_v20  ;;  %v1745_v4 = vld [vmem:[%s3729_s15 + $0x38] sm:$0xff] }
 0x549   : > { %v1750_v8 = vpack.c.bf16 %v1745_v4, %v1744_v3  ;;  %v1741_v20 = vld [vmem:[%s3729_s15 + $0x18] sm:$0xff]  ;;  %v3078_v3 = vld [vmem:[%s3723_s12] ss:$0 sm:$0xff] }
 0x54a   : > { %v1637_v25 = vmul.f32 %v1635_v21, %v1635_v21 }
 0x54b   : > { %v1768_v9 = vsel %vm1241_vm5, %v1750_v8, 0 }
 0x54c   : > { %v1641_v26 = vsel %vm1241_vm5, %v1637_v25, 0.0  ;;  %1774 = vmatpush.bf16.xpose.msra.mxu1 %v1768_v9 }
 0x54d   : > { %1642 = vadd.xlane.f32.xlu2 %v1641_v26  ;;  %v1738_v26 = vld [vmem:[%s3729_s15] sm:$0xff] }
 0x5b8   : > { %v1640_v27 = vpop.xlane.xlu2 %1639 }
 0x5b9   : > { %v1644_v28 = vmul.f32 %v1640_v27, %v3487_v24  ;;  %v1739_v27 = vld [vmem:[%s3729_s15 + $0x8] sm:$0xff] }
 0x5bb   : > { %v1646_v29 = vadd.f32 1e-05, %v1644_v28  ;;  %v1747_v28 = vpack.c.bf16 %v1739_v27, %v1738_v26 }
 0x5bd   : > { %3116 = vrsqrt.f32 %v1646_v29  ;;  %vm1654_vm0 = vweird.f32 %v1646_v29 }
 0x5c0   : > { %v1643_v30 = vpop.xlane.xlu2 %1642 }
 0x5c1   : > { %v1645_v31 = vmul.f32 %v1643_v30, %v3487_v24 }
 0x5c3   : > { %v3117_v32 = vpop.eup %3116  ;;  %v1647_v33 = vadd.f32 1e-05, %v1645_v31 }
 0x5c4   : > { %v1649_v0 = vmul.f32 %v3117_v32, %v1646_v29  ;;  %vm1655_vm15 = vweird.f32 %v3117_v32  ;;  %v1759_v29 = vsel %vm1241_vm5, %v1747_v28, 0 }
 0x5c5   : > { %3118 = vrsqrt.f32 %v1647_v33  ;;  %vm1656_vm1 = vmor %vm1654_vm0, %vm1655_vm15  ;;  %vm1664_vm3 = vweird.f32 %v1647_v33 }
 0x5c6   : > { %v1650_v34 = vmul.f32 %v3117_v32, %v1649_v0 }
 0x5c8   : > { %v1651_v35 = vmul.f32 0.5, %v1650_v34 }
 0x5ca   : > { %v1652_v36 = vsub.f32 1.5, %v1651_v35 }
 0x5cb   : > { %v3119_v37 = vpop.eup %3118 }
 0x5cc   : > { %v1653_v38 = vmul.f32 %v3117_v32, %v1652_v36  ;;  %v1659_v39 = vmul.f32 %v3119_v37, %v1647_v33  ;;  %vm1665_vm2 = vweird.f32 %v3119_v37 }
 0x5cd   : > { %vm1666_vm4 = vmor %vm1664_vm3, %vm1665_vm2 }
 0x5ce   : > { %v1657_v41 = vsel %vm1656_vm1, %v3117_v32, %v1653_v38  ;;  %v1660_v42 = vmul.f32 %v3119_v37, %v1659_v39 }
 0x5cf   : > { %v1668_v43 = vmul.f32 %v1657_v41, %v1634_v11  ;;  %v1743_v11 = vld [vmem:[%s3729_s15 + $0x28] sm:$0xff] }
 0x5d0   : > { %v1661_v45 = vmul.f32 0.5, %v1660_v42  ;;  %v1749_v12 = vpack.c.bf16 %v1743_v11, %v1742_v10 }
 0x5d1   : > { %v1673_v46 = vmul.f32 %v3074_v40, %v1668_v43 }
 0x5d2   : > { %v1662_v47 = vsub.f32 1.5, %v1661_v45  ;;  %v1765_v13 = vsel %vm1241_vm5, %v1749_v12, 0 }
 0x5d3   : > { %v1678_v48 = vadd.f32 %v3075_v44, %v1673_v46  ;;  %1775 = vmatpush.bf16.xpose.msra.mxu1 %v1765_v13 }
 0x5d4   : > { %v1663_v49 = vmul.f32 %v3119_v37, %v1662_v47  ;;  %v3076_v47 = vld [vmem:[%s3700_s23] ss:$0 sm:$0xff] }
 0x5d5   : > { %v3692_v50 = vadd.f32 %v1678_v48, %v3479_v14 }
 0x5d6   : > { %v1667_v51 = vsel %vm1666_vm4, %v3119_v37, %v1663_v49 }
 0x5d7   : > { %v1669_v52 = vmul.f32 %v1667_v51, %v1635_v21  ;;  %v1684_v53 = vsel %vm1241_vm5, %v3692_v50, 0.0  ;;  %v1748_v21 = vpack.c.bf16 %v1741_v20, %v1740_v18 }
 0x5d8   : > { %1685 = vadd.xlane.f32.xlu2 %v1684_v53 }
 0x5d9   : > { %v1674_v54 = vmul.f32 %v3074_v40, %v1669_v52  ;;  %v1762_v25 = vsel %vm1241_vm5, %v1748_v21, 0  ;;  %v3077_v52 = vld [vmem:[%s3706_s13] ss:$0 sm:$0xff] }
 0x5db   : > { %v1679_v55 = vadd.f32 %v3075_v44, %v1674_v54  ;;  %1776 = vmatpush.bf16.xpose.msra.mxu1 %v1762_v25 }
 0x5dd   : > { %v3709_v14 = vadd.f32 %v1679_v55, %v3483_v16 }
 0x5df   : > { %v1687_v56 = vsel %vm1241_vm5, %v3709_v14, 0.0 }
 0x5e0   : > { %1688 = vadd.xlane.f32.xlu2 %v1687_v56 }
 0x5e3   : > { %1777 = vmatpush.bf16.xpose.msra.mxu1 %v1759_v29 }
 0x64b   : > { %v1686_v57 = vpop.xlane.xlu2 %1685 }
 0x64c   : > { %v1690_v58 = vmul.f32 %v1686_v57, %v3487_v24 }
 0x64e   : > { %v1692_v59 = vsub.f32 %v3692_v50, %v1690_v58 }
 0x650   : > { %v1694_v60 = vmul.f32 %v1692_v59, %v1692_v59 }
 0x652   : > { %v1696_v61 = vsel %vm1241_vm5, %v1694_v60, 0.0  ;;  %v1805_v60 = vld [vmem:[%s3758_s16 + $0x18] sm:$0xff] }
 0x653   : > { %1697 = vadd.xlane.f32.xlu2 %v1696_v61  ;;  %v1689_v62 = vpop.xlane.xlu2 %1688 }
 0x654   : > { %v1691_v1 = vmul.f32 %v1689_v62, %v3487_v24 }
 0x656   : > { %v1693_v16 = vsub.f32 %v3709_v14, %v1691_v1  ;;  %v1802_v1 = vld [vmem:[%s3758_s16] sm:$0xff] }
 0x658   : > { %v1695_v6 = vmul.f32 %v1693_v16, %v1693_v16 }
 0x65a   : > { %v1699_v7 = vsel %vm1241_vm5, %v1695_v6, 0.0 }
 0x65b   : > { %1700 = vadd.xlane.f32.xlu2 %v1699_v7 }
 0x6c6   : > { %v1698_v30 = vpop.xlane.xlu2 %1697 }
 0x6c7   : > { %v1702_v31 = vmul.f32 %v1698_v30, %v3487_v24 }
 0x6c9   : > { %v1704_v32 = vadd.f32 1e-05, %v1702_v31 }
 0x6cb   : > { %3120 = vrsqrt.f32 %v1704_v32  ;;  %vm1712_vm7 = vweird.f32 %v1704_v32 }
 0x6ce   : > { %v1701_v33 = vpop.xlane.xlu2 %1700 }
 0x6cf   : > { %v1703_v0 = vmul.f32 %v1701_v33, %v3487_v24 }
 0x6d1   : > { %v3121_v34 = vpop.eup %3120  ;;  %v1705_v35 = vadd.f32 1e-05, %v1703_v0 }
 0x6d2   : > { %v1707_v36 = vmul.f32 %v3121_v34, %v1704_v32  ;;  %vm1713_vm6 = vweird.f32 %v3121_v34 }
 0x6d3   : > { %3122 = vrsqrt.f32 %v1705_v35  ;;  %vm1714_vm8 = vmor %vm1712_vm7, %vm1713_vm6  ;;  %vm1722_vm10 = vweird.f32 %v1705_v35 }
 0x6d4   : > { %v1708_v37 = vmul.f32 %v3121_v34, %v1707_v36 }
 0x6d6   : > { %v1709_v38 = vmul.f32 0.5, %v1708_v37  ;;  %v3079_v37 = vld [vmem:[%s3752_s9] ss:$0 sm:$0xff] }
 0x6d8   : > { %v1710_v39 = vsub.f32 1.5, %v1709_v38 }
 0x6d9   : > { %v3123_v40 = vpop.eup %3122 }
 0x6da   : > { %v1711_v41 = vmul.f32 %v3121_v34, %v1710_v39  ;;  %v1717_v42 = vmul.f32 %v3123_v40, %v1705_v35  ;;  %vm1723_vm9 = vweird.f32 %v3123_v40 }
 0x6db   : > { %vm1724_vm11 = vmor %vm1722_vm10, %vm1723_vm9 }
 0x6dc   : > { %v1718_v43 = vmul.f32 %v3123_v40, %v1717_v42  ;;  %v1715_v44 = vsel %vm1714_vm8, %v3121_v34, %v1711_v41 }
 0x6dd   : > { %v1726_v48 = vmul.f32 %v1715_v44, %v1692_v59  ;;  %v1804_v59 = vld [vmem:[%s3758_s16 + $0x10] sm:$0xff] }
 0x6de   : > { %v1719_v45 = vmul.f32 0.5, %v1718_v43  ;;  %v1808_v61 = vpack.c.bf16 %v1805_v60, %v1804_v59  ;;  %v2941_v59 = vld [vmem:[%s3533_s24 + $0x38] sm:$0xff] }
 0x6df   : > { %v1731_v53 = vmul.f32 %v3076_v47, %v1726_v48 }
 0x6e0   : > { %v1720_v46 = vsub.f32 1.5, %v1719_v45  ;;  %v1816_v62 = vsel %vm1600_vm14, %v1808_v61, 0 }
 0x6e1   : > { %v1736_v56 = vadd.f32 %v3077_v52, %v1731_v53  ;;  %1824 = vmatpush.bf16.xpose.msrb.mxu2 %v1816_v62 }
 0x6e2   : > { %v1721_v49 = vmul.f32 %v3123_v40, %v1720_v46 }
 0x6e4   : > { %v1725_v51 = vsel %vm1724_vm11, %v3123_v40, %v1721_v49 }
 0x6e5   : > { %v1727_v54 = vmul.f32 %v1725_v51, %v1693_v16  ;;  %v1803_v16 = vld [vmem:[%s3758_s16 + $0x8] sm:$0xff] }
 0x6e6   : > { %v1807_v6 = vpack.c.bf16 %v1803_v16, %v1802_v1  ;;  %v2922_v1 = vld [vmem:[%s3527_s3 + $0x20] sm:$0xff]  ;;  %v2923_v16 = vld [vmem:[%s3527_s3 + $0x28] sm:$0xff] }
 0x6e7   : > { %v1732_v55 = vmul.f32 %v3076_v47, %v1727_v54 }
 0x6e8   : > { %v1813_v7 = vsel %vm1600_vm14, %v1807_v6, 0  ;;  %v2938_v6 = vld [vmem:[%s3533_s24 + $0x20] sm:$0xff] }
 0x6e9   : > { %v1737_v57 = vadd.f32 %v3077_v52, %v1732_v55  ;;  %1825 = vmatpush.bf16.xpose.msrb.mxu2 %v1813_v7  ;;  %v2924_v55 = vld [vmem:[%s3527_s3 + $0x30] sm:$0xff]  ;;  %v1908_v7 = vpack.c.bf16 %v2923_v16, %v2922_v1 }
 0x6eb   : > { %v1746_v58 = vpack.c.bf16 %v1737_v57, %v1736_v56  ;;  %v2925_v56 = vld [vmem:[%s3527_s3 + $0x38] sm:$0xff]  ;;  %v2940_v57 = vld [vmem:[%s3533_s24 + $0x30] sm:$0xff] }
 0x6ec   : > { %v2012_v60 = vpack.c.bf16 %v2941_v59, %v2940_v57  ;;  %v2933_v59 = vld [vmem:[%s3592_s25 + $0x68] sm:$0xff] }
 0x6ed   : > { %2918 = vmatmul.msk.bf16.vlgmr.msra.gmra.mxu1 %vm1241_vm5, %v1746_v58  ;;  %v1909_v58 = vpack.c.bf16 %v2925_v56, %v2924_v55  ;;  %v2951_v56 = vld [vmem:[%s3601_s4 + $0x78] sm:$0xff] }
 0x6ee   : > { %v2022_v62 = vsel %vm1241_vm5, %v2012_v60, 0  ;;  %v2948_v60 = vld [vmem:[%s3601_s4 + $0x60] sm:$0xff] }
 0x6ef   : > { %v1922_v61 = vsel %vm1241_vm5, %v1909_v58, 0  ;;  %v2932_v58 = vld [vmem:[%s3592_s25 + $0x60] sm:$0xff] }
 0x6f0   : > { %1930 = vmatpush.bf16.xpose.msrb.mxu3 %v1922_v61  ;;  %v1968_v61 = vpack.c.bf16 %v2933_v59, %v2932_v58 }
 0x6f1   : > { %2030 = vmatpush.bf16.xpose.msra.mxu2 %v2022_v62  ;;  %v2949_v62 = vld [vmem:[%s3601_s4 + $0x68] sm:$0xff] }
 0x6f2   : > { %v2068_v1 = vpack.c.bf16 %v2949_v62, %v2948_v60  ;;  %v1985_v16 = vsel %vm1241_vm5, %v1968_v61, 0 }
 0x76a   : > { %v1779_v4 = vpop.f32.mrf.mxu1 }
 0x76b   : > { %v1780_v8 = vadd.f32 %v3078_v3, %v1779_v4 }
 0x76d   : > { %v1784_v9 = vmul.f32 %v1780_v8, %v1780_v8 }
 0x76f   : > { %v1786_v10 = vmul.f32 %v1784_v9, %v1780_v8 }
 0x771   : > { %v1788_v11 = vmul.f32 0.044715, %v1786_v10  ;;  %v1919_v10 = vsel %vm1241_vm5, %v1908_v7, 0  ;;  %v2930_v7 = vld [vmem:[%s3592_s25 + $0x50] sm:$0xff] }
 0x772   : > { %v1781_v12 = vpop.f32.mrf.mxu1  ;;  %1931 = vmatpush.bf16.xpose.msrb.mxu3 %v1919_v10 }
 0x773   : > { %v1790_v13 = vadd.f32 %v1788_v11, %v1780_v8  ;;  %v1782_v18 = vadd.f32 %v3078_v3, %v1781_v12  ;;  %v2939_v3 = vld [vmem:[%s3533_s24 + $0x28] sm:$0xff] }
 0x775   : > { %v1792_v20 = vmul.f32 0.7978846, %v1790_v13  ;;  %v1785_v21 = vmul.f32 %v1782_v18, %v1782_v18 }
 0x777   : > { %v1787_v25 = vmul.f32 %v1785_v21, %v1782_v18  ;;  %3124 = vtanh.f32 %v1792_v20 }
 0x779   : > { %v1789_v26 = vmul.f32 0.044715, %v1787_v25 }
 0x77b   : > { %v1791_v27 = vadd.f32 %v1789_v26, %v1782_v18 }
 0x77d   : > { %v1793_v28 = vmul.f32 0.7978846, %v1791_v27  ;;  %v3125_v29 = vpop.eup %3124 }
 0x77e   : > { %v1796_v30 = vadd.f32 1.0, %v3125_v29 }
 0x77f   : > { %3126 = vtanh.f32 %v1793_v28 }
 0x780   : > { %v1798_v32 = vmul.f32 0.5, %v1796_v30 }
 0x782   : > { %v1800_v34 = vmul.f32 %v1798_v32, %v1780_v8  ;;  %v2011_v8 = vpack.c.bf16 %v2939_v3, %v2938_v6  ;;  %v2085_v6 = vsel %vm1241_vm5, %v2068_v1, 0  ;;  %v2931_v3 = vld [vmem:[%s3592_s25 + $0x58] sm:$0xff] }
 0x784   : > { %v2019_v11 = vsel %vm1241_vm5, %v2011_v8, 0  ;;  %v1967_v8 = vpack.c.bf16 %v2931_v3, %v2930_v7 }
 0x785   : > { %v3127_v31 = vpop.eup %3126  ;;  %2031 = vmatpush.bf16.xpose.msra.mxu2 %v2019_v11 }
 0x786   : > { %v1797_v33 = vadd.f32 1.0, %v3127_v31  ;;  %v1982_v11 = vsel %vm1241_vm5, %v1967_v8, 0 }
 0x788   : > { %v1799_v0 = vmul.f32 0.5, %v1797_v33 }
 0x78a   : > { %v1801_v35 = vmul.f32 %v1799_v0, %v1782_v18 }
 0x78c   : > { %v1806_v36 = vpack.c.bf16 %v1801_v35, %v1800_v34  ;;  %v3080_v34 = vld [vmem:[%s3506_s0 + $0x1] ss:$0 sm:$0xff] }
 0x78e   : > { %2919 = vmatmul.msk.bf16.vlgmr.msrb.gmra.mxu2 %vm1600_vm14, %v1806_v36 }
 0x811   : > { %v1827_v38 = vpop.f32.mrf.mxu2 }
 0x812   : > { %v1832_v39 = vadd.f32 %v1827_v38, %v3692_v50  ;;  %v3081_v38 = vld [vmem:[%s3512_s28 + $0x1] ss:$0 sm:$0xff]  ;;  %s4068_s28 = sld [smem:[#allocation35_spill]] }
 0x814   : > { %v3770_v40 = vadd.f32 %v3079_v37, %v1832_v39 }
 0x816   : > { %v1844_v41 = vsel %vm1241_vm5, %v3770_v40, 0.0 }
 0x817   : > { %1845 = vadd.xlane.f32.xlu0 %v1844_v41 }
 0x818   : > { %s1175_s3 = scalar_lea.vmem %s4068_s28, %s3468_s27 }
 0x819   : > { %v1829_v42 = vpop.f32.mrf.mxu2 }
 0x81a   : > { %v1833_v43 = vadd.f32 %v1829_v42, %v3709_v14 }
 0x81c   : > { %v3775_v44 = vadd.f32 %v3079_v37, %v1833_v43 }
 0x81e   : > { %v1847_v45 = vsel %vm1241_vm5, %v3775_v44, 0.0 }
 0x81f   : > { %1848 = vadd.xlane.f32.xlu2 %v1847_v45 }
 0x88a   : > { %v1846_v46 = vpop.xlane.xlu0 %1845 }
 0x88b   : > { %v1850_v50 = vmul.f32 %v1846_v46, %v3487_v24 }
 0x88d   : > { %v1852_v47 = vsub.f32 %v3770_v40, %v1850_v50 }
 0x88f   : > { %v1854_v48 = vmul.f32 %v1852_v47, %v1852_v47 }
 0x891   : > { %v1856_v49 = vsel %vm1241_vm5, %v1854_v48, 0.0 }
 0x892   : > { %1857 = vadd.xlane.f32.xlu0 %v1856_v49  ;;  %v1849_v14 = vpop.xlane.xlu2 %1848 }
 0x893   : > { %v1851_v51 = vmul.f32 %v1849_v14, %v3487_v24 }
 0x895   : > { %v1853_v52 = vsub.f32 %v3775_v44, %v1851_v51 }
 0x897   : > { %v1855_v53 = vmul.f32 %v1853_v52, %v1853_v52 }
 0x899   : > { %v1859_v54 = vsel %vm1241_vm5, %v1855_v53, 0.0  ;;  %v2935_v53 = vld [vmem:[%s3592_s25 + $0x78] sm:$0xff] }
 0x89a   : > { %1860 = vadd.xlane.f32.xlu1 %v1859_v54  ;;  %v2950_v54 = vld [vmem:[%s3601_s4 + $0x70] sm:$0xff] }
 0x905   : > { %v1858_v4 = vpop.xlane.xlu0 %1857 }
 0x906   : > { %v1862_v9 = vmul.f32 %v1858_v4, %v3487_v24  ;;  %v2946_v4 = vld [vmem:[%s3601_s4 + $0x50] sm:$0xff] }
 0x908   : > { %v1864_v12 = vadd.f32 1e-05, %v1862_v9  ;;  %v2947_v9 = vld [vmem:[%s3601_s4 + $0x58] sm:$0xff] }
 0x909   : > { %v2067_v10 = vpack.c.bf16 %v2947_v9, %v2946_v4 }
 0x90a   : > { %3128 = vrsqrt.f32 %v1864_v12  ;;  %vm1872_vm15 = vweird.f32 %v1864_v12 }
 0x90d   : > { %v1861_v13 = vpop.xlane.xlu1 %1860 }
 0x90e   : > { %v1863_v18 = vmul.f32 %v1861_v13, %v3487_v24  ;;  %v2928_v13 = vld [vmem:[%s3592_s25 + $0x40] sm:$0xff] }
 0x910   : > { %v3129_v20 = vpop.eup %3128  ;;  %v1865_v21 = vadd.f32 1e-05, %v1863_v18  ;;  %v2929_v18 = vld [vmem:[%s3592_s25 + $0x48] sm:$0xff] }
 0x911   : > { %v1867_v25 = vmul.f32 %v3129_v20, %v1864_v12  ;;  %vm1873_vm12 = vweird.f32 %v3129_v20  ;;  %v2082_v12 = vsel %vm1241_vm5, %v2067_v10, 0 }
 0x912   : > { %3130 = vrsqrt.f32 %v1865_v21  ;;  %vm1874_vm0 = vmor %vm1872_vm15, %vm1873_vm12  ;;  %vm1882_vm2 = vweird.f32 %v1865_v21 }
 0x913   : > { %v1868_v26 = vmul.f32 %v3129_v20, %v1867_v25  ;;  %v2945_v25 = vld [vmem:[%s3601_s4 + $0x48] sm:$0xff] }
 0x915   : > { %v1869_v27 = vmul.f32 0.5, %v1868_v26 }
 0x917   : > { %v1870_v28 = vsub.f32 1.5, %v1869_v27  ;;  %v3082_v27 = vld [vmem:[%s3518_s5 + $0x1] ss:$0 sm:$0xff] }
 0x918   : > { %v3131_v29 = vpop.eup %3130 }
 0x919   : > { %v1871_v30 = vmul.f32 %v3129_v20, %v1870_v28  ;;  %v1877_v31 = vmul.f32 %v3131_v29, %v1865_v21  ;;  %vm1883_vm1 = vweird.f32 %v3131_v29  ;;  %v1966_v21 = vpack.c.bf16 %v2929_v18, %v2928_v13  ;;  %v3083_v28 = vld [vmem:[%s3576_s6 + $0x1] ss:$0 sm:$0xff]  ;;  %s4069_s6 = sld [smem:[#allocation36_spill]] }
 0x91a   : > { %vm1884_vm3 = vmor %vm1882_vm2, %vm1883_vm1 }
 0x91b   : > { %v1875_v32 = vsel %vm1874_vm0, %v3129_v20, %v1871_v30  ;;  %v1878_v33 = vmul.f32 %v3131_v29, %v1877_v31  ;;  %v2944_v20 = vld [vmem:[%s3601_s4 + $0x40] sm:$0xff]  ;;  %s4071_s4 = sld [smem:[#allocation6_spill]] }
 0x91c   : > { %v1886_v0 = vmul.f32 %v1875_v32, %v1852_v47  ;;  %v2066_v26 = vpack.c.bf16 %v2945_v25, %v2944_v20  ;;  %v3084_v20 = vld [vmem:[%s3582_s2 + $0x1] ss:$0 sm:$0xff] }
 0x91d   : > { %v1879_v35 = vmul.f32 0.5, %v1878_v33 }
 0x91e   : > { %v1891_v37 = vmul.f32 %v3080_v34, %v1886_v0  ;;  %v2079_v30 = vsel %vm1241_vm5, %v2066_v26, 0 }
 0x91f   : > { %v1880_v36 = vsub.f32 1.5, %v1879_v35  ;;  %s1178_s2 = scalar_lea.vmem %s4069_s6, %s3468_s27 }
 0x920   : > { %v1896_v43 = vadd.f32 %v3081_v38, %v1891_v37 }
 0x921   : > { %v1881_v39 = vmul.f32 %v3131_v29, %v1880_v36 }
 0x922   : > { %v1898_v50 = vmul.f32 %v3552_v17, %v1896_v43 }
 0x923   : > { %v1885_v41 = vsel %vm1884_vm3, %v3131_v29, %v1881_v39  ;;  %v1979_v29 = vsel %vm1241_vm5, %v1966_v21, 0 }
 0x924   : > { %v1887_v42 = vmul.f32 %v1885_v41, %v1853_v52  ;;  %v1900_v48 = vadd.f32 %v1898_v50, %v3560_v22  ;;  %v2934_v52 = vld [vmem:[%s3592_s25 + $0x70] sm:$0xff]  ;;  %v2069_v22 = vpack.c.bf16 %v2951_v56, %v2950_v54 }
 0x925   : > { %v1969_v55 = vpack.c.bf16 %v2935_v53, %v2934_v52 }
 0x926   : > { %v1892_v45 = vmul.f32 %v3080_v34, %v1887_v42 }
 0x927   : > { %v1988_v57 = vsel %vm1241_vm5, %v1969_v55, 0 }
 0x928   : > { %v1897_v46 = vadd.f32 %v3081_v38, %v1892_v45  ;;  %1994 = vmatpush.bf16.xpose.msrb.mxu0 %v1988_v57 }
 0x92a   : > { %v1899_v47 = vmul.f32 %v3554_v19, %v1897_v46 }
 0x92c   : > { %v2106_v49 = vpack.c.bf16 %v1899_v47, %v1898_v50  ;;  %v1901_v14 = vadd.f32 %v1899_v47, %v3565_v23  ;;  %v2088_v23 = vsel %vm1241_vm5, %v2069_v22, 0 }
 0x92d   : > { %2094 = vmatpush.bf16.xpose.msra.mxu3 %v2088_v23 }
 0x92e   : > { %2108 = vxpose.xlu2.c.b16.start.end [1/1] (short) (narrow) %v2106_v49, 32  ;;  %v1907_v51 = vpack.c.bf16 %v1901_v14, %v1900_v48 }
 0x930   : > { %2927 = vmatmul.msk.bf16.vlgmr.msrb.gmra.mxu3 %vm1241_vm5, %v1907_v51  ;;  %2943 = vmatmul.msk.bf16.vlgmr.msra.gmra.mxu2 %vm1241_vm5, %v1907_v51 }
 0x931   : > { %1995 = vmatpush.bf16.xpose.msrb.mxu0 %v1985_v16 }
 0x935   : > { %2095 = vmatpush.bf16.xpose.msra.mxu3 %v2085_v6 }
 0x939   : > { %1996 = vmatpush.bf16.xpose.msrb.mxu0 %v1982_v11 }
 0x93d   : > { %2096 = vmatpush.bf16.xpose.msra.mxu3 %v2082_v12 }
 0x941   : > { %1997 = vmatpush.bf16.xpose.msrb.mxu0 %v1979_v29 }
 0x945   : > { %2097 = vmatpush.bf16.xpose.msra.mxu3 %v2079_v30 }
 0x9b3   : > { %v1933_v31 = vpop.f32.mrf.mxu3  ;;  %v2033_v32 = vpop.f32.mrf.mxu2 }
 0x9b4   : > { %v1934_v33 = vadd.f32 %v3082_v27, %v1933_v31  ;;  %v2034_v0 = vadd.f32 %v3083_v28, %v2033_v32 }
 0x9b6   : > { %v1938_v34 = vmul.f32 %v1934_v33, %v1934_v33  ;;  %v2038_v35 = vmul.f32 %v2034_v0, %v2034_v0 }
 0x9b8   : > { %v1940_v36 = vmul.f32 %v1938_v34, %v1934_v33  ;;  %v2040_v37 = vmul.f32 %v2038_v35, %v2034_v0 }
 0x9ba   : > { %v1942_v38 = vmul.f32 0.044715, %v1940_v36  ;;  %v2042_v39 = vmul.f32 0.044715, %v2040_v37 }
 0x9bb   : > { %v1935_v41 = vpop.f32.mrf.mxu3  ;;  %v2035_v42 = vpop.f32.mrf.mxu2 }
 0x9bc   : > { %v1944_v43 = vadd.f32 %v1942_v38, %v1934_v33  ;;  %v2044_v45 = vadd.f32 %v2042_v39, %v2034_v0  ;;  %v1936_v46 = vadd.f32 %v3082_v27, %v1935_v41  ;;  %v2036_v50 = vadd.f32 %v3083_v28, %v2035_v42 }
 0x9be   : > { %v1946_v47 = vmul.f32 0.7978846, %v1944_v43  ;;  %v1939_v48 = vmul.f32 %v1936_v46, %v1936_v46  ;;  %v2039_v49 = vmul.f32 %v2036_v50, %v2036_v50  ;;  %v2046_v14 = vmul.f32 0.7978846, %v2044_v45 }
 0x9c0   : > { %v1941_v51 = vmul.f32 %v1939_v48, %v1936_v46  ;;  %v2041_v52 = vmul.f32 %v2039_v49, %v2036_v50  ;;  %3132 = vtanh.f32 %v1946_v47 }
 0x9c1   : > { %3134 = vtanh.f32 %v2046_v14 }
 0x9c2   : > { %v1943_v53 = vmul.f32 0.044715, %v1941_v51  ;;  %v2043_v54 = vmul.f32 0.044715, %v2041_v52 }
 0x9c4   : > { %v1945_v55 = vadd.f32 %v1943_v53, %v1936_v46  ;;  %v2045_v56 = vadd.f32 %v2043_v54, %v2036_v50 }
 0x9c6   : > { %v1947_v22 = vmul.f32 0.7978846, %v1945_v55  ;;  %v2047_v57 = vmul.f32 0.7978846, %v2045_v56  ;;  %v3133_v23 = vpop.eup %3132 }
 0x9c7   : > { %v3135_v58 = vpop.eup %3134  ;;  %v1950_v59 = vadd.f32 1.0, %v3133_v23 }
 0x9c8   : > { %3136 = vtanh.f32 %v1947_v22  ;;  %v2050_v60 = vadd.f32 1.0, %v3135_v58 }
 0x9c9   : > { %3138 = vtanh.f32 %v2047_v57  ;;  %v1952_v1 = vmul.f32 0.5, %v1950_v59 }
 0x9ca   : > { %v2052_v6 = vmul.f32 0.5, %v2050_v60 }
 0x9cb   : > { %v1954_v8 = vmul.f32 %v1952_v1, %v1934_v33 }
 0x9cc   : > { %v2054_v10 = vmul.f32 %v2052_v6, %v2034_v0 }
 0x9ce   : > { %v3137_v61 = vpop.eup %3136 }
 0x9cf   : > { %v3139_v62 = vpop.eup %3138  ;;  %v1951_v16 = vadd.f32 1.0, %v3137_v61  ;;  %v2116_v30 = vpop.trf.xlu2 }
 0x9d0   : > { %v2051_v7 = vadd.f32 1.0, %v3139_v62 }
 0x9d1   : > { %v1953_v3 = vmul.f32 0.5, %v1951_v16 }
 0x9d2   : > { %v2053_v4 = vmul.f32 0.5, %v2051_v7 }
 0x9d3   : > { %v1955_v9 = vmul.f32 %v1953_v3, %v1936_v46 }
 0x9d4   : > { %v2055_v11 = vmul.f32 %v2053_v4, %v2036_v50 }
 0x9d5   : > { %v1965_v12 = vpack.c.bf16 %v1955_v9, %v1954_v8 }
 0x9d6   : > { %v2065_v13 = vpack.c.bf16 %v2055_v11, %v2054_v10 }
 0x9d7   : > { %2937 = vmatmul.msk.bf16.vlgmr.msrb.gmra.mxu0 %vm1241_vm5, %v1965_v12 }
 0x9d8   : > { %2953 = vmatmul.msk.bf16.vlgmr.msra.gmra.mxu3 %vm1241_vm5, %v2065_v13  ;;  %v3085_v13 = vld [vmem:[%s3631_s1 + $0x1] ss:$0 sm:$0xff]  ;;  %s4072_s1 = sld [smem:[#allocation8_spill]] }
 0x9df   : > { %v2117_v31 = vpop.trf.xlu2 }
 0xa54   : > { %v1999_v18 = vpop.f32.mrf.mxu0 }
 0xa55   : > { %v2000_v21 = vadd.f32 %v3084_v20, %v1999_v18 }
 0xa57   : > { %v2004_v27 = vmul.f32 %v3552_v17, %v2000_v21 }
 0xa5b   : > { %v2099_v62 = vpop.f32.mrf.mxu3 }
 0xa5c   : > { %v2001_v25 = vpop.f32.mrf.mxu0  ;;  %v2100_v21 = vadd.f32 %v3085_v13, %v2099_v62 }
 0xa5d   : > { %v2002_v26 = vadd.f32 %v3084_v20, %v2001_v25 }
 0xa5f   : > { %v2005_v28 = vmul.f32 %v3554_v19, %v2002_v26 }
 0xa61   : > { %v2107_v29 = vpack.c.bf16 %v2005_v28, %v2004_v27  ;;  %v2104_v27 = vmul.f32 %v3552_v17, %v2100_v21 }
 0xa63   : > { %2137 = vmatpush.bf16.msrb.mxu1 %v2107_v29  ;;  %v2101_v12 = vpop.f32.mrf.mxu3 }
 0xa64   : > { %v2102_v20 = vadd.f32 %v3085_v13, %v2101_v12 }
 0xa66   : > { %2954 = vmatmul.msk.bf16.vlgmr.msrb.gmra.mxu1 %vm1531_vm13, %v2116_v30  ;;  %v2105_v26 = vmul.f32 %v3554_v19, %v2102_v20  ;;  %v2968_v20 = vld [vmem:[%s3729_s15 + $0x78] sm:$0xff] }
 0xa68   : > { %v2189_v28 = vpack.c.bf16 %v2105_v26, %v2104_v27  ;;  %v2965_v26 = vld [vmem:[%s3729_s15 + $0x60] sm:$0xff]  ;;  %v2966_v27 = vld [vmem:[%s3729_s15 + $0x68] sm:$0xff] }
 0xa76   : > { %2955 = vmatmul.msk.bf16.gmra.mxu1 %vm1531_vm13, %v2117_v31 }
 0xae3   : > { %v2139_v32 = vpop.f32.mrf.mxu1 }
 0xae4   : > { %v2149_v34 = vmul.f32 %v2139_v32, %v3647_v2 }
 0xae6   : > { %v2153_v36 = vmul.f32 %v2149_v34, %v2149_v34 }
 0xae8   : > { %v2157_v42 = vmul.f32 %v2153_v36, %v2149_v34 }
 0xaea   : > { %v2161_v50 = vmul.f32 0.044715, %v2157_v42 }
 0xaeb   : > { %v2141_v33 = vpop.f32.mrf.mxu1 }
 0xaec   : > { %v2150_v0 = vmul.f32 %v2141_v33, %v3642_v63  ;;  %v2165_v2 = vadd.f32 %v2161_v50, %v2149_v34 }
 0xaee   : > { %v2154_v35 = vmul.f32 %v2150_v0, %v2150_v0 }
 0xaf0   : > { %v2158_v39 = vmul.f32 %v2154_v35, %v2150_v0 }
 0xaf2   : > { %v2162_v45 = vmul.f32 0.044715, %v2158_v39 }
 0xaf3   : > { %v2144_v37 = vpop.f32.mrf.mxu1 }
 0xaf4   : > { %v2151_v38 = vmul.f32 %v2144_v37, %v3654_v5  ;;  %v2166_v14 = vadd.f32 %v2162_v45, %v2150_v0  ;;  %v2169_v5 = vmul.f32 0.7978846, %v2165_v2 }
 0xaf6   : > { %v2155_v41 = vmul.f32 %v2151_v38, %v2151_v38  ;;  %v2170_v53 = vmul.f32 0.7978846, %v2166_v14 }
 0xaf8   : > { %v2159_v43 = vmul.f32 %v2155_v41, %v2151_v38 }
 0xafa   : > { %v2163_v46 = vmul.f32 0.044715, %v2159_v43 }
 0xafb   : > { %v2146_v47 = vpop.f32.mrf.mxu1 }
 0xafc   : > { %v2167_v48 = vadd.f32 %v2163_v46, %v2151_v38  ;;  %v2152_v49 = vmul.f32 %v2146_v47, %v3660_v15 }
 0xafe   : > { %v2171_v63 = vmul.f32 0.7978846, %v2167_v48  ;;  %v2156_v51 = vmul.f32 %v2152_v49, %v2152_v49 }
 0xb00   : > { %v2160_v52 = vmul.f32 %v2156_v51, %v2152_v49  ;;  %3140 = vtanh.f32 %v2171_v63 }
 0xb01   : > { %3142 = vtanh.f32 %v2170_v53  ;;  %v3086_v53 = vld [vmem:[%s3679_s11 + $0x1] ss:$0 sm:$0xff] }
 0xb02   : > { %v2164_v54 = vmul.f32 0.044715, %v2160_v52  ;;  %3144 = vtanh.f32 %v2169_v5 }
 0xb04   : > { %v2168_v55 = vadd.f32 %v2164_v54, %v2152_v49 }
 0xb06   : > { %v2172_v56 = vmul.f32 0.7978846, %v2168_v55  ;;  %v3141_v22 = vpop.eup %3140 }
 0xb07   : > { %v2179_v57 = vadd.f32 1.0, %v3141_v22  ;;  %v3143_v23 = vpop.eup %3142 }
 0xb08   : > { %3146 = vtanh.f32 %v2172_v56  ;;  %v3145_v58 = vpop.eup %3144  ;;  %v2178_v61 = vadd.f32 1.0, %v3143_v23  ;;  %v3087_v56 = vld [vmem:[%s3685_s26 + $0x1] ss:$0 sm:$0xff]  ;;  %s1075_s26 = sand.u32 1, %s4071_s4  }
 0xb09   : > { %v2183_v60 = vmul.f32 0.5, %v2179_v57  ;;  %v2177_v16 = vadd.f32 1.0, %v3145_v58 }
 0xb0a   : > { %v2182_v3 = vmul.f32 0.5, %v2178_v61 }
 0xb0b   : > { %v2187_v6 = vmul.f32 %v2183_v60, %v2151_v38  ;;  %v2181_v8 = vmul.f32 0.5, %v2177_v16 }
 0xb0c   : > { %v2186_v10 = vmul.f32 %v2182_v3, %v2150_v0 }
 0xb0d   : > { %v2185_v11 = vmul.f32 %v2181_v8, %v2149_v34 }
 0xb0e   : > { %v3147_v59 = vpop.eup %3146 }
 0xb0f   : > { %v2180_v15 = vadd.f32 1.0, %v3147_v59  ;;  %v2190_v18 = vpack.c.bf16 %v2186_v10, %v2185_v11 }
 0xb11   : > { %v2184_v1 = vmul.f32 0.5, %v2180_v15  ;;  %v2196_v25 = vsel %vm1600_vm14, %v2190_v18, 0  ;;  %v2967_v18 = vld [vmem:[%s3729_s15 + $0x70] sm:$0xff] }
 0xb12   : > { %v2346_v21 = vpack.c.bf16 %v2968_v20, %v2967_v18 }
 0xb13   : > { %v2188_v7 = vmul.f32 %v2184_v1, %v2152_v49 }
 0xb15   : > { %v2191_v4 = vpack.c.bf16 %v2188_v7, %v2187_v6 }
 0xb17   : > { %v2199_v9 = vsel %vm1600_vm14, %v2191_v4, 0 }
 0xb18   : > { %2207 = vmatpush.bf16.xpose.msrb.mxu2 %v2199_v9 }
 0xb20   : > { %2208 = vmatpush.bf16.xpose.msrb.mxu2 %v2196_v25  ;;  %v2365_v25 = vsel %vm1241_vm5, %v2346_v21, 0 }
 0xb21   : > { %2371 = vmatpush.bf16.xpose.msra.mxu0 %v2365_v25 }
 0xb27   : > { %2956 = vmatmul.msk.bf16.vlgmr.msrb.gmra.mxu2 %vm1600_vm14, %v2189_v28  ;;  %v2345_v28 = vpack.c.bf16 %v2966_v27, %v2965_v26 }
 0xbaa   : > { %v2210_v29 = vpop.f32.mrf.mxu2 }
 0xbab   : > { %v2219_v30 = vsel %vm1241_vm5, %v2210_v29, 0.0 }
 0xbac   : > { %2220 = vadd.xlane.f32.xlu0 %v2219_v30  ;;  %v2963_v30 = vld [vmem:[%s3729_s15 + $0x50] sm:$0xff] }
 0xbb2   : > { %v2212_v31 = vpop.f32.mrf.mxu2 }
 0xbb3   : > { %v2222_v32 = vsel %vm1241_vm5, %v2212_v31, 0.0 }
 0xbb4   : > { %2223 = vadd.xlane.f32.xlu0 %v2222_v32 }
 0xc1f   : > { %v2221_v33 = vpop.xlane.xlu0 %2220 }
 0xc20   : > { %v2225_v0 = vmul.f32 %v2221_v33, %v3487_v24 }
 0xc22   : > { %v2227_v34 = vsub.f32 %v2210_v29, %v2225_v0  ;;  %v2362_v29 = vsel %vm1241_vm5, %v2345_v28, 0  ;;  %v2961_v0 = vld [vmem:[%s3729_s15 + $0x40] sm:$0xff] }
 0xc23   : > { %2372 = vmatpush.bf16.xpose.msra.mxu0 %v2362_v29 }
 0xc24   : > { %v2229_v35 = vmul.f32 %v2227_v34, %v2227_v34 }
 0xc26   : > { %v2231_v19 = vsel %vm1241_vm5, %v2229_v35, 0.0 }
 0xc27   : > { %2232 = vadd.xlane.f32.xlu0 %v2231_v19  ;;  %v2224_v17 = vpop.xlane.xlu0 %2223 }
 0xc28   : > { %v2226_v36 = vmul.f32 %v2224_v17, %v3487_v24 }
 0xc2a   : > { %v2228_v37 = vsub.f32 %v2212_v31, %v2226_v36  ;;  %v2964_v31 = vld [vmem:[%s3729_s15 + $0x58] sm:$0xff] }
 0xc2b   : > { %v2344_v32 = vpack.c.bf16 %v2964_v31, %v2963_v30 }
 0xc2c   : > { %v2230_v38 = vmul.f32 %v2228_v37, %v2228_v37 }
 0xc2d   : > { %v2359_v33 = vsel %vm1241_vm5, %v2344_v32, 0 }
 0xc2e   : > { %v2234_v39 = vsel %vm1241_vm5, %v2230_v38, 0.0  ;;  %2373 = vmatpush.bf16.xpose.msra.mxu0 %v2359_v33 }
 0xc2f   : > { %2235 = vadd.xlane.f32.xlu0 %v2234_v39 }
 0xc9a   : > { %v2233_v41 = vpop.xlane.xlu0 %2232 }
 0xc9b   : > { %v2237_v42 = vmul.f32 %v2233_v41, %v3487_v24 }
 0xc9d   : > { %v2239_v43 = vadd.f32 1e-05, %v2237_v42 }
 0xc9f   : > { %3148 = vrsqrt.f32 %v2239_v43  ;;  %vm2247_vm4 = vweird.f32 %v2239_v43 }
 0xca2   : > { %v2236_v45 = vpop.xlane.xlu0 %2235 }
 0xca3   : > { %v2238_v46 = vmul.f32 %v2236_v45, %v3487_v24 }
 0xca5   : > { %v3149_v50 = vpop.eup %3148  ;;  %v2240_v47 = vadd.f32 1e-05, %v2238_v46 }
 0xca6   : > { %v2242_v48 = vmul.f32 %v3149_v50, %v2239_v43  ;;  %vm2248_vm13 = vweird.f32 %v3149_v50 }
 0xca7   : > { %3150 = vrsqrt.f32 %v2240_v47  ;;  %vm2249_vm6 = vmor %vm2247_vm4, %vm2248_vm13  ;;  %vm2257_vm8 = vweird.f32 %v2240_v47 }
 0xca8   : > { %v2243_v49 = vmul.f32 %v3149_v50, %v2242_v48 }
 0xcaa   : > { %v2244_v14 = vmul.f32 0.5, %v2243_v49 }
 0xcac   : > { %v2245_v63 = vsub.f32 1.5, %v2244_v14 }
 0xcad   : > { %v3151_v51 = vpop.eup %3150 }
 0xcae   : > { %v2246_v2 = vmul.f32 %v3149_v50, %v2245_v63  ;;  %v2252_v52 = vmul.f32 %v3151_v51, %v2240_v47  ;;  %vm2258_vm7 = vweird.f32 %v3151_v51 }
 0xcaf   : > { %vm2259_vm9 = vmor %vm2257_vm8, %vm2258_vm7  ;;  %vm2518_vm7 = vcmask 253952  }
 0xcb0   : > { %v2250_v54 = vsel %vm2249_vm6, %v3149_v50, %v2246_v2  ;;  %v2253_v5 = vmul.f32 %v3151_v51, %v2252_v52  ;;  %v3088_v52 = vld [vmem:[%s3700_s23 + $0x1] ss:$0 sm:$0xff] }
 0xcb1   : > { %v2261_v55 = vmul.f32 %v2250_v54, %v2227_v34  ;;  %v2962_v34 = vld [vmem:[%s3729_s15 + $0x48] sm:$0xff] }
 0xcb2   : > { %v2254_v22 = vmul.f32 0.5, %v2253_v5  ;;  %v2343_v35 = vpack.c.bf16 %v2962_v34, %v2961_v0 }
 0xcb3   : > { %v2266_v57 = vmul.f32 %v3086_v53, %v2261_v55  ;;  %v3089_v55 = vld [vmem:[%s3706_s13 + $0x1] ss:$0 sm:$0xff]  ;;  %s2980_s13 = sshll.u32 %s3468_s27, 4  ;;  %s4070_s27 = sld [smem:[#allocation9_spill]] }
 0xcb4   : > { %v2255_v23 = vsub.f32 1.5, %v2254_v22  ;;  %v2356_v17 = vsel %vm1241_vm5, %v2343_v35, 0  ;;  %s1090_s5 = scalar_lea.vmem %s4067_s30, %s2980_s13  ;;  %s1076_s13 = scalar_lea.vmem [#allocation2], %s1075_s26 }
 0xcb5   : > { %v2271_v58 = vadd.f32 %v3087_v56, %v2266_v57  ;;  %2374 = vmatpush.bf16.xpose.msra.mxu0 %v2356_v17  ;;  %v3091_v17 = vld [vmem:[%s3752_s9 + $0x1] ss:$0 sm:$0xff]  ;;  %s4074_s9 = smov %s4073_s7  ;;  %s2533_s15 = sshll.u32 %s1076_s13, 4  ;;  %s2534_s15 = int_to_ptr.vmem [resolvable:$true] %s2533_s15 }
 0xcb6   : > { %v2256_v59 = vmul.f32 %v3151_v51, %v2255_v23  ;;  %s2521_s30 = scalar_lea.sflag [#allocation3], %s1075_s26 }
 0xcb7   : > { %v3861_v15 = vadd.f32 %v2271_v58, %v3770_v40 }
 0xcb8   : > { %v2260_v60 = vsel %vm2259_vm9, %v3151_v51, %v2256_v59 }
 0xcb9   : > { %v2262_v61 = vmul.f32 %v2260_v60, %v2228_v37  ;;  %v2279_v62 = vsel %vm1241_vm5, %v3861_v15, 0.0  ;;  %v2973_v60 = vld [vmem:[%s3758_s16 + $0x30] sm:$0xff]  ;;  %s2977_s11 = sshll.u32 %s4070_s27, 1 }
 0xcba   : > { %2280 = vadd.xlane.f32.xlu0 %v2279_v62  ;;  %s2530_s23 = sadd.s32 %s4072_s1, %s2977_s11 }
 0xcbb   : > { %v2267_v1 = vmul.f32 %v3086_v53, %v2262_v61  ;;  %v2974_v61 = vld [vmem:[%s3758_s16 + $0x38] sm:$0xff]  ;;  %s2531_s10 = scalar_lea.hbm %s4073_s7, %s2530_s23 }
 0xcbc   : > { %v2406_v62 = vpack.c.bf16 %v2974_v61, %v2973_v60 }
 0xcbd   : > { %v2272_v16 = vadd.f32 %v3087_v56, %v2267_v1 }
 0xcbe   : > { %v2414_v1 = vsel %vm1600_vm14, %v2406_v62, 0 }
 0xcbf   : > { %v3866_v6 = vadd.f32 %v2272_v16, %v3775_v44  ;;  %2422 = vmatpush.bf16.xpose.msra.mxu2 %v2414_v1  ;;  %v2971_v16 = vld [vmem:[%s3758_s16 + $0x20] sm:$0xff] }
 0xcc1   : > { %v2282_v7 = vsel %vm1241_vm5, %v3866_v6, 0.0 }
 0xcc2   : > { %2283 = vadd.xlane.f32.xlu2 %v2282_v7  ;;  %v2972_v7 = vld [vmem:[%s3758_s16 + $0x28] sm:$0xff]  ;;  %s2535_s16 = sshll.u32 %s2531_s10, 4  ;;  %s2536_s16 = int_to_ptr.hbm [resolvable:$true] %s2535_s16 }
 0xd2d   : > { %v2281_v3 = vpop.xlane.xlu0 %2280 }
 0xd2e   : > { %v2285_v40 = vmul.f32 %v2281_v3, %v3487_v24  ;;  %v2405_v3 = vpack.c.bf16 %v2972_v7, %v2971_v16 }
 0xd30   : > { %v2287_v4 = vsub.f32 %v3861_v15, %v2285_v40  ;;  %v3090_v40 = vld [vmem:[%s3723_s12 + $0x1] ss:$0 sm:$0xff] }
 0xd32   : > { %v2289_v8 = vmul.f32 %v2287_v4, %v2287_v4 }
 0xd34   : > { %v2291_v9 = vsel %vm1241_vm5, %v2289_v8, 0.0 }
 0xd35   : > { %v2284_v10 = vpop.xlane.xlu2 %2283  ;;  %2292 = vadd.xlane.f32.xlu0 %v2291_v9 }
 0xd36   : > { %v2286_v44 = vmul.f32 %v2284_v10, %v3487_v24 }
 0xd38   : > { %v2288_v11 = vsub.f32 %v3866_v6, %v2286_v44 }
 0xd3a   : > { %v2290_v12 = vmul.f32 %v2288_v11, %v2288_v11 }
 0xd3c   : > { %v2294_v13 = vsel %vm1241_vm5, %v2290_v12, 0.0 }
 0xd3d   : > { %2295 = vadd.xlane.f32.xlu0 %v2294_v13 }
 0xda8   : > { %v2293_v19 = vpop.xlane.xlu0 %2292 }
 0xda9   : > { %v2297_v36 = vmul.f32 %v2293_v19, %v3487_v24 }
 0xdab   : > { %v2299_v37 = vadd.f32 1e-05, %v2297_v36 }
 0xdad   : > { %3152 = vrsqrt.f32 %v2299_v37  ;;  %vm2307_vm11 = vweird.f32 %v2299_v37 }
 0xdb0   : > { %v2296_v38 = vpop.xlane.xlu0 %2295 }
 0xdb1   : > { %v2298_v39 = vmul.f32 %v2296_v38, %v3487_v24 }
 0xdb3   : > { %v3153_v41 = vpop.eup %3152  ;;  %v2300_v42 = vadd.f32 1e-05, %v2298_v39 }
 0xdb4   : > { %v2302_v43 = vmul.f32 %v3153_v41, %v2299_v37  ;;  %vm2308_vm10 = vweird.f32 %v3153_v41 }
 0xdb5   : > { %3154 = vrsqrt.f32 %v2300_v42  ;;  %vm2309_vm12 = vmor %vm2307_vm11, %vm2308_vm10  ;;  %vm2317_vm0 = vweird.f32 %v2300_v42 }
 0xdb6   : > { %v2303_v45 = vmul.f32 %v3153_v41, %v2302_v43 }
 0xdb8   : > { %v2304_v46 = vmul.f32 0.5, %v2303_v45 }
 0xdba   : > { %v2305_v50 = vsub.f32 1.5, %v2304_v46 }
 0xdbb   : > { %v3155_v47 = vpop.eup %3154 }
 0xdbc   : > { %v2306_v48 = vmul.f32 %v3153_v41, %v2305_v50  ;;  %v2312_v49 = vmul.f32 %v3155_v47, %v2300_v42  ;;  %vm2318_vm15 = vweird.f32 %v3155_v47 }
 0xdbd   : > { %vm2319_vm1 = vmor %vm2317_vm0, %vm2318_vm15 }
 0xdbe   : > { %v2313_v14 = vmul.f32 %v3155_v47, %v2312_v49  ;;  %v2310_v63 = vsel %vm2309_vm12, %v3153_v41, %v2306_v48 }
 0xdbf   : > { %v2321_v53 = vmul.f32 %v2310_v63, %v2287_v4  ;;  %v2411_v4 = vsel %vm1600_vm14, %v2405_v3, 0 }
 0xdc0   : > { %v2314_v51 = vmul.f32 0.5, %v2313_v14  ;;  %2423 = vmatpush.bf16.xpose.msra.mxu2 %v2411_v4 }
 0xdc1   : > { %v2326_v56 = vmul.f32 %v3088_v52, %v2321_v53 }
 0xdc2   : > { %v2315_v2 = vsub.f32 1.5, %v2314_v51 }
 0xdc3   : > { %v2331_v23 = vadd.f32 %v3089_v55, %v2326_v56 }
 0xdc4   : > { %v2316_v54 = vmul.f32 %v3155_v47, %v2315_v2 }
 0xdc6   : > { %v2320_v5 = vsel %vm2319_vm1, %v3155_v47, %v2316_v54 }
 0xdc7   : > { %v2322_v22 = vmul.f32 %v2320_v5, %v2288_v11 }
 0xdc9   : > { %v2327_v57 = vmul.f32 %v3088_v52, %v2322_v22  ;;  %v2495_v52 = vld [vmem:[%s1090_s5] sm:$0xff] }
 0xdcb   : > { %v2332_v58 = vadd.f32 %v3089_v55, %v2327_v57 }
 0xdcd   : > { %v2342_v59 = vpack.c.bf16 %v2332_v58, %v2331_v23 }
 0xdcf   : > { %2970 = vmatmul.msk.bf16.vlgmr.msra.gmra.mxu0 %vm1241_vm5, %v2342_v59 }
 0xe4c   : > { %v2376_v8 = vpop.f32.mrf.mxu0 }
 0xe4d   : > { %v2377_v9 = vadd.f32 %v3090_v40, %v2376_v8 }
 0xe4f   : > { %v2381_v10 = vmul.f32 %v2377_v9, %v2377_v9 }
 0xe51   : > { %v2383_v44 = vmul.f32 %v2381_v10, %v2377_v9 }
 0xe53   : > { %v2385_v11 = vmul.f32 0.044715, %v2383_v44 }
 0xe54   : > { %v2378_v12 = vpop.f32.mrf.mxu0 }
 0xe55   : > { %v2387_v13 = vadd.f32 %v2385_v11, %v2377_v9  ;;  %v2379_v18 = vadd.f32 %v3090_v40, %v2378_v12  ;;  %v3092_v40 = vld [vmem:[%s1175_s3] ss:$0 sm:$0xff]  ;;  %s3184_s3 = scalar_lea.hbm %s4074_s9, 10 }
 0xe57   : > { %v2389_v20 = vmul.f32 0.7978846, %v2387_v13  ;;  %v2382_v21 = vmul.f32 %v2379_v18, %v2379_v18 }
 0xe59   : > { %v2384_v25 = vmul.f32 %v2382_v21, %v2379_v18  ;;  %3156 = vtanh.f32 %v2389_v20 }
 0xe5b   : > { %v2386_v26 = vmul.f32 0.044715, %v2384_v25 }
 0xe5d   : > { %v2388_v27 = vadd.f32 %v2386_v26, %v2379_v18 }
 0xe5f   : > { %v2390_v28 = vmul.f32 0.7978846, %v2388_v27  ;;  %v3157_v29 = vpop.eup %3156 }
 0xe60   : > { %v2393_v30 = vadd.f32 1.0, %v3157_v29 }
 0xe61   : > { %3158 = vtanh.f32 %v2390_v28 }
 0xe62   : > { %v2395_v32 = vmul.f32 0.5, %v2393_v30 }
 0xe64   : > { %v2397_v34 = vmul.f32 %v2395_v32, %v2377_v9  ;;  %v3093_v9 = vld [vmem:[%s1178_s2] ss:$0 sm:$0xff] }
 0xe67   : > { %v3159_v31 = vpop.eup %3158 }
 0xe68   : > { %v2394_v33 = vadd.f32 1.0, %v3159_v31 }
 0xe6a   : > { %v2396_v0 = vmul.f32 0.5, %v2394_v33 }
 0xe6c   : > { %v2398_v35 = vmul.f32 %v2396_v0, %v2379_v18 }
 0xe6e   : > { %v2404_v19 = vpack.c.bf16 %v2398_v35, %v2397_v34 }
 0xe70   : > { %2975 = vmatmul.msk.bf16.vlgmr.msra.gmra.mxu2 %vm1600_vm14, %v2404_v19 }
 0xef3   : > { %v2425_v36 = vpop.f32.mrf.mxu2 }
 0xef4   : > { %v2430_v37 = vadd.f32 %v2425_v36, %v3861_v15  ;;  %v2496_v15 = vld [vmem:[%s1090_s5 + $0x8] sm:$0xff]  ;;  %s3178_s5 = sshra.s32 %s2536_s16, 4  ;;  %s3179_s5 = int_to_ptr.hbm [resolvable:$true] %s3178_s5 }
 0xef5   : > { %2504 = vperm.xlu1 %3067, %v2496_v15   ;;  %s3180_s29 = scalar_lea.hbm %s3179_s5, 1  ;;  %p3185_p4 = scmp.lt.s32.totalorder %s3179_s5, %s4074_s9 }
 0xef6   : > { %v2437_v38 = vadd.f32 %v3091_v17, %v2430_v37  ;;  %p3181_p0 = scmp.ne.s32.totalorder %s3179_s5, %s3180_s29  ;;  %p3186_p5 = scmp.lt.s32.totalorder %s3184_s3, %s3180_s29 }
 0xef8   : > { %v2441_v39 = vsel %vm1241_vm5, %v2437_v38, 0.0  ;;  %p3182_p1 = pnand %p3181_p0, %p3444_p3  ;;  %p3187_p6 = por %p3186_p5, %p3185_p4 }
 0xef9   : > { %2442 = vadd.xlane.f32.xlu0 %v2441_v39 }
 0xefa   : > { %p3183_p2 = pneg %p3182_p1 }
 0xefb   : > { %v2427_v41 = vpop.f32.mrf.mxu2 }
 0xefc   : > { %v2431_v42 = vadd.f32 %v2427_v41, %v3866_v6  ;;  %p3188_p7 = pnand %p3187_p6, %p3183_p2 }
 0xefe   : > { %v2438_v43 = vadd.f32 %v3091_v17, %v2431_v42 }
 0xf00   : > { %v2444_v45 = vsel %vm1241_vm5, %v2438_v43, 0.0 }
 0xf01   : > { %2445 = vadd.xlane.f32.xlu0 %v2444_v45 }
 0xf67   : > { %v2505_v20 = vpop.permute.xlu1 %2504 }
 0xf6c   : > { %v2443_v46 = vpop.xlane.xlu0 %2442 }
 0xf6d   : > { %v2447_v50 = vmul.f32 %v2443_v46, %v3487_v24 }
 0xf6f   : > { %v2449_v47 = vsub.f32 %v2437_v38, %v2447_v50 }
 0xf71   : > { %v2451_v48 = vmul.f32 %v2449_v47, %v2449_v47 }
 0xf73   : > { %v2453_v6 = vsel %vm1241_vm5, %v2451_v48, 0.0 }
 0xf74   : > { %2454 = vadd.xlane.f32.xlu0 %v2453_v6  ;;  %v2446_v49 = vpop.xlane.xlu0 %2445 }
 0xf75   : > { %v2448_v14 = vmul.f32 %v2446_v49, %v3487_v24 }
 0xf77   : > { %v2450_v63 = vsub.f32 %v2438_v43, %v2448_v14 }
 0xf79   : > { %v2452_v51 = vmul.f32 %v2450_v63, %v2450_v63 }
 0xf7b   : > { %v2456_v2 = vsel %vm1241_vm5, %v2452_v51, 0.0 }
 0xf7c   : > { %2457 = vadd.xlane.f32.xlu0 %v2456_v2 }
 0xf90   : > { %2499 = vperm.xlu0 %3061, %v2495_v52  }
 0xfe7   : > { %v2455_v53 = vpop.xlane.xlu0 %2454 }
 0xfe8   : > { %v2459_v54 = vmul.f32 %v2455_v53, %v3487_v24 }
 0xfea   : > { %v2461_v5 = vadd.f32 1e-05, %v2459_v54 }
 0xfec   : > { %3160 = vrsqrt.f32 %v2461_v5  ;;  %vm2469_vm2 = vweird.f32 %v2461_v5 }
 0xfef   : > { %v2458_v55 = vpop.xlane.xlu0 %2457 }
 0xff0   : > { %v2460_v56 = vmul.f32 %v2458_v55, %v3487_v24 }
 0xff2   : > { %v3161_v22 = vpop.eup %3160  ;;  %v2462_v57 = vadd.f32 1e-05, %v2460_v56 }
 0xff3   : > { %v2464_v23 = vmul.f32 %v3161_v22, %v2461_v5  ;;  %vm2470_vm14 = vweird.f32 %v3161_v22 }
 0xff4   : > { %3162 = vrsqrt.f32 %v2462_v57  ;;  %vm2471_vm3 = vmor %vm2469_vm2, %vm2470_vm14  ;;  %vm2479_vm4 = vweird.f32 %v2462_v57 }
 0xff5   : > { %v2465_v58 = vmul.f32 %v3161_v22, %v2464_v23 }
 0xff7   : > { %v2466_v59 = vmul.f32 0.5, %v2465_v58 }
 0xff9   : > { %v2467_v60 = vsub.f32 1.5, %v2466_v59 }
 0xffa   : > { %v3163_v61 = vpop.eup %3162 }
 0xffb   : > { %v2468_v62 = vmul.f32 %v3161_v22, %v2467_v60  ;;  %v2474_v1 = vmul.f32 %v3163_v61, %v2462_v57  ;;  %vm2480_vm13 = vweird.f32 %v3163_v61 }
 0xffc   : > { %vm2481_vm6 = vmor %vm2479_vm4, %vm2480_vm13 }
 0xffd   : > { %v2475_v16 = vmul.f32 %v3163_v61, %v2474_v1  ;;  %v2472_v7 = vsel %vm2471_vm3, %v3161_v22, %v2468_v62 }
 0xffe   : > { %v2483_v3 = vmul.f32 %v2472_v7, %v2449_v47 }
 0xfff   : > { %v2476_v4 = vmul.f32 0.5, %v2475_v16 }
0x1000   : > { %v2488_v24 = vmul.f32 %v3092_v40, %v2483_v3 }
0x1001   : > { %v2477_v8 = vsub.f32 1.5, %v2476_v4 }
0x1002   : > { %v2493_v11 = vadd.f32 %v3093_v9, %v2488_v24  ;;  %v2500_v13 = vpop.permute.xlu0 %2499 }
0x1003   : > { %v2478_v10 = vmul.f32 %v3163_v61, %v2477_v8 }
0x1004   : > { %v2507_v21 = vmul.f32 %v2500_v13, %v2493_v11 }
0x1005   : > { %v2482_v44 = vsel %vm2481_vm6, %v3163_v61, %v2478_v10 }
0x1006   : > { %v2484_v12 = vmul.f32 %v2482_v44, %v2450_v63  ;;  %v2509_v27 = vsel %vm1241_vm5, %v2507_v21, 0.0 }
0x1008   : > { %v2489_v18 = vmul.f32 %v3092_v40, %v2484_v12 }
0x100a   : > { %v2494_v25 = vadd.f32 %v3093_v9, %v2489_v18 }
0x100c   : > { %v2508_v26 = vmul.f32 %v2505_v20, %v2494_v25 }
0x100e   : > { %v2510_v28 = vsel %vm1241_vm5, %v2508_v26, 0.0 }
0x100f   : > { %v2511_v29 = vadd.f32 %v2510_v28, %v2509_v27 }
0x1011   : > { %v2512_v30 = vrot.slane %v2511_v29, 4 }
0x1013   : > { %v2513_v31 = vadd.f32 %v2512_v30, %v2511_v29 }
0x1015   : > { %v2514_v32 = vrot.slane %v2513_v31, 2 }
0x1017   : > { %v2515_v33 = vadd.f32 %v2514_v32, %v2513_v31 }
0x1019   : > { %v2516_v0 = vrot.slane %v2515_v33, 1 }
0x101b   : > { %v2517_v34 = vadd.f32 %v2516_v0, %v2515_v33 }
0x101d   : > { %2519 = vst.msk [vmem:[%s1076_s13] sm:$0x1] %vm2518_vm7, %v2517_v34 }
0x101e   : > { %3191 = shalt.err (!%p3188_p7)
}
0x101f   : > { %2987 = dma.vmem_to_hbm [thread:$0]  (%p3444_p3), %s2534_s15, 16, %s2536_s16, %s2521_s30  }
0x1020 PF: > { %s4076_s6 = sld [smem:[#allocation12_spill]] }
0x1021   : > { %s4077_s2 = sld [smem:[#allocation5_spill]] }
0x1026   : > { %p2993_p9 = scmp.ge.s32.totalorder %s4076_s6, 2 }
0x1027   : > { %s2547_s4 = sand.u32 1, %s4077_s2  }
0x1028   : > { %p2990_p10 = pnand %p2993_p9, %p3453_p8  ;;  %s2548_s1 = scalar_lea.sflag [#allocation3], %s2547_s4 }
0x102a   : > { %p2991_p11 = pneg %p2990_p10 }
0x102c   : > { %3225 = dma.done.wait (%p2991_p11), %s2548_s1, 16  }
0x102d   : > { %3227 = vsyncadd (%p2991_p11), %s2548_s1, 4294967280  ;;  %s38_s1 = sadd.s32 1, %s4076_s6   ;;  %s4079_s29 = sld [smem:[#allocation6_spill]] }
0x102e   : > { %p35_p12 = scmp.ge.s32.totalorder %s38_s1, 12   ;;  %s4080_s2 = sld [smem:[#allocation7_spill]] }
0x102f   : > { %s4081_s6 = sld [smem:[#allocation17_spill]] }
0x1030   : > { %s4082_s30 = sld [smem:[#allocation10_spill]]  ;;  %37 = sbr.rel (!%p35_p12) target bundleno = 26 (0x1a), region = 239 }
0x1031   : > { %s4083_s7 = sld [smem:[#allocation11_spill]] }
0x1032   : > { %s4084_s3 = sld [smem:[#allocation13_spill]] }
0x1033   : > { %s4085_s26 = sld [smem:[#allocation15_spill]] }
0x1035   :  { %2553 = vsyncpa [#allocation3], 1 }
0x1036   :  { %2555 = vsyncpa [#allocation3 + $0x1], 1 }

</bundles_post_ra>
